<compile_context>
chip_gen: v6e
topology: v6e:2x2x1
jax: 0.10.0
libtpu: 0.0.40
codegen_flags: <defaults>
</compile_context>

<pallas_src>
import functools

import jax
import jax.numpy as jnp
from jax.experimental import pallas as pl
from jax.experimental.pallas import tpu as pltpu

LATENT = 128


# ----------------------------------------------------------------------------- Pallas kernels
def _matmul_act_kernel(x_ref, w_ref, b_ref, o_ref, *, activation):
    acc = jnp.dot(x_ref[...], w_ref[...], preferred_element_type=jnp.float32)
    acc = acc + b_ref[...]                      # (1, N) broadcast over rows (f32)
    if activation == "relu":
        acc = jnp.maximum(acc, 0.0)
    elif activation == "sigmoid":
        acc = jax.nn.sigmoid(acc)
    o_ref[...] = acc.astype(o_ref.dtype)


def matmul_act(x, w, b, activation=None, out_dtype=jnp.float32, *, tile_m=256):
    """(M,K) @ (K,N) + b with fused bias/activation. bf16 operands, f32 accumulate."""
    M, K = x.shape
    K2, N = w.shape
    assert K == K2
    xb = x.astype(jnp.bfloat16)
    wb = w.astype(jnp.bfloat16)
    b2 = b.reshape(1, N).astype(jnp.float32)
    kernel = functools.partial(_matmul_act_kernel, activation=activation)
    out_itemsize = jnp.dtype(out_dtype).itemsize
    cost = pl.CostEstimate(
        flops=2 * M * K * N,
        transcendentals=M * N if activation == "sigmoid" else 0,
        bytes_accessed=2 * (M * K + K * N) + 4 * N + out_itemsize * M * N,
    )
    out_shape = jax.ShapeDtypeStruct((M, N), out_dtype)

    if M > tile_m and M % tile_m == 0:
        # Parallel grid over M: lets v7x split rows across its 2 TensorCores and keeps
        # per-step VMEM footprint bounded if batch is ever scaled up.
        return pl.pallas_call(
            kernel,
            out_shape=out_shape,
            grid=(M // tile_m,),
            in_specs=[
                pl.BlockSpec((tile_m, K), lambda i: (i, 0)),
                pl.BlockSpec((K, N), lambda i: (0, 0)),
                pl.BlockSpec((1, N), lambda i: (0, 0)),
            ],
            out_specs=pl.BlockSpec((tile_m, N), lambda i: (i, 0)),
            compiler_params=pltpu.CompilerParams(dimension_semantics=("parallel",)),
            cost_estimate=cost,
        )(xb, wb, b2)

    return pl.pallas_call(
        kernel,
        out_shape=out_shape,
        in_specs=[pl.BlockSpec(memory_space=pltpu.MemorySpace.VMEM)] * 3,
        out_specs=pl.BlockSpec(memory_space=pltpu.MemorySpace.VMEM),
        cost_estimate=cost,
    )(xb, wb, b2)


def _fused_latent_kernel(h_ref, wml_ref, bml_ref, eps_ref, wd_ref, bd_ref,
                         mu_ref, lv_ref, hd_ref, *, latent_dim):
    # [fc_mu | fc_logvar] in a single 256-wide MXU pass.
    acc = jnp.dot(h_ref[...], wml_ref[...], preferred_element_type=jnp.float32)
    acc = acc + bml_ref[...]
    mu = acc[:, :latent_dim]
    lv = acc[:, latent_dim:]
    mu_ref[...] = mu
    lv_ref[...] = lv
    # reparameterize (kept in f32), then decoder_input matmul — z never leaves VMEM.
    z = mu + eps_ref[...] * jnp.exp(0.5 * lv)
    hd = jnp.dot(z.astype(jnp.bfloat16), wd_ref[...], preferred_element_type=jnp.float32)
    hd_ref[...] = hd + bd_ref[...]


def fused_latent(h_flat, mu_w, mu_b, lv_w, lv_b, d0_w, d0_b, eps, latent_dim):
    B, K = h_flat.shape
    hid = d0_w.shape[1]
    w_ml = jnp.concatenate([mu_w, lv_w], axis=1).astype(jnp.bfloat16)       # (K, 2*latent)
    b_ml = jnp.concatenate([mu_b, lv_b]).reshape(1, -1).astype(jnp.float32)
    wd = d0_w.astype(jnp.bfloat16)
    bd = d0_b.reshape(1, -1).astype(jnp.float32)
    hb = h_flat.astype(jnp.bfloat16)
    cost = pl.CostEstimate(
        flops=2 * B * K * 2 * latent_dim + 2 * B * latent_dim * hid,
        transcendentals=B * latent_dim,
        bytes_accessed=2 * (B * K + K * 2 * latent_dim + latent_dim * hid)
        + 4 * (3 * B * latent_dim + B * hid),
    )
    return pl.pallas_call(
        functools.partial(_fused_latent_kernel, latent_dim=latent_dim),
        out_shape=(
            jax.ShapeDtypeStruct((B, latent_dim), jnp.float32),
            jax.ShapeDtypeStruct((B, latent_dim), jnp.float32),
            jax.ShapeDtypeStruct((B, hid), jnp.float32),
        ),
        in_specs=[pl.BlockSpec(memory_space=pltpu.MemorySpace.VMEM)] * 6,
        out_specs=(pl.BlockSpec(memory_space=pltpu.MemorySpace.VMEM),) * 3,
        cost_estimate=cost,
    )(hb, w_ml, b_ml, eps.astype(jnp.float32), wd, bd)


# ----------------------------------------------------------------------------- conv lowering (glue)
# TODO(synk): im2col / pixel-shuffle gather are still XLA glue; could be fused in-kernel
# with BlockSpec'd NHWC rows + static window slices if this ever becomes the bottleneck.
def _im2col(x, kh, kw, stride, pad):
    """x: (B, H, W, C) NHWC -> (B*oh*ow, kh*kw*C) patches in (kh, kw, c) order."""
    x = jnp.pad(x, ((0, 0), (pad, pad), (pad, pad), (0, 0)))
    B, H, W, C = x.shape
    oh = (H - kh) // stride + 1
    ow = (W - kw) // stride + 1
    cols = []
    for i in range(kh):
        for j in range(kw):
            cols.append(x[:, i:i + (oh - 1) * stride + 1:stride,
                          j:j + (ow - 1) * stride + 1:stride, :])
    patches = jnp.stack(cols, axis=3)            # (B, oh, ow, kh*kw, C)
    return patches.reshape(B * oh * ow, kh * kw * C), oh, ow


def conv2d(x_nhwc, w_oihw, b, stride, pad, activation, out_dtype=jnp.bfloat16):
    """PyTorch-style Conv2d: w_oihw (Cout, Cin, KH, KW)."""
    Cout, Cin, KH, KW = w_oihw.shape
    xb = x_nhwc.astype(jnp.bfloat16)
    patches, oh, ow = _im2col(xb, KH, KW, stride, pad)
    w2 = jnp.transpose(w_oihw, (2, 3, 1, 0)).reshape(KH * KW * Cin, Cout)
    y = matmul_act(patches, w2, b, activation, out_dtype)
    return y.reshape(x_nhwc.shape[0], oh, ow, Cout)


def conv_transpose2d(x_nhwc, w_iohw, b, activation, out_dtype=jnp.bfloat16):
    """PyTorch ConvTranspose2d (stride=2, pad=1, k=4) via sub-pixel phase decomposition.

    Output phase (rh, rw) of o[2p+rh, 2q+rw] only touches a 2x2 slice of the (flipped)
    kernel and a 2x2 input window starting at padded position (p+rh, q+rw). All 4 phases
    are packed into one (4*Cin, 4*Cout) weight -> single matmul + pixel-shuffle gather.
    """
    Cin, Cout, KH, KW = w_iohw.shape
    assert KH == 4 and KW == 4
    B, H, W, _ = x_nhwc.shape
    # equivalent stride-1 conv kernel: spatially flipped, (KH, KW, Cin, Cout)
    w_eff = jnp.transpose(w_iohw[:, :, ::-1, ::-1], (2, 3, 0, 1))
    # flipped index f = rh + 2*di (and rw + 2*dj): split and reorder to phase-packed form.
    w6 = w_eff.reshape(2, 2, 2, 2, Cin, Cout)            # (di, rh, dj, rw, Cin, Cout)
    w_phase = jnp.transpose(w6, (0, 2, 4, 1, 3, 5))      # (di, dj, Cin, rh, rw, Cout)
    w_mat = w_phase.reshape(4 * Cin, 4 * Cout)
    b_mat = jnp.tile(b, 4)                               # same bias for every phase

    xb = x_nhwc.astype(jnp.bfloat16)
    patches, oh, ow = _im2col(xb, 2, 2, 1, 1)            # oh = H+1, ow = W+1
    r = matmul_act(patches, w_mat, b_mat, activation, out_dtype)
    r = r.reshape(B, H + 1, W + 1, 2, 2, Cout)

    # pixel shuffle: o[b, 2p+rh, 2q+rw, c] = r[b, p+rh, q+rw, rh, rw, c]
    rows = []
    for rh in (0, 1):
        cols = [r[:, rh:rh + H, rw:rw + W, rh, rw, :] for rw in (0, 1)]
        rows.append(jnp.stack(cols, axis=3))             # (B, H, W, 2, Cout)
    out = jnp.stack(rows, axis=2)                        # (B, H, 2, W, 2, Cout)
    return out.reshape(B, 2 * H, 2 * W, Cout)


# ----------------------------------------------------------------------------- parameters
def init_params(key, latent_dim=LATENT):
    def uni(key, shape, fan_in):
        bound = 1.0 / jnp.sqrt(fan_in)
        return jax.random.uniform(key, shape, jnp.float32, -bound, bound)

    ks = jax.random.split(key, 20)
    p = {}
    # encoder convs (Cout, Cin, 4, 4)
    p["e1_w"] = uni(ks[0], (32, 3, 4, 4), 3 * 16);    p["e1_b"] = uni(ks[1], (32,), 3 * 16)
    p["e2_w"] = uni(ks[2], (64, 32, 4, 4), 32 * 16);  p["e2_b"] = uni(ks[3], (64,), 32 * 16)
    p["e3_w"] = uni(ks[4], (128, 64, 4, 4), 64 * 16); p["e3_b"] = uni(ks[5], (128,), 64 * 16)
    # fc layers, stored as (in, out)
    hid = 128 * 4 * 4
    p["mu_w"] = uni(ks[6], (hid, latent_dim), hid);   p["mu_b"] = uni(ks[7], (latent_dim,), hid)
    p["lv_w"] = uni(ks[8], (hid, latent_dim), hid);   p["lv_b"] = uni(ks[9], (latent_dim,), hid)
    p["d0_w"] = uni(ks[10], (latent_dim, hid), latent_dim)
    p["d0_b"] = uni(ks[11], (hid,), latent_dim)
    # decoder transposed convs (Cin, Cout, 4, 4)
    p["d1_w"] = uni(ks[12], (128, 64, 4, 4), 128 * 16); p["d1_b"] = uni(ks[13], (64,), 128 * 16)
    p["d2_w"] = uni(ks[14], (64, 32, 4, 4), 64 * 16);   p["d2_b"] = uni(ks[15], (32,), 64 * 16)
    p["d3_w"] = uni(ks[16], (32, 3, 4, 4), 32 * 16);    p["d3_b"] = uni(ks[17], (3,), 32 * 16)
    return p


# ----------------------------------------------------------------------------- forward
def vae_forward(params, x_nchw, eps_key):
    x = jnp.transpose(x_nchw, (0, 2, 3, 1))                       # NCHW -> NHWC
    h = conv2d(x, params["e1_w"], params["e1_b"], 2, 1, "relu")   # (B,16,16,32)
    h = conv2d(h, params["e2_w"], params["e2_b"], 2, 1, "relu")   # (B, 8, 8,64)
    h = conv2d(h, params["e3_w"], params["e3_b"], 2, 1, "relu")   # (B, 4, 4,128)
    B = h.shape[0]
    h_flat = jnp.transpose(h, (0, 3, 1, 2)).reshape(B, -1)        # NCHW flatten order (B, 2048)

    eps = jax.random.normal(eps_key, (B, LATENT), dtype=jnp.float32)
    mu, logvar, hd = fused_latent(
        h_flat, params["mu_w"], params["mu_b"], params["lv_w"], params["lv_b"],
        params["d0_w"], params["d0_b"], eps, LATENT)              # (B,128),(B,128),(B,2048)

    hd = hd.reshape(B, 128, 4, 4)                                 # matches torch .view(-1,128,4,4)
    hd = jnp.transpose(hd, (0, 2, 3, 1))                          # -> NHWC
    hd = conv_transpose2d(hd, params["d1_w"], params["d1_b"], "relu")                  # (B, 8, 8,64)
    hd = conv_transpose2d(hd, params["d2_w"], params["d2_b"], "relu")                  # (B,16,16,32)
    hd = conv_transpose2d(hd, params["d3_w"], params["d3_b"], "sigmoid", jnp.float32)  # (B,32,32,3)
    recon_x = jnp.transpose(hd, (0, 3, 1, 2))                     # NHWC -> NCHW
    return recon_x, mu, logvar


# ----------------------------------------------------------------------------- main
if __name__ == "__main__":
    key = jax.random.PRNGKey(0)
    pkey, xkey, ekey = jax.random.split(key, 3)

    params = init_params(pkey, latent_dim=LATENT)
    # batch=2, 3x32x32 images (32 spatial is required by the 128*4*4 flatten in the module)
    x = jax.random.normal(xkey, (2, 3, 32, 32), dtype=jnp.float32)

    recon_x, mu, logvar = jax.jit(vae_forward)(params, x, ekey)
    jax.block_until_ready((recon_x, mu, logvar))

    assert recon_x.shape == (2, 3, 32, 32)
    assert mu.shape == (2, LATENT) and logvar.shape == (2, LATENT)
    assert bool(jnp.all(jnp.isfinite(recon_x)))
    assert bool(jnp.all((recon_x >= 0.0) & (recon_x <= 1.0)))  # sigmoid output range
    print("KERNEL_OK")
</pallas_src>

<mosaic_0001>
module attributes {stable_mosaic.version = 11 : i64} {
  func.func @_matmul_act_kernel(%arg0: i32, %arg1: memref<256x48xbf16, #tpu.memory_space<vmem>>, %arg2: memref<48x32xbf16, #tpu.memory_space<vmem>>, %arg3: memref<1x32xf32, #tpu.memory_space<vmem>>, %arg4: memref<256x32xbf16, #tpu.memory_space<vmem>>) attributes {dimension_semantics = [#tpu.dimension_semantics<parallel>], iteration_bounds = array<i64: 2>, scalar_prefetch = 0 : i64, scratch_operands = 0 : i64, tpu.core_type = #tpu.core_type<tc>, window_params = [{transform_indices = @transform_0, window_bounds = array<i64: 256, 48>}, {pipeline_mode = #tpu.pipeline_mode<synchronous>, transform_indices = @transform_1, window_bounds = array<i64: 48, 32>}, {pipeline_mode = #tpu.pipeline_mode<synchronous>, transform_indices = @transform_2, window_bounds = array<i64: 1, 32>}, {transform_indices = @transform_3, window_bounds = array<i64: 256, 32>}]} {
    %c0 = arith.constant 0 : index
    %c0_0 = arith.constant 0 : index
    %0 = vector.load %arg1[%c0, %c0_0] : memref<256x48xbf16, #tpu.memory_space<vmem>>, vector<256x48xbf16>
    %c0_1 = arith.constant 0 : index
    %c0_2 = arith.constant 0 : index
    %1 = vector.load %arg2[%c0_1, %c0_2] : memref<48x32xbf16, #tpu.memory_space<vmem>>, vector<48x32xbf16>
    %cst = arith.constant dense<0.000000e+00> : vector<256x32xf32>
    %2 = tpu.matmul %0, %1, %cst {dimension_numbers = #tpu.dot_dimension_numbers<[1], [0], [0], [1], [0, 0, 1, 1], [], []>} : vector<256x48xbf16>, vector<48x32xbf16>, vector<256x32xf32> -> vector<256x32xf32>
    %c0_3 = arith.constant 0 : index
    %c0_4 = arith.constant 0 : index
    %3 = vector.load %arg3[%c0_3, %c0_4] : memref<1x32xf32, #tpu.memory_space<vmem>>, vector<1x32xf32>
    %4 = vector.broadcast %3 : vector<1x32xf32> to vector<256x32xf32>
    %5 = arith.addf %2, %4 : vector<256x32xf32>
    %cst_5 = arith.constant 0.000000e+00 : f32
    %6 = vector.broadcast %cst_5 : f32 to vector<256x32xf32>
    %7 = arith.maximumf %5, %6 : vector<256x32xf32>
    %8 = arith.truncf %7 : vector<256x32xf32> to vector<256x32xbf16>
    %c0_6 = arith.constant 0 : index
    %c0_7 = arith.constant 0 : index
    %9 = vector.load %arg4[%c0_6, %c0_7] : memref<256x32xbf16, #tpu.memory_space<vmem>>, vector<256x32xbf16>
    tpu.vector_store %arg4[%c0_6, %c0_7], %8 {strides = array<i32>} : memref<256x32xbf16, #tpu.memory_space<vmem>>, vector<256x32xbf16>,
    return
  }
  func.func @transform_0(%arg0: i32) -> (i32, i32) {
    %c0_i32 = arith.constant 0 : i32
    %c0_i32_0 = arith.constant 0 : i32
    return %arg0, %c0_i32 : i32, i32
  }
  func.func @transform_1(%arg0: i32) -> (i32, i32) {
    %c0_i32 = arith.constant 0 : i32
    %c0_i32_0 = arith.constant 0 : i32
    %c0_i32_1 = arith.constant 0 : i32
    return %c0_i32, %c0_i32_0 : i32, i32
  }
  func.func @transform_2(%arg0: i32) -> (i32, i32) {
    %c0_i32 = arith.constant 0 : i32
    %c0_i32_0 = arith.constant 0 : i32
    %c0_i32_1 = arith.constant 0 : i32
    return %c0_i32, %c0_i32_0 : i32, i32
  }
  func.func @transform_3(%arg0: i32) -> (i32, i32) {
    %c0_i32 = arith.constant 0 : i32
    %c0_i32_0 = arith.constant 0 : i32
    return %arg0, %c0_i32 : i32, i32
  }
}

module attributes {stable_mosaic.version = 11 : i64} {
  func.func @_matmul_act_kernel(%arg0: memref<128x512xbf16, #tpu.memory_space<vmem>>, %arg1: memref<512x64xbf16, #tpu.memory_space<vmem>>, %arg2: memref<1x64xf32, #tpu.memory_space<vmem>>, %arg3: memref<128x64xbf16, #tpu.memory_space<vmem>>) attributes {dimension_semantics = [], scalar_prefetch = 0 : i64, scratch_operands = 0 : i64, tpu.core_type = #tpu.core_type<tc>} {
    %c0 = arith.constant 0 : index
    %c0_0 = arith.constant 0 : index
    %0 = vector.load %arg0[%c0, %c0_0] : memref<128x512xbf16, #tpu.memory_space<vmem>>, vector<128x512xbf16>
    %c0_1 = arith.constant 0 : index
    %c0_2 = arith.constant 0 : index
    %1 = vector.load %arg1[%c0_1, %c0_2] : memref<512x64xbf16, #tpu.memory_space<vmem>>, vector<512x64xbf16>
    %cst = arith.constant dense<0.000000e+00> : vector<128x64xf32>
    %2 = tpu.matmul %0, %1, %cst {dimension_numbers = #tpu.dot_dimension_numbers<[1], [0], [0], [1], [0, 0, 1, 1], [], []>} : vector<128x512xbf16>, vector<512x64xbf16>, vector<128x64xf32> -> vector<128x64xf32>
    %c0_3 = arith.constant 0 : index
    %c0_4 = arith.constant 0 : index
    %3 = vector.load %arg2[%c0_3, %c0_4] : memref<1x64xf32, #tpu.memory_space<vmem>>, vector<1x64xf32>
    %4 = vector.broadcast %3 : vector<1x64xf32> to vector<128x64xf32>
    %5 = arith.addf %2, %4 : vector<128x64xf32>
    %cst_5 = arith.constant 0.000000e+00 : f32
    %6 = vector.broadcast %cst_5 : f32 to vector<128x64xf32>
    %7 = arith.maximumf %5, %6 : vector<128x64xf32>
    %8 = arith.truncf %7 : vector<128x64xf32> to vector<128x64xbf16>
    %c0_6 = arith.constant 0 : index
    %c0_7 = arith.constant 0 : index
    %9 = vector.load %arg3[%c0_6, %c0_7] : memref<128x64xbf16, #tpu.memory_space<vmem>>, vector<128x64xbf16>
    tpu.vector_store %arg3[%c0_6, %c0_7], %8 {strides = array<i32>} : memref<128x64xbf16, #tpu.memory_space<vmem>>, vector<128x64xbf16>,
    return
  }
}

module attributes {stable_mosaic.version = 11 : i64} {
  func.func @_matmul_act_kernel(%arg0: memref<32x1024xbf16, #tpu.memory_space<vmem>>, %arg1: memref<1024x128xbf16, #tpu.memory_space<vmem>>, %arg2: memref<1x128xf32, #tpu.memory_space<vmem>>, %arg3: memref<32x128xbf16, #tpu.memory_space<vmem>>) attributes {dimension_semantics = [], scalar_prefetch = 0 : i64, scratch_operands = 0 : i64, tpu.core_type = #tpu.core_type<tc>} {
    %c0 = arith.constant 0 : index
    %c0_0 = arith.constant 0 : index
    %0 = vector.load %arg0[%c0, %c0_0] : memref<32x1024xbf16, #tpu.memory_space<vmem>>, vector<32x1024xbf16>
    %c0_1 = arith.constant 0 : index
    %c0_2 = arith.constant 0 : index
    %1 = vector.load %arg1[%c0_1, %c0_2] : memref<1024x128xbf16, #tpu.memory_space<vmem>>, vector<1024x128xbf16>
    %cst = arith.constant dense<0.000000e+00> : vector<32x128xf32>
    %2 = tpu.matmul %0, %1, %cst {dimension_numbers = #tpu.dot_dimension_numbers<[1], [0], [0], [1], [0, 0, 1, 1], [], []>} : vector<32x1024xbf16>, vector<1024x128xbf16>, vector<32x128xf32> -> vector<32x128xf32>
    %c0_3 = arith.constant 0 : index
    %c0_4 = arith.constant 0 : index
    %3 = vector.load %arg2[%c0_3, %c0_4] : memref<1x128xf32, #tpu.memory_space<vmem>>, vector<1x128xf32>
    %4 = vector.broadcast %3 : vector<1x128xf32> to vector<32x128xf32>
    %5 = arith.addf %2, %4 : vector<32x128xf32>
    %cst_5 = arith.constant 0.000000e+00 : f32
    %6 = vector.broadcast %cst_5 : f32 to vector<32x128xf32>
    %7 = arith.maximumf %5, %6 : vector<32x128xf32>
    %8 = arith.truncf %7 : vector<32x128xf32> to vector<32x128xbf16>
    %c0_6 = arith.constant 0 : index
    %c0_7 = arith.constant 0 : index
    %9 = vector.load %arg3[%c0_6, %c0_7] : memref<32x128xbf16, #tpu.memory_space<vmem>>, vector<32x128xbf16>
    tpu.vector_store %arg3[%c0_6, %c0_7], %8 {strides = array<i32>} : memref<32x128xbf16, #tpu.memory_space<vmem>>, vector<32x128xbf16>,
    return
  }
}

module attributes {stable_mosaic.version = 11 : i64} {
  func.func @_fused_latent_kernel(%arg0: memref<2x2048xbf16, #tpu.memory_space<vmem>>, %arg1: memref<2048x256xbf16, #tpu.memory_space<vmem>>, %arg2: memref<1x256xf32, #tpu.memory_space<vmem>>, %arg3: memref<2x128xf32, #tpu.memory_space<vmem>>, %arg4: memref<128x2048xbf16, #tpu.memory_space<vmem>>, %arg5: memref<1x2048xf32, #tpu.memory_space<vmem>>, %arg6: memref<2x128xf32, #tpu.memory_space<vmem>>, %arg7: memref<2x128xf32, #tpu.memory_space<vmem>>, %arg8: memref<2x2048xf32, #tpu.memory_space<vmem>>) attributes {dimension_semantics = [], scalar_prefetch = 0 : i64, scratch_operands = 0 : i64, tpu.core_type = #tpu.core_type<tc>} {
    %c0 = arith.constant 0 : index
    %c0_0 = arith.constant 0 : index
    %0 = vector.load %arg0[%c0, %c0_0] : memref<2x2048xbf16, #tpu.memory_space<vmem>>, vector<2x2048xbf16>
    %c0_1 = arith.constant 0 : index
    %c0_2 = arith.constant 0 : index
    %1 = vector.load %arg1[%c0_1, %c0_2] : memref<2048x256xbf16, #tpu.memory_space<vmem>>, vector<2048x256xbf16>
    %cst = arith.constant dense<0.000000e+00> : vector<2x256xf32>
    %2 = tpu.matmul %0, %1, %cst {dimension_numbers = #tpu.dot_dimension_numbers<[1], [0], [0], [1], [0, 0, 1, 1], [], []>} : vector<2x2048xbf16>, vector<2048x256xbf16>, vector<2x256xf32> -> vector<2x256xf32>
    %c0_3 = arith.constant 0 : index
    %c0_4 = arith.constant 0 : index
    %3 = vector.load %arg2[%c0_3, %c0_4] : memref<1x256xf32, #tpu.memory_space<vmem>>, vector<1x256xf32>
    %4 = vector.broadcast %3 : vector<1x256xf32> to vector<2x256xf32>
    %5 = arith.addf %2, %4 : vector<2x256xf32>
    %6 = vector.extract_strided_slice %5 {offsets = [0, 0], sizes = [2, 128], strides = [1, 1]} : vector<2x256xf32> to vector<2x128xf32>
    %7 = vector.extract_strided_slice %5 {offsets = [0, 128], sizes = [2, 128], strides = [1, 1]} : vector<2x256xf32> to vector<2x128xf32>
    %c0_5 = arith.constant 0 : index
    %c0_6 = arith.constant 0 : index
    %8 = vector.load %arg6[%c0_5, %c0_6] : memref<2x128xf32, #tpu.memory_space<vmem>>, vector<2x128xf32>
    tpu.vector_store %arg6[%c0_5, %c0_6], %6 {strides = array<i32>} : memref<2x128xf32, #tpu.memory_space<vmem>>, vector<2x128xf32>,
    %c0_7 = arith.constant 0 : index
    %c0_8 = arith.constant 0 : index
    %9 = vector.load %arg7[%c0_7, %c0_8] : memref<2x128xf32, #tpu.memory_space<vmem>>, vector<2x128xf32>
    tpu.vector_store %arg7[%c0_7, %c0_8], %7 {strides = array<i32>} : memref<2x128xf32, #tpu.memory_space<vmem>>, vector<2x128xf32>,
    %c0_9 = arith.constant 0 : index
    %c0_10 = arith.constant 0 : index
    %10 = vector.load %arg3[%c0_9, %c0_10] : memref<2x128xf32, #tpu.memory_space<vmem>>, vector<2x128xf32>
    %cst_11 = arith.constant 5.000000e-01 : f32
    %11 = vector.broadcast %cst_11 : f32 to vector<2x128xf32>
    %12 = arith.mulf %11, %7 : vector<2x128xf32>
    %13 = math.exp %12 : vector<2x128xf32>
    %14 = arith.mulf %10, %13 : vector<2x128xf32>
    %15 = arith.addf %6, %14 : vector<2x128xf32>
    %16 = arith.truncf %15 : vector<2x128xf32> to vector<2x128xbf16>
    %c0_12 = arith.constant 0 : index
    %c0_13 = arith.constant 0 : index
    %17 = vector.load %arg4[%c0_12, %c0_13] : memref<128x2048xbf16, #tpu.memory_space<vmem>>, vector<128x2048xbf16>
    %cst_14 = arith.constant dense<0.000000e+00> : vector<2x2048xf32>
    %18 = tpu.matmul %16, %17, %cst_14 {dimension_numbers = #tpu.dot_dimension_numbers<[1], [0], [0], [1], [0, 0, 1, 1], [], []>} : vector<2x128xbf16>, vector<128x2048xbf16>, vector<2x2048xf32> -> vector<2x2048xf32>
    %c0_15 = arith.constant 0 : index
    %c0_16 = arith.constant 0 : index
    %19 = vector.load %arg5[%c0_15, %c0_16] : memref<1x2048xf32, #tpu.memory_space<vmem>>, vector<1x2048xf32>
    %20 = vector.broadcast %19 : vector<1x2048xf32> to vector<2x2048xf32>
    %21 = arith.addf %18, %20 : vector<2x2048xf32>
    %c0_17 = arith.constant 0 : index
    %c0_18 = arith.constant 0 : index
    %22 = vector.load %arg8[%c0_17, %c0_18] : memref<2x2048xf32, #tpu.memory_space<vmem>>, vector<2x2048xf32>
    tpu.vector_store %arg8[%c0_17, %c0_18], %21 {strides = array<i32>} : memref<2x2048xf32, #tpu.memory_space<vmem>>, vector<2x2048xf32>,
    return
  }
}

module attributes {stable_mosaic.version = 11 : i64} {
  func.func @_matmul_act_kernel(%arg0: memref<50x512xbf16, #tpu.memory_space<vmem>>, %arg1: memref<512x256xbf16, #tpu.memory_space<vmem>>, %arg2: memref<1x256xf32, #tpu.memory_space<vmem>>, %arg3: memref<50x256xbf16, #tpu.memory_space<vmem>>) attributes {dimension_semantics = [], scalar_prefetch = 0 : i64, scratch_operands = 0 : i64, tpu.core_type = #tpu.core_type<tc>} {
    %c0 = arith.constant 0 : index
    %c0_0 = arith.constant 0 : index
    %0 = vector.load %arg0[%c0, %c0_0] : memref<50x512xbf16, #tpu.memory_space<vmem>>, vector<50x512xbf16>
    %c0_1 = arith.constant 0 : index
    %c0_2 = arith.constant 0 : index
    %1 = vector.load %arg1[%c0_1, %c0_2] : memref<512x256xbf16, #tpu.memory_space<vmem>>, vector<512x256xbf16>
    %cst = arith.constant dense<0.000000e+00> : vector<50x256xf32>
    %2 = tpu.matmul %0, %1, %cst {dimension_numbers = #tpu.dot_dimension_numbers<[1], [0], [0], [1], [0, 0, 1, 1], [], []>} : vector<50x512xbf16>, vector<512x256xbf16>, vector<50x256xf32> -> vector<50x256xf32>
    %c0_3 = arith.constant 0 : index
    %c0_4 = arith.constant 0 : index
    %3 = vector.load %arg2[%c0_3, %c0_4] : memref<1x256xf32, #tpu.memory_space<vmem>>, vector<1x256xf32>
    %4 = vector.broadcast %3 : vector<1x256xf32> to vector<50x256xf32>
    %5 = arith.addf %2, %4 : vector<50x256xf32>
    %cst_5 = arith.constant 0.000000e+00 : f32
    %6 = vector.broadcast %cst_5 : f32 to vector<50x256xf32>
    %7 = arith.maximumf %5, %6 : vector<50x256xf32>
    %8 = arith.truncf %7 : vector<50x256xf32> to vector<50x256xbf16>
    %c0_6 = arith.constant 0 : index
    %c0_7 = arith.constant 0 : index
    %9 = vector.load %arg3[%c0_6, %c0_7] : memref<50x256xbf16, #tpu.memory_space<vmem>>, vector<50x256xbf16>
    tpu.vector_store %arg3[%c0_6, %c0_7], %8 {strides = array<i32>} : memref<50x256xbf16, #tpu.memory_space<vmem>>, vector<50x256xbf16>,
    return
  }
}

module attributes {stable_mosaic.version = 11 : i64} {
  func.func @_matmul_act_kernel(%arg0: memref<162x256xbf16, #tpu.memory_space<vmem>>, %arg1: memref<256x128xbf16, #tpu.memory_space<vmem>>, %arg2: memref<1x128xf32, #tpu.memory_space<vmem>>, %arg3: memref<162x128xbf16, #tpu.memory_space<vmem>>) attributes {dimension_semantics = [], scalar_prefetch = 0 : i64, scratch_operands = 0 : i64, tpu.core_type = #tpu.core_type<tc>} {
    %c0 = arith.constant 0 : index
    %c0_0 = arith.constant 0 : index
    %0 = vector.load %arg0[%c0, %c0_0] : memref<162x256xbf16, #tpu.memory_space<vmem>>, vector<162x256xbf16>
    %c0_1 = arith.constant 0 : index
    %c0_2 = arith.constant 0 : index
    %1 = vector.load %arg1[%c0_1, %c0_2] : memref<256x128xbf16, #tpu.memory_space<vmem>>, vector<256x128xbf16>
    %cst = arith.constant dense<0.000000e+00> : vector<162x128xf32>
    %2 = tpu.matmul %0, %1, %cst {dimension_numbers = #tpu.dot_dimension_numbers<[1], [0], [0], [1], [0, 0, 1, 1], [], []>} : vector<162x256xbf16>, vector<256x128xbf16>, vector<162x128xf32> -> vector<162x128xf32>
    %c0_3 = arith.constant 0 : index
    %c0_4 = arith.constant 0 : index
    %3 = vector.load %arg2[%c0_3, %c0_4] : memref<1x128xf32, #tpu.memory_space<vmem>>, vector<1x128xf32>
    %4 = vector.broadcast %3 : vector<1x128xf32> to vector<162x128xf32>
    %5 = arith.addf %2, %4 : vector<162x128xf32>
    %cst_5 = arith.constant 0.000000e+00 : f32
    %6 = vector.broadcast %cst_5 : f32 to vector<162x128xf32>
    %7 = arith.maximumf %5, %6 : vector<162x128xf32>
    %8 = arith.truncf %7 : vector<162x128xf32> to vector<162x128xbf16>
    %c0_6 = arith.constant 0 : index
    %c0_7 = arith.constant 0 : index
    %9 = vector.load %arg3[%c0_6, %c0_7] : memref<162x128xbf16, #tpu.memory_space<vmem>>, vector<162x128xbf16>
    tpu.vector_store %arg3[%c0_6, %c0_7], %8 {strides = array<i32>} : memref<162x128xbf16, #tpu.memory_space<vmem>>, vector<162x128xbf16>,
    return
  }
}

module attributes {stable_mosaic.version = 11 : i64} {
  func.func @_matmul_act_kernel(%arg0: memref<578x128xbf16, #tpu.memory_space<vmem>>, %arg1: memref<128x12xbf16, #tpu.memory_space<vmem>>, %arg2: memref<1x12xf32, #tpu.memory_space<vmem>>, %arg3: memref<578x12xf32, #tpu.memory_space<vmem>>) attributes {dimension_semantics = [], scalar_prefetch = 0 : i64, scratch_operands = 0 : i64, tpu.core_type = #tpu.core_type<tc>} {
    %c0 = arith.constant 0 : index
    %c0_0 = arith.constant 0 : index
    %0 = vector.load %arg0[%c0, %c0_0] : memref<578x128xbf16, #tpu.memory_space<vmem>>, vector<578x128xbf16>
    %c0_1 = arith.constant 0 : index
    %c0_2 = arith.constant 0 : index
    %1 = vector.load %arg1[%c0_1, %c0_2] : memref<128x12xbf16, #tpu.memory_space<vmem>>, vector<128x12xbf16>
    %cst = arith.constant dense<0.000000e+00> : vector<578x12xf32>
    %2 = tpu.matmul %0, %1, %cst {dimension_numbers = #tpu.dot_dimension_numbers<[1], [0], [0], [1], [0, 0, 1, 1], [], []>} : vector<578x128xbf16>, vector<128x12xbf16>, vector<578x12xf32> -> vector<578x12xf32>
    %c0_3 = arith.constant 0 : index
    %c0_4 = arith.constant 0 : index
    %3 = vector.load %arg2[%c0_3, %c0_4] : memref<1x12xf32, #tpu.memory_space<vmem>>, vector<1x12xf32>
    %4 = vector.broadcast %3 : vector<1x12xf32> to vector<578x12xf32>
    %5 = arith.addf %2, %4 : vector<578x12xf32>
    %6 = arith.negf %5 : vector<578x12xf32>
    %7 = math.exp %6 : vector<578x12xf32>
    %cst_5 = arith.constant 1.000000e+00 : f32
    %8 = vector.broadcast %cst_5 : f32 to vector<578x12xf32>
    %9 = arith.addf %8, %7 : vector<578x12xf32>
    %10 = arith.divf %8, %9 : vector<578x12xf32>
    %c0_6 = arith.constant 0 : index
    %c0_7 = arith.constant 0 : index
    %11 = vector.load %arg3[%c0_6, %c0_7] : memref<578x12xf32, #tpu.memory_space<vmem>>, vector<578x12xf32>
    tpu.vector_store %arg3[%c0_6, %c0_7], %10 {strides = array<i32>} : memref<578x12xf32, #tpu.memory_space<vmem>>, vector<578x12xf32>,
    return
  }
}

</mosaic_0001>

<bundles_post_ra>
// kernel: vae_forward.7
= control target key start
LH: loop header
LB: loop body
LE: loop exit
PB: predicated region body
PF: predicated region fallthrough
CT: control target
= control target key end

     0   :  { %s1006_s12 = smov 0   ;;  %s1176_s0 = inlined_call_operand.vmem [shape: bf16[512,48], index: 0, kind: input, shape index: {}]   ;;  %s1177_s1 = inlined_call_operand.vmem [shape: bf16[48,32], index: 1, kind: input, shape index: {}]   ;;  %s1178_s2 = inlined_call_operand.vmem [shape: f32[1,32], index: 2, kind: input, shape index: {}]   ;;  %s1179_s3 = inlined_call_operand.vmem [shape: bf16[512,32], index: 3, kind: output, shape index: {}]  }
   0x1 LB: > { %s777_s13 = sadd.s32 4294967295, %s984_s12   ;;  %p781_p0 = scmp.ge.s32.totalorder %s984_s12, 1  ;;  %s984_s12 = sphi %s1006_s12, %s13_s12  }
   0x2   : > { %p138_p1 = scmp.lt.s32.totalorder %s984_s12, 3 }
   0x4   : > { %p139_p2 = pnand %p781_p0, %p138_p1 }
   0x5   : > { %s782_s16 = sshll.u32 (!%p139_p2), %s777_s13, 5 }
   0x6   : > { %142 = sbr.rel (%p139_p2) target bundleno = 255 (0xff), region = 32  ;;  %p163_p3 = scmp.lt.s32.totalorder (!%p139_p2), %s782_s16, 63 }
   0xb   : > { %v959_v0 = vld [vmem:[%s1177_s1 + $0x10] sm:$0xff]   ;;  %v960_v1 = vld [vmem:[%s1177_s1 + $0x8] sm:$0xff]   ;;  %s1181_s16 = smov (!%p163_p3, %s782_s16), 63  ;;  %v961_v2 = vld [vmem:[%s1177_s1] sm:$0xff]   ;;  %vm318_vm0 = vcmask 392192   ;;  %vm688_vm1 = vcmask 257024  }
   0xc   : > { %907 = vmatprep.subr.bf16.mxu0 %v959_v0  ;;  %945 = vmatprep.subr.bf16.mxu1 %v959_v0  ;;  %s783_s21 = sshll.u32 %s1181_s16, 2  ;;  %v1068_v19 = vld [vmem:[%s1178_s2] ss:$0 sm:$0xff] }
   0xd   : > { %908 = vmatpush3.bf16.msra.mxu0 %v959_v0  ;;  %948 = vmatpush3.bf16.msra.mxu1 %v959_v0  ;;  %s1031_s24 = scalar_lea.vmem %s1176_s0, %s783_s21  ;;  %s1079_s29 = scalar_lea.vmem %s1179_s3, %s783_s21 }
   0xe   : > { %909 = vmatprep.subr.bf16.mxu0 %v960_v1  ;;  %946 = vmatprep.subr.bf16.mxu1 %v960_v1  ;;  %v962_v3 = vld [vmem:[%s1031_s24] sm:$0xff]   ;;  %v964_v5 = vld [vmem:[%s1031_s24 + $0x8] sm:$0xff]   ;;  %v966_v7 = vld [vmem:[%s1031_s24 + $0x10] sm:$0xff]  }
   0xf   : > { %v963_v4 = vld [vmem:[%s1031_s24 + $0x40] sm:$0xff]   ;;  %913 = vmatprep.mubr.msk.bf16.mxu0 %vm318_vm0, %v962_v3  ;;  %v965_v6 = vld [vmem:[%s1031_s24 + $0x48] sm:$0xff]   ;;  %v967_v8 = vld [vmem:[%s1031_s24 + $0x50] sm:$0xff]  }
  0x10   : > { %929 = vmatprep.mubr.msk.bf16.mxu1 %vm318_vm0, %v963_v4  ;;  %v968_v9 = vld [vmem:[%s1031_s24 + $0x18] sm:$0xff]   ;;  %v970_v11 = vld [vmem:[%s1031_s24 + $0x20] sm:$0xff]   ;;  %v972_v13 = vld [vmem:[%s1031_s24 + $0x28] sm:$0xff]  }
  0x11   : > { %910 = vmatpush3.bf16.msra.mxu0 %v960_v1  ;;  %949 = vmatpush3.bf16.msra.mxu1 %v960_v1  ;;  %v969_v10 = vld [vmem:[%s1031_s24 + $0x58] sm:$0xff]   ;;  %v971_v12 = vld [vmem:[%s1031_s24 + $0x60] sm:$0xff]   ;;  %v973_v14 = vld [vmem:[%s1031_s24 + $0x68] sm:$0xff]  }
  0x12   : > { %911 = vmatprep.subr.bf16.mxu0 %v961_v2  ;;  %947 = vmatprep.subr.bf16.mxu1 %v961_v2  ;;  %v974_v15 = vld [vmem:[%s1031_s24 + $0x30] sm:$0xff]   ;;  %v976_v17 = vld [vmem:[%s1031_s24 + $0x38] sm:$0xff]  }
  0x13   : > { %v975_v16 = vld [vmem:[%s1031_s24 + $0x70] sm:$0xff]   ;;  %v977_v18 = vld [vmem:[%s1031_s24 + $0x78] sm:$0xff]  }
  0x15   : > { %912 = vmatpush3.bf16.msra.mxu0 %v961_v2  ;;  %950 = vmatpush3.bf16.msra.mxu1 %v961_v2 }
  0x18   : > { %914 = vmatmul.mubr.msk.bf16.vlgmr.msra.gmra.mxu0 %vm318_vm0, %v964_v5  ;;  %930 = vmatmul.mubr.msk.bf16.vlgmr.msra.gmra.mxu1 %vm318_vm0, %v965_v6 }
  0x19   : > { %917 = vmatprep.mubr.msk.bf16.mxu0 %vm318_vm0, %v966_v7  ;;  %933 = vmatprep.mubr.msk.bf16.mxu1 %vm318_vm0, %v967_v8 }
  0x20   : > { %918 = vmatmul.mubr.msk.bf16.gmra.mxu0 %vm318_vm0, %v968_v9  ;;  %934 = vmatmul.mubr.msk.bf16.gmra.mxu1 %vm318_vm0, %v969_v10 }
  0x21   : > { %921 = vmatprep.mubr.msk.bf16.mxu0 %vm318_vm0, %v970_v11  ;;  %937 = vmatprep.mubr.msk.bf16.mxu1 %vm318_vm0, %v971_v12 }
  0x28   : > { %922 = vmatmul.mubr.msk.bf16.gmra.mxu0 %vm318_vm0, %v972_v13  ;;  %938 = vmatmul.mubr.msk.bf16.gmra.mxu1 %vm318_vm0, %v973_v14 }
  0x29   : > { %925 = vmatprep.mubr.msk.bf16.mxu0 %vm318_vm0, %v974_v15  ;;  %941 = vmatprep.mubr.msk.bf16.mxu1 %vm318_vm0, %v975_v16 }
  0x30   : > { %926 = vmatmul.mubr.msk.bf16.gmra.mxu0 %vm318_vm0, %v976_v17  ;;  %942 = vmatmul.mubr.msk.bf16.gmra.mxu1 %vm318_vm0, %v977_v18 }
  0xd8   : > { %v915_v20 = vpop.f32.mrf.mxu0  ;;  %v931_v21 = vpop.f32.mrf.mxu1 }
  0xd9   : > { %v410_v22 = vadd.f32 %v915_v20, %v1068_v19  ;;  %v474_v23 = vadd.f32 %v931_v21, %v1068_v19 }
  0xda   : > { %v401_v24 = vpop.f32.mrf.mxu0  ;;  %v465_v25 = vpop.f32.mrf.mxu1 }
  0xdb   : > { %v530_v26 = vmax.f32 %v410_v22, 0.0  ;;  %v546_v27 = vmax.f32 %v474_v23, 0.0  ;;  %v402_v28 = vadd.f32 %v1068_v19, %v401_v24  ;;  %v466_v29 = vadd.f32 %v1068_v19, %v465_v25 }
  0xdc   : > { %v916_v30 = vpop.f32.mrf.mxu0  ;;  %v932_v31 = vpop.f32.mrf.mxu1 }
  0xdd   : > { %v858_v32 = vpack.c.bf16 %v530_v26, %v530_v26  ;;  %v874_v33 = vpack.c.bf16 %v546_v27, %v546_v27  ;;  %v528_v34 = vmax.f32 %v402_v28, 0.0  ;;  %v544_v35 = vmax.f32 %v466_v29, 0.0 }
  0xde   : > { %v413_v36 = vadd.f32 %v916_v30, %v1068_v19  ;;  %v477_v37 = vadd.f32 %v932_v31, %v1068_v19  ;;  %v404_v38 = vpop.f32.mrf.mxu0  ;;  %v468_v39 = vpop.f32.mrf.mxu1 }
  0xdf   : > { %691 = vst.msk [vmem:[%s1079_s29 + $0x8] sm:$0xf] %vm688_vm1, %v858_v32  ;;  %707 = vst.msk [vmem:[%s1079_s29 + $0x48] sm:$0xf] %vm688_vm1, %v874_v33  ;;  %v856_v40 = vpack.c.bf16 %v528_v34, %v528_v34  ;;  %v872_v41 = vpack.c.bf16 %v544_v35, %v544_v35  ;;  %v405_v42 = vadd.f32 %v1068_v19, %v404_v38 }
  0xe0   : > { %v469_v43 = vadd.f32 %v1068_v19, %v468_v39  ;;  %v531_v44 = vmax.f32 %v413_v36, 0.0  ;;  %v547_v45 = vmax.f32 %v477_v37, 0.0  ;;  %v919_v46 = vpop.f32.mrf.mxu0  ;;  %v935_v47 = vpop.f32.mrf.mxu1 }
  0xe1   : > { %689 = vst.msk [vmem:[%s1079_s29] sm:$0xf] %vm688_vm1, %v856_v40  ;;  %705 = vst.msk [vmem:[%s1079_s29 + $0x40] sm:$0xf] %vm688_vm1, %v872_v41  ;;  %v529_v48 = vmax.f32 %v405_v42, 0.0  ;;  %v426_v50 = vadd.f32 %v919_v46, %v1068_v19  ;;  %v490_v51 = vadd.f32 %v935_v47, %v1068_v19 }
  0xe2   : > { %v545_v49 = vmax.f32 %v469_v43, 0.0  ;;  %v859_v52 = vpack.c.bf16 %v531_v44, %v531_v44  ;;  %v875_v53 = vpack.c.bf16 %v547_v45, %v547_v45  ;;  %v417_v54 = vpop.f32.mrf.mxu0  ;;  %v481_v55 = vpop.f32.mrf.mxu1 }
  0xe3   : > { %v857_v56 = vpack.c.bf16 %v529_v48, %v529_v48  ;;  %v534_v58 = vmax.f32 %v426_v50, 0.0  ;;  %v550_v59 = vmax.f32 %v490_v51, 0.0  ;;  %v418_v60 = vadd.f32 %v1068_v19, %v417_v54 }
  0xe4   : > { %v873_v57 = vpack.c.bf16 %v545_v49, %v545_v49  ;;  %692 = vst.msk [vmem:[%s1079_s29 + $0xc] sm:$0xf] %vm688_vm1, %v859_v52  ;;  %708 = vst.msk [vmem:[%s1079_s29 + $0x4c] sm:$0xf] %vm688_vm1, %v875_v53  ;;  %v482_v61 = vadd.f32 %v1068_v19, %v481_v55  ;;  %v920_v62 = vpop.f32.mrf.mxu0  ;;  %v936_v63 = vpop.f32.mrf.mxu1 }
  0xe5   : > { %690 = vst.msk [vmem:[%s1079_s29 + $0x4] sm:$0xf] %vm688_vm1, %v857_v56  ;;  %v862_v0 = vpack.c.bf16 %v534_v58, %v534_v58  ;;  %v878_v1 = vpack.c.bf16 %v550_v59, %v550_v59  ;;  %v429_v2 = vadd.f32 %v920_v62, %v1068_v19  ;;  %v493_v3 = vadd.f32 %v936_v63, %v1068_v19 }
  0xe6   : > { %706 = vst.msk [vmem:[%s1079_s29 + $0x44] sm:$0xf] %vm688_vm1, %v873_v57  ;;  %v532_v4 = vmax.f32 %v418_v60, 0.0  ;;  %v548_v5 = vmax.f32 %v482_v61, 0.0  ;;  %v420_v6 = vpop.f32.mrf.mxu0  ;;  %v484_v7 = vpop.f32.mrf.mxu1 }
  0xe7   : > { %695 = vst.msk [vmem:[%s1079_s29 + $0x18] sm:$0xf] %vm688_vm1, %v862_v0  ;;  %711 = vst.msk [vmem:[%s1079_s29 + $0x58] sm:$0xf] %vm688_vm1, %v878_v1  ;;  %v535_v8 = vmax.f32 %v429_v2, 0.0  ;;  %v551_v9 = vmax.f32 %v493_v3, 0.0  ;;  %v421_v10 = vadd.f32 %v1068_v19, %v420_v6  ;;  %v485_v11 = vadd.f32 %v1068_v19, %v484_v7 }
  0xe8   : > { %v860_v12 = vpack.c.bf16 %v532_v4, %v532_v4  ;;  %v876_v13 = vpack.c.bf16 %v548_v5, %v548_v5  ;;  %v923_v14 = vpop.f32.mrf.mxu0  ;;  %v939_v15 = vpop.f32.mrf.mxu1 }
  0xe9   : > { %v863_v16 = vpack.c.bf16 %v535_v8, %v535_v8  ;;  %v879_v17 = vpack.c.bf16 %v551_v9, %v551_v9  ;;  %v533_v18 = vmax.f32 %v421_v10, 0.0  ;;  %v549_v20 = vmax.f32 %v485_v11, 0.0 }
  0xea   : > { %693 = vst.msk [vmem:[%s1079_s29 + $0x10] sm:$0xf] %vm688_vm1, %v860_v12  ;;  %709 = vst.msk [vmem:[%s1079_s29 + $0x50] sm:$0xf] %vm688_vm1, %v876_v13  ;;  %v442_v21 = vadd.f32 %v923_v14, %v1068_v19  ;;  %v506_v22 = vadd.f32 %v939_v15, %v1068_v19  ;;  %v433_v23 = vpop.f32.mrf.mxu0  ;;  %v497_v24 = vpop.f32.mrf.mxu1 }
  0xeb   : > { %696 = vst.msk [vmem:[%s1079_s29 + $0x1c] sm:$0xf] %vm688_vm1, %v863_v16  ;;  %712 = vst.msk [vmem:[%s1079_s29 + $0x5c] sm:$0xf] %vm688_vm1, %v879_v17  ;;  %v861_v25 = vpack.c.bf16 %v533_v18, %v533_v18  ;;  %v877_v26 = vpack.c.bf16 %v549_v20, %v549_v20  ;;  %v434_v27 = vadd.f32 %v1068_v19, %v433_v23 }
  0xec   : > { %v498_v28 = vadd.f32 %v1068_v19, %v497_v24  ;;  %v538_v29 = vmax.f32 %v442_v21, 0.0  ;;  %v554_v30 = vmax.f32 %v506_v22, 0.0  ;;  %v924_v31 = vpop.f32.mrf.mxu0  ;;  %v940_v32 = vpop.f32.mrf.mxu1 }
  0xed   : > { %694 = vst.msk [vmem:[%s1079_s29 + $0x14] sm:$0xf] %vm688_vm1, %v861_v25  ;;  %710 = vst.msk [vmem:[%s1079_s29 + $0x54] sm:$0xf] %vm688_vm1, %v877_v26  ;;  %v536_v33 = vmax.f32 %v434_v27, 0.0  ;;  %v445_v35 = vadd.f32 %v924_v31, %v1068_v19  ;;  %v509_v36 = vadd.f32 %v940_v32, %v1068_v19 }
  0xee   : > { %v552_v34 = vmax.f32 %v498_v28, 0.0  ;;  %v866_v37 = vpack.c.bf16 %v538_v29, %v538_v29  ;;  %v882_v38 = vpack.c.bf16 %v554_v30, %v554_v30  ;;  %v436_v39 = vpop.f32.mrf.mxu0  ;;  %v500_v40 = vpop.f32.mrf.mxu1 }
  0xef   : > { %v864_v41 = vpack.c.bf16 %v536_v33, %v536_v33  ;;  %v539_v43 = vmax.f32 %v445_v35, 0.0  ;;  %v555_v44 = vmax.f32 %v509_v36, 0.0  ;;  %v437_v45 = vadd.f32 %v1068_v19, %v436_v39 }
  0xf0   : > { %v880_v42 = vpack.c.bf16 %v552_v34, %v552_v34  ;;  %699 = vst.msk [vmem:[%s1079_s29 + $0x28] sm:$0xf] %vm688_vm1, %v866_v37  ;;  %715 = vst.msk [vmem:[%s1079_s29 + $0x68] sm:$0xf] %vm688_vm1, %v882_v38  ;;  %v501_v46 = vadd.f32 %v1068_v19, %v500_v40  ;;  %v927_v47 = vpop.f32.mrf.mxu0  ;;  %v943_v48 = vpop.f32.mrf.mxu1 }
  0xf1   : > { %697 = vst.msk [vmem:[%s1079_s29 + $0x20] sm:$0xf] %vm688_vm1, %v864_v41  ;;  %v867_v49 = vpack.c.bf16 %v539_v43, %v539_v43  ;;  %v883_v50 = vpack.c.bf16 %v555_v44, %v555_v44  ;;  %v458_v51 = vadd.f32 %v927_v47, %v1068_v19  ;;  %v522_v52 = vadd.f32 %v943_v48, %v1068_v19 }
  0xf2   : > { %713 = vst.msk [vmem:[%s1079_s29 + $0x60] sm:$0xf] %vm688_vm1, %v880_v42  ;;  %v537_v53 = vmax.f32 %v437_v45, 0.0  ;;  %v553_v54 = vmax.f32 %v501_v46, 0.0  ;;  %v449_v55 = vpop.f32.mrf.mxu0  ;;  %v513_v56 = vpop.f32.mrf.mxu1 }
  0xf3   : > { %700 = vst.msk [vmem:[%s1079_s29 + $0x2c] sm:$0xf] %vm688_vm1, %v867_v49  ;;  %716 = vst.msk [vmem:[%s1079_s29 + $0x6c] sm:$0xf] %vm688_vm1, %v883_v50  ;;  %v542_v57 = vmax.f32 %v458_v51, 0.0  ;;  %v558_v58 = vmax.f32 %v522_v52, 0.0  ;;  %v450_v59 = vadd.f32 %v1068_v19, %v449_v55  ;;  %v514_v60 = vadd.f32 %v1068_v19, %v513_v56 }
  0xf4   : > { %v865_v61 = vpack.c.bf16 %v537_v53, %v537_v53  ;;  %v881_v62 = vpack.c.bf16 %v553_v54, %v553_v54  ;;  %v928_v63 = vpop.f32.mrf.mxu0  ;;  %v944_v0 = vpop.f32.mrf.mxu1 }
  0xf5   : > { %v870_v1 = vpack.c.bf16 %v542_v57, %v542_v57  ;;  %v886_v2 = vpack.c.bf16 %v558_v58, %v558_v58  ;;  %v540_v3 = vmax.f32 %v450_v59, 0.0  ;;  %v556_v4 = vmax.f32 %v514_v60, 0.0 }
  0xf6   : > { %698 = vst.msk [vmem:[%s1079_s29 + $0x24] sm:$0xf] %vm688_vm1, %v865_v61  ;;  %714 = vst.msk [vmem:[%s1079_s29 + $0x64] sm:$0xf] %vm688_vm1, %v881_v62  ;;  %v461_v5 = vadd.f32 %v928_v63, %v1068_v19  ;;  %v525_v6 = vadd.f32 %v944_v0, %v1068_v19  ;;  %v452_v7 = vpop.f32.mrf.mxu0  ;;  %v516_v8 = vpop.f32.mrf.mxu1 }
  0xf7   : > { %703 = vst.msk [vmem:[%s1079_s29 + $0x38] sm:$0xf] %vm688_vm1, %v870_v1  ;;  %719 = vst.msk [vmem:[%s1079_s29 + $0x78] sm:$0xf] %vm688_vm1, %v886_v2  ;;  %v868_v9 = vpack.c.bf16 %v540_v3, %v540_v3  ;;  %v884_v10 = vpack.c.bf16 %v556_v4, %v556_v4  ;;  %v453_v11 = vadd.f32 %v1068_v19, %v452_v7 }
  0xf8   : > { %v517_v12 = vadd.f32 %v1068_v19, %v516_v8  ;;  %v543_v13 = vmax.f32 %v461_v5, 0.0  ;;  %v559_v14 = vmax.f32 %v525_v6, 0.0 }
  0xf9   : > { %701 = vst.msk [vmem:[%s1079_s29 + $0x30] sm:$0xf] %vm688_vm1, %v868_v9  ;;  %717 = vst.msk [vmem:[%s1079_s29 + $0x70] sm:$0xf] %vm688_vm1, %v884_v10  ;;  %v541_v15 = vmax.f32 %v453_v11, 0.0 }
  0xfa   : > { %v557_v16 = vmax.f32 %v517_v12, 0.0  ;;  %v871_v17 = vpack.c.bf16 %v543_v13, %v543_v13  ;;  %v887_v18 = vpack.c.bf16 %v559_v14, %v559_v14 }
  0xfb   : > { %v869_v20 = vpack.c.bf16 %v541_v15, %v541_v15 }
  0xfc   : > { %v885_v21 = vpack.c.bf16 %v557_v16, %v557_v16  ;;  %704 = vst.msk [vmem:[%s1079_s29 + $0x3c] sm:$0xf] %vm688_vm1, %v871_v17  ;;  %720 = vst.msk [vmem:[%s1079_s29 + $0x7c] sm:$0xf] %vm688_vm1, %v887_v18 }
  0xfd   : > { %702 = vst.msk [vmem:[%s1079_s29 + $0x34] sm:$0xf] %vm688_vm1, %v869_v20 }
  0xfe   : > { %718 = vst.msk [vmem:[%s1079_s29 + $0x74] sm:$0xf] %vm688_vm1, %v885_v21 }
  0xff PF: > { %s13_s12 = sadd.s32 1, %s984_s12  }
 0x100   : > { %p10_p4 = scmp.ge.s32.totalorder %s13_s12, 4  }
 0x102   :  { %12 = sbr.rel (!%p10_p4) target bundleno = 1 (0x1), region = 62 }

// kernel: vae_forward.8
= control target key start
LH: loop header
LB: loop body
LE: loop exit
PB: predicated region body
PF: predicated region fallthrough
CT: control target
= control target key end

     0   :  { %vm744_vm0 = vcmask 519168   ;;  %s1367_s1 = inlined_call_operand.vmem [shape: bf16[512,64], index: 1, kind: input, shape index: {}]   ;;  %s1368_s0 = inlined_call_operand.vmem [shape: bf16[128,512], index: 0, kind: input, shape index: {}]   ;;  %s1369_s2 = inlined_call_operand.vmem [shape: f32[1,64], index: 2, kind: input, shape index: {}]   ;;  %s1370_s3 = inlined_call_operand.vmem [shape: bf16[128,64], index: 3, kind: output, shape index: {}]  }
   0x1   :  { %v990_v0 = vld [vmem:[%s1367_s1 + $0x78] sm:$0xff]   ;;  %v994_v4 = vld [vmem:[%s1367_s1 + $0x70] sm:$0xff]   ;;  %v998_v8 = vld [vmem:[%s1367_s1 + $0x68] sm:$0xff]  }
   0x2   :  { %v991_v1 = vld [vmem:[%s1367_s1 + $0xf8] sm:$0xff]   ;;  %862 = vmatprep.subr.bf16.mxu0 %v990_v0  ;;  %v995_v5 = vld [vmem:[%s1367_s1 + $0xf0] sm:$0xff]   ;;  %v999_v9 = vld [vmem:[%s1367_s1 + $0xe8] sm:$0xff]  }
   0x3   :  { %v992_v2 = vld [vmem:[%s1367_s1 + $0x38] sm:$0xff]   ;;  %926 = vmatprep.subr.bf16.mxu1 %v991_v1  ;;  %v996_v6 = vld [vmem:[%s1367_s1 + $0x30] sm:$0xff]   ;;  %v1000_v10 = vld [vmem:[%s1367_s1 + $0x28] sm:$0xff]  }
   0x4   :  { %v993_v3 = vld [vmem:[%s1367_s1 + $0xb8] sm:$0xff]   ;;  %863 = vmatpush3.bf16.msra.mxu0 %v992_v2  ;;  %v997_v7 = vld [vmem:[%s1367_s1 + $0xb0] sm:$0xff]   ;;  %v1001_v11 = vld [vmem:[%s1367_s1 + $0xa8] sm:$0xff]  }
   0x5   :  { %927 = vmatpush3.bf16.msra.mxu1 %v993_v3  ;;  %864 = vmatprep.subr.bf16.mxu0 %v994_v4  ;;  %v1002_v12 = vld [vmem:[%s1367_s1 + $0x60] sm:$0xff]   ;;  %v1006_v16 = vld [vmem:[%s1367_s1 + $0x58] sm:$0xff]   ;;  %v1010_v20 = vld [vmem:[%s1367_s1 + $0x50] sm:$0xff]  }
   0x6   :  { %928 = vmatprep.subr.bf16.mxu1 %v995_v5  ;;  %v1003_v13 = vld [vmem:[%s1367_s1 + $0xe0] sm:$0xff]   ;;  %v1007_v17 = vld [vmem:[%s1367_s1 + $0xd8] sm:$0xff]   ;;  %v1011_v21 = vld [vmem:[%s1367_s1 + $0xd0] sm:$0xff]  }
   0x7   :  { %v1004_v14 = vld [vmem:[%s1367_s1 + $0x20] sm:$0xff]   ;;  %v1008_v18 = vld [vmem:[%s1367_s1 + $0x18] sm:$0xff]   ;;  %v1012_v22 = vld [vmem:[%s1367_s1 + $0x10] sm:$0xff]  }
   0x8   :  { %865 = vmatpush3.bf16.msra.mxu0 %v996_v6  ;;  %v1005_v15 = vld [vmem:[%s1367_s1 + $0xa0] sm:$0xff]   ;;  %v1009_v19 = vld [vmem:[%s1367_s1 + $0x98] sm:$0xff]   ;;  %v1013_v23 = vld [vmem:[%s1367_s1 + $0x90] sm:$0xff]  }
   0x9   :  { %929 = vmatpush3.bf16.msra.mxu1 %v997_v7  ;;  %866 = vmatprep.subr.bf16.mxu0 %v998_v8  ;;  %v1014_v24 = vld [vmem:[%s1367_s1 + $0x48] sm:$0xff]   ;;  %v1018_v28 = vld [vmem:[%s1367_s1 + $0x40] sm:$0xff]  }
   0xa   :  { %930 = vmatprep.subr.bf16.mxu1 %v999_v9  ;;  %v1015_v25 = vld [vmem:[%s1367_s1 + $0xc8] sm:$0xff]   ;;  %v1019_v29 = vld [vmem:[%s1367_s1 + $0xc0] sm:$0xff]  }
   0xb   :  { %v1016_v26 = vld [vmem:[%s1367_s1 + $0x8] sm:$0xff]   ;;  %v1020_v30 = vld [vmem:[%s1367_s1] sm:$0xff]  }
   0xc   :  { %867 = vmatpush3.bf16.msra.mxu0 %v1000_v10  ;;  %v1017_v27 = vld [vmem:[%s1367_s1 + $0x88] sm:$0xff]   ;;  %v1021_v31 = vld [vmem:[%s1367_s1 + $0x80] sm:$0xff]  }
   0xd   :  { %931 = vmatpush3.bf16.msra.mxu1 %v1001_v11  ;;  %868 = vmatprep.subr.bf16.mxu0 %v1002_v12  ;;  %v1022_v32 = vld [vmem:[%s1368_s0] ss:$16 sps:$4 sm:$0xff]   ;;  %v1024_v33 = vld [vmem:[%s1368_s0 + $0x4] ss:$16 sps:$4 sm:$0xff]   ;;  %v1025_v34 = vld [vmem:[%s1368_s0 + $0x8] ss:$16 sps:$4 sm:$0xff]  }
   0xe   :  { %932 = vmatprep.subr.bf16.mxu1 %v1003_v13  ;;  %v1027_v35 = vld [vmem:[%s1368_s0 + $0xc] ss:$16 sps:$4 sm:$0xff]   ;;  %502 = vmatprep.mubr.bf16.mxu0 %v1024_v33  ;;  %v1028_v36 = vld [vmem:[%s1368_s0 + $0x24] ss:$16 sps:$4 sm:$0xff]   ;;  %v1032_v38 = vld [vmem:[%s1368_s0 + $0x20] ss:$16 sps:$4 sm:$0xff]  }
   0xf   :  { %599 = vmatprep.mubr.bf16.mxu1 %v1027_v35  ;;  %v1030_v37 = vld [vmem:[%s1368_s0 + $0x2c] ss:$16 sps:$4 sm:$0xff]   ;;  %v1033_v39 = vld [vmem:[%s1368_s0 + $0x28] ss:$16 sps:$4 sm:$0xff]   ;;  %v1034_v40 = vld [vmem:[%s1368_s0 + $0x44] ss:$16 sps:$4 sm:$0xff]  }
  0x10   :  { %869 = vmatpush3.bf16.msra.mxu0 %v1004_v14  ;;  %v1036_v41 = vld [vmem:[%s1368_s0 + $0x4c] ss:$16 sps:$4 sm:$0xff]   ;;  %v1038_v42 = vld [vmem:[%s1368_s0 + $0x40] ss:$16 sps:$4 sm:$0xff]   ;;  %v1039_v43 = vld [vmem:[%s1368_s0 + $0x48] ss:$16 sps:$4 sm:$0xff]  }
  0x11   :  { %933 = vmatpush3.bf16.msra.mxu1 %v1005_v15  ;;  %870 = vmatprep.subr.bf16.mxu0 %v1006_v16  ;;  %v1040_v44 = vld [vmem:[%s1368_s0 + $0x64] ss:$16 sps:$4 sm:$0xff]   ;;  %v1042_v45 = vld [vmem:[%s1368_s0 + $0x6c] ss:$16 sps:$4 sm:$0xff]   ;;  %v1044_v46 = vld [vmem:[%s1368_s0 + $0x60] ss:$16 sps:$4 sm:$0xff]  }
  0x12   :  { %934 = vmatprep.subr.bf16.mxu1 %v1007_v17  ;;  %v1045_v47 = vld [vmem:[%s1368_s0 + $0x68] ss:$16 sps:$4 sm:$0xff]   ;;  %v1046_v48 = vld [vmem:[%s1368_s0 + $0x84] ss:$16 sps:$4 sm:$0xff]   ;;  %v1048_v49 = vld [vmem:[%s1368_s0 + $0x8c] ss:$16 sps:$4 sm:$0xff]  }
  0x13   :  { %v1050_v50 = vld [vmem:[%s1368_s0 + $0x80] ss:$16 sps:$4 sm:$0xff]   ;;  %v1051_v51 = vld [vmem:[%s1368_s0 + $0x88] ss:$16 sps:$4 sm:$0xff]   ;;  %v1052_v52 = vld [vmem:[%s1368_s0 + $0xa4] ss:$16 sps:$4 sm:$0xff]  }
  0x14   :  { %871 = vmatpush3.bf16.msra.mxu0 %v1008_v18  ;;  %v1054_v53 = vld [vmem:[%s1368_s0 + $0xac] ss:$16 sps:$4 sm:$0xff]   ;;  %v1056_v54 = vld [vmem:[%s1368_s0 + $0xa0] ss:$16 sps:$4 sm:$0xff]   ;;  %v1057_v55 = vld [vmem:[%s1368_s0 + $0xa8] ss:$16 sps:$4 sm:$0xff]  }
  0x15   :  { %935 = vmatpush3.bf16.msra.mxu1 %v1009_v19  ;;  %872 = vmatprep.subr.bf16.mxu0 %v1010_v20  ;;  %v1058_v56 = vld [vmem:[%s1368_s0 + $0xc4] ss:$16 sps:$4 sm:$0xff]   ;;  %v1060_v57 = vld [vmem:[%s1368_s0 + $0xcc] ss:$16 sps:$4 sm:$0xff]   ;;  %v1062_v58 = vld [vmem:[%s1368_s0 + $0xc0] ss:$16 sps:$4 sm:$0xff]  }
  0x16   :  { %936 = vmatprep.subr.bf16.mxu1 %v1011_v21  ;;  %v1063_v59 = vld [vmem:[%s1368_s0 + $0xc8] ss:$16 sps:$4 sm:$0xff]   ;;  %v1064_v60 = vld [vmem:[%s1368_s0 + $0xe4] ss:$16 sps:$4 sm:$0xff]   ;;  %v1066_v61 = vld [vmem:[%s1368_s0 + $0xec] ss:$16 sps:$4 sm:$0xff]  }
  0x17   :  { %v1068_v62 = vld [vmem:[%s1368_s0 + $0xe0] ss:$16 sps:$4 sm:$0xff]   ;;  %v1069_v63 = vld [vmem:[%s1368_s0 + $0xe8] ss:$16 sps:$4 sm:$0xff]  }
  0x18   :  { %873 = vmatpush3.bf16.msra.mxu0 %v1012_v22  ;;  %v1285_v2 = vld [vmem:[%s1369_s2] ss:$0 sm:$0xff] }
  0x19   :  { %937 = vmatpush3.bf16.msra.mxu1 %v1013_v23  ;;  %874 = vmatprep.subr.bf16.mxu0 %v1014_v24 }
  0x1a   :  { %938 = vmatprep.subr.bf16.mxu1 %v1015_v25 }
  0x1c   :  { %875 = vmatpush3.bf16.msra.mxu0 %v1016_v26 }
  0x1d   :  { %939 = vmatpush3.bf16.msra.mxu1 %v1017_v27  ;;  %876 = vmatprep.subr.bf16.mxu0 %v1018_v28 }
  0x1e   :  { %940 = vmatprep.subr.bf16.mxu1 %v1019_v29 }
  0x20   :  { %877 = vmatpush3.bf16.msra.mxu0 %v1020_v30 }
  0x21   :  { %941 = vmatpush3.bf16.msra.mxu1 %v1021_v31 }
  0x23   :  { %503 = vmatmul.mubr.bf16.vlgmr.msra.gmra.mxu0 %v1022_v32 }
  0x24   :  { %600 = vmatmul.mubr.bf16.vlgmr.msra.gmra.mxu1 %v1025_v34  ;;  %510 = vmatprep.mubr.bf16.mxu0 %v1028_v36 }
  0x25   :  { %607 = vmatprep.mubr.bf16.mxu1 %v1030_v37 }
  0x2b   :  { %511 = vmatmul.mubr.bf16.gmra.mxu0 %v1032_v38 }
  0x2c   :  { %608 = vmatmul.mubr.bf16.gmra.mxu1 %v1033_v39  ;;  %518 = vmatprep.mubr.bf16.mxu0 %v1034_v40 }
  0x2d   :  { %615 = vmatprep.mubr.bf16.mxu1 %v1036_v41 }
  0x33   :  { %519 = vmatmul.mubr.bf16.gmra.mxu0 %v1038_v42 }
  0x34   :  { %616 = vmatmul.mubr.bf16.gmra.mxu1 %v1039_v43  ;;  %526 = vmatprep.mubr.bf16.mxu0 %v1040_v44 }
  0x35   :  { %623 = vmatprep.mubr.bf16.mxu1 %v1042_v45 }
  0x3b   :  { %527 = vmatmul.mubr.bf16.gmra.mxu0 %v1044_v46 }
  0x3c   :  { %624 = vmatmul.mubr.bf16.gmra.mxu1 %v1045_v47  ;;  %534 = vmatprep.mubr.bf16.mxu0 %v1046_v48 }
  0x3d   :  { %631 = vmatprep.mubr.bf16.mxu1 %v1048_v49 }
  0x43   :  { %535 = vmatmul.mubr.bf16.gmra.mxu0 %v1050_v50 }
  0x44   :  { %632 = vmatmul.mubr.bf16.gmra.mxu1 %v1051_v51  ;;  %542 = vmatprep.mubr.bf16.mxu0 %v1052_v52 }
  0x45   :  { %639 = vmatprep.mubr.bf16.mxu1 %v1054_v53 }
  0x4b   :  { %543 = vmatmul.mubr.bf16.gmra.mxu0 %v1056_v54 }
  0x4c   :  { %640 = vmatmul.mubr.bf16.gmra.mxu1 %v1057_v55  ;;  %550 = vmatprep.mubr.bf16.mxu0 %v1058_v56 }
  0x4d   :  { %647 = vmatprep.mubr.bf16.mxu1 %v1060_v57 }
  0x53   :  { %551 = vmatmul.mubr.bf16.gmra.mxu0 %v1062_v58 }
  0x54   :  { %648 = vmatmul.mubr.bf16.gmra.mxu1 %v1063_v59  ;;  %558 = vmatprep.mubr.bf16.mxu0 %v1064_v60 }
  0x55   :  { %655 = vmatprep.mubr.bf16.mxu1 %v1066_v61 }
  0x5b   :  { %559 = vmatmul.mubr.bf16.gmra.mxu0 %v1068_v62 }
  0x5c   :  { %656 = vmatmul.mubr.bf16.gmra.mxu1 %v1069_v63 }
  0xe3   :  { %v878_v0 = vpop.f32.mrf.mxu0 }
  0xe4   :  { %v942_v1 = vpop.f32.mrf.mxu1 }
  0xe5   :  { %v879_v3 = vpop.f32.mrf.mxu0 }
  0xe6   :  { %v880_v4 = vadd.f32 %v879_v3, %v878_v0  ;;  %v943_v5 = vpop.f32.mrf.mxu1 }
  0xe7   :  { %v881_v6 = vpop.f32.mrf.mxu0  ;;  %v944_v8 = vadd.f32 %v943_v5, %v942_v1 }
  0xe8   :  { %v505_v7 = vadd.f32 %v880_v4, %v1285_v2  ;;  %v945_v9 = vpop.f32.mrf.mxu1 }
  0xe9   :  { %v882_v10 = vpop.f32.mrf.mxu0 }
  0xea   :  { %v602_v11 = vadd.f32 %v944_v8, %v505_v7  ;;  %v883_v12 = vadd.f32 %v882_v10, %v881_v6  ;;  %v946_v13 = vpop.f32.mrf.mxu1 }
  0xeb   :  { %v884_v14 = vpop.f32.mrf.mxu0  ;;  %v947_v17 = vadd.f32 %v946_v13, %v945_v9 }
  0xec   :  { %v664_v15 = vmax.f32 %v602_v11, 0.0  ;;  %v508_v16 = vadd.f32 %v883_v12, %v1285_v2  ;;  %v948_v18 = vpop.f32.mrf.mxu1 }
  0xed   :  { %v885_v19 = vpop.f32.mrf.mxu0 }
  0xee   :  { %v846_v20 = vpack.c.bf16 %v664_v15, %v664_v15  ;;  %v605_v21 = vadd.f32 %v947_v17, %v508_v16  ;;  %v886_v22 = vadd.f32 %v885_v19, %v884_v14  ;;  %v949_v23 = vpop.f32.mrf.mxu1 }
  0xef   :  { %v887_v24 = vpop.f32.mrf.mxu0  ;;  %v950_v27 = vadd.f32 %v949_v23, %v948_v18 }
  0xf0   :  { %745 = vst.msk [vmem:[%s1370_s3] sm:$0xf] %vm744_vm0, %v846_v20  ;;  %v665_v25 = vmax.f32 %v605_v21, 0.0  ;;  %v513_v26 = vadd.f32 %v886_v22, %v1285_v2  ;;  %v951_v28 = vpop.f32.mrf.mxu1 }
  0xf1   :  { %v888_v29 = vpop.f32.mrf.mxu0 }
  0xf2   :  { %v847_v30 = vpack.c.bf16 %v665_v25, %v665_v25  ;;  %v610_v31 = vadd.f32 %v950_v27, %v513_v26  ;;  %v889_v32 = vadd.f32 %v888_v29, %v887_v24  ;;  %v952_v33 = vpop.f32.mrf.mxu1 }
  0xf3   :  { %v890_v34 = vpop.f32.mrf.mxu0  ;;  %v953_v37 = vadd.f32 %v952_v33, %v951_v28 }
  0xf4   :  { %746 = vst.msk [vmem:[%s1370_s3 + $0x4] sm:$0xf] %vm744_vm0, %v847_v30  ;;  %v666_v35 = vmax.f32 %v610_v31, 0.0  ;;  %v516_v36 = vadd.f32 %v889_v32, %v1285_v2  ;;  %v954_v38 = vpop.f32.mrf.mxu1 }
  0xf5   :  { %v891_v39 = vpop.f32.mrf.mxu0 }
  0xf6   :  { %v848_v40 = vpack.c.bf16 %v666_v35, %v666_v35  ;;  %v613_v41 = vadd.f32 %v953_v37, %v516_v36  ;;  %v892_v42 = vadd.f32 %v891_v39, %v890_v34  ;;  %v955_v43 = vpop.f32.mrf.mxu1 }
  0xf7   :  { %v893_v44 = vpop.f32.mrf.mxu0  ;;  %v956_v47 = vadd.f32 %v955_v43, %v954_v38 }
  0xf8   :  { %747 = vst.msk [vmem:[%s1370_s3 + $0x8] sm:$0xf] %vm744_vm0, %v848_v40  ;;  %v667_v45 = vmax.f32 %v613_v41, 0.0  ;;  %v521_v46 = vadd.f32 %v892_v42, %v1285_v2  ;;  %v957_v48 = vpop.f32.mrf.mxu1 }
  0xf9   :  { %v894_v49 = vpop.f32.mrf.mxu0 }
  0xfa   :  { %v849_v50 = vpack.c.bf16 %v667_v45, %v667_v45  ;;  %v618_v51 = vadd.f32 %v956_v47, %v521_v46  ;;  %v895_v52 = vadd.f32 %v894_v49, %v893_v44  ;;  %v958_v53 = vpop.f32.mrf.mxu1 }
  0xfb   :  { %v896_v54 = vpop.f32.mrf.mxu0  ;;  %v959_v57 = vadd.f32 %v958_v53, %v957_v48 }
  0xfc   :  { %748 = vst.msk [vmem:[%s1370_s3 + $0xc] sm:$0xf] %vm744_vm0, %v849_v50  ;;  %v668_v55 = vmax.f32 %v618_v51, 0.0  ;;  %v524_v56 = vadd.f32 %v895_v52, %v1285_v2  ;;  %v960_v58 = vpop.f32.mrf.mxu1 }
  0xfd   :  { %v897_v59 = vpop.f32.mrf.mxu0 }
  0xfe   :  { %v850_v60 = vpack.c.bf16 %v668_v55, %v668_v55  ;;  %v621_v61 = vadd.f32 %v959_v57, %v524_v56  ;;  %v898_v62 = vadd.f32 %v897_v59, %v896_v54  ;;  %v961_v63 = vpop.f32.mrf.mxu1 }
  0xff   :  { %v899_v0 = vpop.f32.mrf.mxu0  ;;  %v962_v4 = vadd.f32 %v961_v63, %v960_v58 }
 0x100   :  { %749 = vst.msk [vmem:[%s1370_s3 + $0x10] sm:$0xf] %vm744_vm0, %v850_v60  ;;  %v669_v1 = vmax.f32 %v621_v61, 0.0  ;;  %v529_v3 = vadd.f32 %v898_v62, %v1285_v2  ;;  %v963_v5 = vpop.f32.mrf.mxu1 }
 0x101   :  { %v900_v6 = vpop.f32.mrf.mxu0 }
 0x102   :  { %v851_v7 = vpack.c.bf16 %v669_v1, %v669_v1  ;;  %v626_v8 = vadd.f32 %v962_v4, %v529_v3  ;;  %v901_v9 = vadd.f32 %v900_v6, %v899_v0  ;;  %v964_v10 = vpop.f32.mrf.mxu1 }
 0x103   :  { %v902_v11 = vpop.f32.mrf.mxu0  ;;  %v965_v14 = vadd.f32 %v964_v10, %v963_v5 }
 0x104   :  { %750 = vst.msk [vmem:[%s1370_s3 + $0x14] sm:$0xf] %vm744_vm0, %v851_v7  ;;  %v670_v12 = vmax.f32 %v626_v8, 0.0  ;;  %v532_v13 = vadd.f32 %v901_v9, %v1285_v2  ;;  %v966_v15 = vpop.f32.mrf.mxu1 }
 0x105   :  { %v903_v16 = vpop.f32.mrf.mxu0 }
 0x106   :  { %v852_v17 = vpack.c.bf16 %v670_v12, %v670_v12  ;;  %v629_v18 = vadd.f32 %v965_v14, %v532_v13  ;;  %v904_v19 = vadd.f32 %v903_v16, %v902_v11  ;;  %v967_v20 = vpop.f32.mrf.mxu1 }
 0x107   :  { %v905_v21 = vpop.f32.mrf.mxu0  ;;  %v968_v24 = vadd.f32 %v967_v20, %v966_v15 }
 0x108   :  { %751 = vst.msk [vmem:[%s1370_s3 + $0x18] sm:$0xf] %vm744_vm0, %v852_v17  ;;  %v671_v22 = vmax.f32 %v629_v18, 0.0  ;;  %v537_v23 = vadd.f32 %v904_v19, %v1285_v2  ;;  %v969_v25 = vpop.f32.mrf.mxu1 }
 0x109   :  { %v906_v26 = vpop.f32.mrf.mxu0 }
 0x10a   :  { %v853_v27 = vpack.c.bf16 %v671_v22, %v671_v22  ;;  %v634_v28 = vadd.f32 %v968_v24, %v537_v23  ;;  %v907_v29 = vadd.f32 %v906_v26, %v905_v21  ;;  %v970_v30 = vpop.f32.mrf.mxu1 }
 0x10b   :  { %v908_v31 = vpop.f32.mrf.mxu0  ;;  %v971_v34 = vadd.f32 %v970_v30, %v969_v25 }
 0x10c   :  { %752 = vst.msk [vmem:[%s1370_s3 + $0x1c] sm:$0xf] %vm744_vm0, %v853_v27  ;;  %v672_v32 = vmax.f32 %v634_v28, 0.0  ;;  %v540_v33 = vadd.f32 %v907_v29, %v1285_v2  ;;  %v972_v35 = vpop.f32.mrf.mxu1 }
 0x10d   :  { %v909_v36 = vpop.f32.mrf.mxu0 }
 0x10e   :  { %v854_v37 = vpack.c.bf16 %v672_v32, %v672_v32  ;;  %v637_v38 = vadd.f32 %v971_v34, %v540_v33  ;;  %v910_v39 = vadd.f32 %v909_v36, %v908_v31  ;;  %v973_v40 = vpop.f32.mrf.mxu1 }
 0x10f   :  { %v911_v41 = vpop.f32.mrf.mxu0  ;;  %v974_v44 = vadd.f32 %v973_v40, %v972_v35 }
 0x110   :  { %753 = vst.msk [vmem:[%s1370_s3 + $0x20] sm:$0xf] %vm744_vm0, %v854_v37  ;;  %v673_v42 = vmax.f32 %v637_v38, 0.0  ;;  %v545_v43 = vadd.f32 %v910_v39, %v1285_v2  ;;  %v975_v45 = vpop.f32.mrf.mxu1 }
 0x111   :  { %v912_v46 = vpop.f32.mrf.mxu0 }
 0x112   :  { %v855_v47 = vpack.c.bf16 %v673_v42, %v673_v42  ;;  %v642_v48 = vadd.f32 %v974_v44, %v545_v43  ;;  %v913_v49 = vadd.f32 %v912_v46, %v911_v41  ;;  %v976_v50 = vpop.f32.mrf.mxu1 }
 0x113   :  { %v914_v51 = vpop.f32.mrf.mxu0  ;;  %v977_v54 = vadd.f32 %v976_v50, %v975_v45 }
 0x114   :  { %754 = vst.msk [vmem:[%s1370_s3 + $0x24] sm:$0xf] %vm744_vm0, %v855_v47  ;;  %v674_v52 = vmax.f32 %v642_v48, 0.0  ;;  %v548_v53 = vadd.f32 %v913_v49, %v1285_v2  ;;  %v978_v55 = vpop.f32.mrf.mxu1 }
 0x115   :  { %v915_v56 = vpop.f32.mrf.mxu0 }
 0x116   :  { %v856_v57 = vpack.c.bf16 %v674_v52, %v674_v52  ;;  %v645_v58 = vadd.f32 %v977_v54, %v548_v53  ;;  %v916_v59 = vadd.f32 %v915_v56, %v914_v51  ;;  %v979_v60 = vpop.f32.mrf.mxu1 }
 0x117   :  { %v917_v61 = vpop.f32.mrf.mxu0  ;;  %v980_v0 = vadd.f32 %v979_v60, %v978_v55 }
 0x118   :  { %755 = vst.msk [vmem:[%s1370_s3 + $0x28] sm:$0xf] %vm744_vm0, %v856_v57  ;;  %v675_v62 = vmax.f32 %v645_v58, 0.0  ;;  %v553_v63 = vadd.f32 %v916_v59, %v1285_v2  ;;  %v981_v1 = vpop.f32.mrf.mxu1 }
 0x119   :  { %v918_v3 = vpop.f32.mrf.mxu0 }
 0x11a   :  { %v857_v4 = vpack.c.bf16 %v675_v62, %v675_v62  ;;  %v650_v5 = vadd.f32 %v980_v0, %v553_v63  ;;  %v919_v6 = vadd.f32 %v918_v3, %v917_v61  ;;  %v982_v7 = vpop.f32.mrf.mxu1 }
 0x11b   :  { %v920_v8 = vpop.f32.mrf.mxu0  ;;  %v983_v11 = vadd.f32 %v982_v7, %v981_v1 }
 0x11c   :  { %756 = vst.msk [vmem:[%s1370_s3 + $0x2c] sm:$0xf] %vm744_vm0, %v857_v4  ;;  %v676_v9 = vmax.f32 %v650_v5, 0.0  ;;  %v556_v10 = vadd.f32 %v919_v6, %v1285_v2  ;;  %v984_v12 = vpop.f32.mrf.mxu1 }
 0x11d   :  { %v921_v13 = vpop.f32.mrf.mxu0 }
 0x11e   :  { %v858_v14 = vpack.c.bf16 %v676_v9, %v676_v9  ;;  %v653_v15 = vadd.f32 %v983_v11, %v556_v10  ;;  %v922_v16 = vadd.f32 %v921_v13, %v920_v8  ;;  %v985_v17 = vpop.f32.mrf.mxu1 }
 0x11f   :  { %v923_v18 = vpop.f32.mrf.mxu0  ;;  %v986_v21 = vadd.f32 %v985_v17, %v984_v12 }
 0x120   :  { %757 = vst.msk [vmem:[%s1370_s3 + $0x30] sm:$0xf] %vm744_vm0, %v858_v14  ;;  %v677_v19 = vmax.f32 %v653_v15, 0.0  ;;  %v561_v20 = vadd.f32 %v922_v16, %v1285_v2  ;;  %v987_v22 = vpop.f32.mrf.mxu1 }
 0x121   :  { %v924_v23 = vpop.f32.mrf.mxu0 }
 0x122   :  { %v859_v24 = vpack.c.bf16 %v677_v19, %v677_v19  ;;  %v658_v25 = vadd.f32 %v986_v21, %v561_v20  ;;  %v925_v26 = vadd.f32 %v924_v23, %v923_v18  ;;  %v988_v27 = vpop.f32.mrf.mxu1 }
 0x123   :  { %v989_v30 = vadd.f32 %v988_v27, %v987_v22 }
 0x124   :  { %758 = vst.msk [vmem:[%s1370_s3 + $0x34] sm:$0xf] %vm744_vm0, %v859_v24  ;;  %v678_v28 = vmax.f32 %v658_v25, 0.0  ;;  %v564_v29 = vadd.f32 %v925_v26, %v1285_v2 }
 0x126   :  { %v860_v31 = vpack.c.bf16 %v678_v28, %v678_v28  ;;  %v661_v32 = vadd.f32 %v989_v30, %v564_v29 }
 0x128   :  { %759 = vst.msk [vmem:[%s1370_s3 + $0x38] sm:$0xf] %vm744_vm0, %v860_v31  ;;  %v679_v33 = vmax.f32 %v661_v32, 0.0 }
 0x12a   :  { %v861_v34 = vpack.c.bf16 %v679_v33, %v679_v33 }
 0x12c   :  { %760 = vst.msk [vmem:[%s1370_s3 + $0x3c] sm:$0xf] %vm744_vm0, %v861_v34 }

// kernel: vae_forward.9
= control target key start
LH: loop header
LB: loop body
LE: loop exit
PB: predicated region body
PF: predicated region fallthrough
CT: control target
= control target key end

     0   :  { %s1399_s1 = inlined_call_operand.vmem [shape: bf16[1024,128], index: 1, kind: input, shape index: {}]   ;;  %s1400_s0 = inlined_call_operand.vmem [shape: bf16[32,1024], index: 0, kind: input, shape index: {}]   ;;  %s1401_s2 = inlined_call_operand.vmem [shape: f32[1,128], index: 2, kind: input, shape index: {}]   ;;  %s1402_s3 = inlined_call_operand.vmem [shape: bf16[32,128], index: 3, kind: output, shape index: {}]  }
   0x1   :  { %v1066_v0 = vld [vmem:[%s1399_s1 + $0x78] sm:$0xff]   ;;  %v1070_v4 = vld [vmem:[%s1399_s1 + $0x70] sm:$0xff]   ;;  %v1074_v8 = vld [vmem:[%s1399_s1 + $0x68] sm:$0xff]  }
   0x2   :  { %v1067_v1 = vld [vmem:[%s1399_s1 + $0xf8] sm:$0xff]   ;;  %954 = vmatprep.subr.bf16.mxu0 %v1066_v0  ;;  %v1071_v5 = vld [vmem:[%s1399_s1 + $0xf0] sm:$0xff]   ;;  %v1075_v9 = vld [vmem:[%s1399_s1 + $0xe8] sm:$0xff]  }
   0x3   :  { %v1068_v2 = vld [vmem:[%s1399_s1 + $0x38] sm:$0xff]   ;;  %982 = vmatprep.subr.bf16.mxu1 %v1067_v1  ;;  %v1072_v6 = vld [vmem:[%s1399_s1 + $0x30] sm:$0xff]   ;;  %v1076_v10 = vld [vmem:[%s1399_s1 + $0x28] sm:$0xff]  }
   0x4   :  { %v1069_v3 = vld [vmem:[%s1399_s1 + $0xb8] sm:$0xff]   ;;  %955 = vmatpush3.bf16.msra.mxu0 %v1068_v2  ;;  %v1073_v7 = vld [vmem:[%s1399_s1 + $0xb0] sm:$0xff]   ;;  %v1077_v11 = vld [vmem:[%s1399_s1 + $0xa8] sm:$0xff]  }
   0x5   :  { %983 = vmatpush3.bf16.msra.mxu1 %v1069_v3  ;;  %956 = vmatprep.subr.bf16.mxu0 %v1070_v4  ;;  %v1078_v12 = vld [vmem:[%s1399_s1 + $0x60] sm:$0xff]   ;;  %v1082_v16 = vld [vmem:[%s1399_s1 + $0x58] sm:$0xff]   ;;  %v1086_v20 = vld [vmem:[%s1399_s1 + $0x50] sm:$0xff]  }
   0x6   :  { %984 = vmatprep.subr.bf16.mxu1 %v1071_v5  ;;  %v1079_v13 = vld [vmem:[%s1399_s1 + $0xe0] sm:$0xff]   ;;  %v1083_v17 = vld [vmem:[%s1399_s1 + $0xd8] sm:$0xff]   ;;  %v1087_v21 = vld [vmem:[%s1399_s1 + $0xd0] sm:$0xff]  }
   0x7   :  { %v1080_v14 = vld [vmem:[%s1399_s1 + $0x20] sm:$0xff]   ;;  %v1084_v18 = vld [vmem:[%s1399_s1 + $0x18] sm:$0xff]   ;;  %v1088_v22 = vld [vmem:[%s1399_s1 + $0x10] sm:$0xff]  }
   0x8   :  { %957 = vmatpush3.bf16.msra.mxu0 %v1072_v6  ;;  %v1081_v15 = vld [vmem:[%s1399_s1 + $0xa0] sm:$0xff]   ;;  %v1085_v19 = vld [vmem:[%s1399_s1 + $0x98] sm:$0xff]   ;;  %v1089_v23 = vld [vmem:[%s1399_s1 + $0x90] sm:$0xff]  }
   0x9   :  { %985 = vmatpush3.bf16.msra.mxu1 %v1073_v7  ;;  %958 = vmatprep.subr.bf16.mxu0 %v1074_v8  ;;  %v1090_v24 = vld [vmem:[%s1399_s1 + $0x48] sm:$0xff]   ;;  %v1094_v28 = vld [vmem:[%s1399_s1 + $0x40] sm:$0xff]   ;;  %v1098_v40 = vld [vmem:[%s1399_s1 + $0x178] sm:$0xff]  }
   0xa   :  { %986 = vmatprep.subr.bf16.mxu1 %v1075_v9  ;;  %v1091_v25 = vld [vmem:[%s1399_s1 + $0xc8] sm:$0xff]   ;;  %v1095_v29 = vld [vmem:[%s1399_s1 + $0xc0] sm:$0xff]   ;;  %v1099_v41 = vld [vmem:[%s1399_s1 + $0x1f8] sm:$0xff]  }
   0xb   :  { %v1092_v26 = vld [vmem:[%s1399_s1 + $0x8] sm:$0xff]   ;;  %v1096_v30 = vld [vmem:[%s1399_s1] sm:$0xff]   ;;  %v1100_v42 = vld [vmem:[%s1399_s1 + $0x138] sm:$0xff]  }
   0xc   :  { %959 = vmatpush3.bf16.msra.mxu0 %v1076_v10  ;;  %v1093_v27 = vld [vmem:[%s1399_s1 + $0x88] sm:$0xff]   ;;  %v1097_v31 = vld [vmem:[%s1399_s1 + $0x80] sm:$0xff]   ;;  %v1101_v43 = vld [vmem:[%s1399_s1 + $0x1b8] sm:$0xff]  }
   0xd   :  { %987 = vmatpush3.bf16.msra.mxu1 %v1077_v11  ;;  %960 = vmatprep.subr.bf16.mxu0 %v1078_v12  ;;  %v15_v32 = vld [vmem:[%s1400_s0] sm:$0xff]  ;;  %v16_v34 = vld [vmem:[%s1400_s0 + $0x8] sm:$0xff]  ;;  %v1102_v44 = vld [vmem:[%s1399_s1 + $0x170] sm:$0xff]  }
   0xe   :  { %988 = vmatprep.subr.bf16.mxu1 %v1079_v13  ;;  %v19_v33 = vld [vmem:[%s1400_s0 + $0x20] sm:$0xff]  ;;  %v20_v37 = vld [vmem:[%s1400_s0 + $0x28] sm:$0xff]  ;;  %v1103_v45 = vld [vmem:[%s1399_s1 + $0x1f0] sm:$0xff]  }
   0xf   :  { %v855_v35 = vcombine.low %v15_v32, %v19_v33  ;;  %v856_v36 = vcombine.high %v15_v32, %v19_v33  ;;  %v857_v38 = vcombine.low %v16_v34, %v20_v37  ;;  %v858_v39 = vcombine.high %v16_v34, %v20_v37  ;;  %v1104_v46 = vld [vmem:[%s1399_s1 + $0x130] sm:$0xff]   ;;  %v1106_v48 = vld [vmem:[%s1399_s1 + $0x168] sm:$0xff]   ;;  %v1110_v52 = vld [vmem:[%s1399_s1 + $0x160] sm:$0xff]  }
  0x10   :  { %961 = vmatpush3.bf16.msra.mxu0 %v1080_v14  ;;  %v1105_v47 = vld [vmem:[%s1399_s1 + $0x1b0] sm:$0xff]   ;;  %v1107_v49 = vld [vmem:[%s1399_s1 + $0x1e8] sm:$0xff]   ;;  %v1111_v53 = vld [vmem:[%s1399_s1 + $0x1e0] sm:$0xff]  }
  0x11   :  { %989 = vmatpush3.bf16.msra.mxu1 %v1081_v15  ;;  %962 = vmatprep.subr.bf16.mxu0 %v1082_v16  ;;  %v1108_v50 = vld [vmem:[%s1399_s1 + $0x128] sm:$0xff]   ;;  %v1112_v54 = vld [vmem:[%s1399_s1 + $0x120] sm:$0xff]   ;;  %v1114_v56 = vld [vmem:[%s1399_s1 + $0x158] sm:$0xff]  }
  0x12   :  { %990 = vmatprep.subr.bf16.mxu1 %v1083_v17  ;;  %662 = vmatprep.mubr.bf16.mxu0 %v856_v36  ;;  %v1109_v51 = vld [vmem:[%s1399_s1 + $0x1a8] sm:$0xff]   ;;  %v1113_v55 = vld [vmem:[%s1399_s1 + $0x1a0] sm:$0xff]   ;;  %v1115_v57 = vld [vmem:[%s1399_s1 + $0x1d8] sm:$0xff]  }
  0x13   :  { %711 = vmatprep.mubr.bf16.mxu1 %v858_v39  ;;  %v23_v58 = vld [vmem:[%s1400_s0 + $0x40] sm:$0xff]  ;;  %v1116_v61 = vld [vmem:[%s1399_s1 + $0x118] sm:$0xff]   ;;  %v24_v0 = vld [vmem:[%s1400_s0 + $0x48] sm:$0xff] }
  0x14   :  { %963 = vmatpush3.bf16.msra.mxu0 %v1084_v18  ;;  %v27_v59 = vld [vmem:[%s1400_s0 + $0x60] sm:$0xff]  ;;  %v1117_v63 = vld [vmem:[%s1399_s1 + $0x198] sm:$0xff]   ;;  %v28_v1 = vld [vmem:[%s1400_s0 + $0x68] sm:$0xff] }
  0x15   :  { %991 = vmatpush3.bf16.msra.mxu1 %v1085_v19  ;;  %964 = vmatprep.subr.bf16.mxu0 %v1086_v20  ;;  %v864_v60 = vcombine.high %v23_v58, %v27_v59  ;;  %v863_v62 = vcombine.low %v23_v58, %v27_v59  ;;  %v866_v2 = vcombine.high %v24_v0, %v28_v1  ;;  %v1118_v4 = vld [vmem:[%s1399_s1 + $0x150] sm:$0xff]   ;;  %v1122_v8 = vld [vmem:[%s1399_s1 + $0x148] sm:$0xff]   ;;  %v1126_v12 = vld [vmem:[%s1399_s1 + $0x140] sm:$0xff]  }
  0x16   :  { %992 = vmatprep.subr.bf16.mxu1 %v1087_v21  ;;  %v865_v3 = vcombine.low %v24_v0, %v28_v1  ;;  %v1119_v5 = vld [vmem:[%s1399_s1 + $0x1d0] sm:$0xff]   ;;  %v1123_v9 = vld [vmem:[%s1399_s1 + $0x1c8] sm:$0xff]   ;;  %v1127_v13 = vld [vmem:[%s1399_s1 + $0x1c0] sm:$0xff]  }
  0x17   :  { %v1120_v6 = vld [vmem:[%s1399_s1 + $0x110] sm:$0xff]   ;;  %v1124_v10 = vld [vmem:[%s1399_s1 + $0x108] sm:$0xff]   ;;  %v1128_v14 = vld [vmem:[%s1399_s1 + $0x100] sm:$0xff]  }
  0x18   :  { %965 = vmatpush3.bf16.msra.mxu0 %v1088_v22  ;;  %v1121_v7 = vld [vmem:[%s1399_s1 + $0x190] sm:$0xff]   ;;  %v1125_v11 = vld [vmem:[%s1399_s1 + $0x188] sm:$0xff]   ;;  %v1129_v15 = vld [vmem:[%s1399_s1 + $0x180] sm:$0xff]  }
  0x19   :  { %993 = vmatpush3.bf16.msra.mxu1 %v1089_v23  ;;  %966 = vmatprep.subr.bf16.mxu0 %v1090_v24  ;;  %v17_v16 = vld [vmem:[%s1400_s0 + $0x10] sm:$0xff]  ;;  %v18_v18 = vld [vmem:[%s1400_s0 + $0x18] sm:$0xff] }
  0x1a   :  { %994 = vmatprep.subr.bf16.mxu1 %v1091_v25  ;;  %v21_v17 = vld [vmem:[%s1400_s0 + $0x30] sm:$0xff]  ;;  %v22_v19 = vld [vmem:[%s1400_s0 + $0x38] sm:$0xff] }
  0x1b   :  { %v859_v20 = vcombine.low %v17_v16, %v21_v17  ;;  %v860_v21 = vcombine.high %v17_v16, %v21_v17  ;;  %v861_v22 = vcombine.low %v18_v18, %v22_v19  ;;  %v862_v23 = vcombine.high %v18_v18, %v22_v19  ;;  %v25_v24 = vld [vmem:[%s1400_s0 + $0x50] sm:$0xff] }
  0x1c   :  { %967 = vmatpush3.bf16.msra.mxu0 %v1092_v26  ;;  %v29_v25 = vld [vmem:[%s1400_s0 + $0x70] sm:$0xff]  ;;  %v26_v26 = vld [vmem:[%s1400_s0 + $0x58] sm:$0xff] }
  0x1d   :  { %995 = vmatpush3.bf16.msra.mxu1 %v1093_v27  ;;  %968 = vmatprep.subr.bf16.mxu0 %v1094_v28  ;;  %v868_v27 = vcombine.high %v25_v24, %v29_v25  ;;  %v30_v28 = vld [vmem:[%s1400_s0 + $0x78] sm:$0xff] }
  0x1e   :  { %996 = vmatprep.subr.bf16.mxu1 %v1095_v29  ;;  %v870_v29 = vcombine.high %v26_v26, %v30_v28 }
  0x20   :  { %969 = vmatpush3.bf16.msra.mxu0 %v1096_v30  ;;  %v867_v30 = vcombine.low %v25_v24, %v29_v25 }
  0x21   :  { %997 = vmatpush3.bf16.msra.mxu1 %v1097_v31  ;;  %1010 = vmatprep.subr.bf16.mxu0 %v1098_v40  ;;  %v869_v31 = vcombine.low %v26_v26, %v30_v28 }
  0x22   :  { %1038 = vmatprep.subr.bf16.mxu1 %v1099_v41 }
  0x23   :  { %663 = vmatmul.mubr.bf16.vlgmr.msra.gmra.mxu0 %v855_v35 }
  0x24   :  { %712 = vmatmul.mubr.bf16.vlgmr.msra.gmra.mxu1 %v857_v38  ;;  %1011 = vmatpush3.bf16.msra.mxu0 %v1100_v42 }
  0x25   :  { %1039 = vmatpush3.bf16.msra.mxu1 %v1101_v43  ;;  %1012 = vmatprep.subr.bf16.mxu0 %v1102_v44 }
  0x26   :  { %1040 = vmatprep.subr.bf16.mxu1 %v1103_v45  ;;  %670 = vmatprep.mubr.bf16.mxu0 %v864_v60 }
  0x27   :  { %719 = vmatprep.mubr.bf16.mxu1 %v866_v2 }
  0x28   :  { %1013 = vmatpush3.bf16.msra.mxu0 %v1104_v46 }
  0x29   :  { %1041 = vmatpush3.bf16.msra.mxu1 %v1105_v47  ;;  %1014 = vmatprep.subr.bf16.mxu0 %v1106_v48  ;;  %v854_v47 = vld [vmem:[%s1401_s2] ss:$0 sm:$0xff] }
  0x2a   :  { %1042 = vmatprep.subr.bf16.mxu1 %v1107_v49 }
  0x2b   :  { %671 = vmatmul.mubr.bf16.gmra.mxu0 %v863_v62 }
  0x2c   :  { %1015 = vmatpush3.bf16.msra.mxu0 %v1108_v50  ;;  %720 = vmatmul.mubr.bf16.gmra.mxu1 %v865_v3 }
  0x2d   :  { %1043 = vmatpush3.bf16.msra.mxu1 %v1109_v51  ;;  %1016 = vmatprep.subr.bf16.mxu0 %v1110_v52 }
  0x2e   :  { %1044 = vmatprep.subr.bf16.mxu1 %v1111_v53  ;;  %760 = vmatprep.mubr.bf16.mxu0 %v860_v21 }
  0x2f   :  { %809 = vmatprep.mubr.bf16.mxu1 %v862_v23 }
  0x30   :  { %1017 = vmatpush3.bf16.msra.mxu0 %v1112_v54 }
  0x31   :  { %1045 = vmatpush3.bf16.msra.mxu1 %v1113_v55  ;;  %1018 = vmatprep.subr.bf16.mxu0 %v1114_v56 }
  0x32   :  { %1046 = vmatprep.subr.bf16.mxu1 %v1115_v57 }
  0x34   :  { %1019 = vmatpush3.bf16.msra.mxu0 %v1116_v61 }
  0x35   :  { %1047 = vmatpush3.bf16.msra.mxu1 %v1117_v63  ;;  %1020 = vmatprep.subr.bf16.mxu0 %v1118_v4 }
  0x36   :  { %1048 = vmatprep.subr.bf16.mxu1 %v1119_v5 }
  0x38   :  { %1021 = vmatpush3.bf16.msra.mxu0 %v1120_v6 }
  0x39   :  { %1049 = vmatpush3.bf16.msra.mxu1 %v1121_v7  ;;  %1022 = vmatprep.subr.bf16.mxu0 %v1122_v8 }
  0x3a   :  { %1050 = vmatprep.subr.bf16.mxu1 %v1123_v9 }
  0x3c   :  { %1023 = vmatpush3.bf16.msra.mxu0 %v1124_v10 }
  0x3d   :  { %1051 = vmatpush3.bf16.msra.mxu1 %v1125_v11  ;;  %1024 = vmatprep.subr.bf16.mxu0 %v1126_v12 }
  0x3e   :  { %1052 = vmatprep.subr.bf16.mxu1 %v1127_v13 }
  0x40   :  { %1025 = vmatpush3.bf16.msra.mxu0 %v1128_v14 }
  0x41   :  { %1053 = vmatpush3.bf16.msra.mxu1 %v1129_v15 }
  0x43   :  { %761 = vmatmul.mubr.bf16.vlgmr.msra.gmra.mxu0 %v859_v20 }
  0x44   :  { %810 = vmatmul.mubr.bf16.vlgmr.msra.gmra.mxu1 %v861_v22  ;;  %768 = vmatprep.mubr.bf16.mxu0 %v868_v27 }
  0x45   :  { %817 = vmatprep.mubr.bf16.mxu1 %v870_v29 }
  0x4b   :  { %769 = vmatmul.mubr.bf16.gmra.mxu0 %v867_v30 }
  0x4c   :  { %818 = vmatmul.mubr.bf16.gmra.mxu1 %v869_v31 }
  0xe3   :  { %v970_v32 = vpop.f32.mrf.mxu0 }
  0xe4   :  { %v998_v33 = vpop.f32.mrf.mxu1 }
  0xe5   :  { %v971_v34 = vpop.f32.mrf.mxu0 }
  0xe6   :  { %v999_v35 = vpop.f32.mrf.mxu1  ;;  %v972_v46 = vadd.f32 %v971_v34, %v970_v32 }
  0xe7   :  { %v973_v36 = vpop.f32.mrf.mxu0  ;;  %v1000_v51 = vadd.f32 %v999_v35, %v998_v33 }
  0xe8   :  { %v1001_v37 = vpop.f32.mrf.mxu1  ;;  %v665_v50 = vadd.f32 %v972_v46, %v854_v47 }
  0xe9   :  { %v974_v38 = vpop.f32.mrf.mxu0 }
  0xea   :  { %v1002_v39 = vpop.f32.mrf.mxu1  ;;  %v975_v52 = vadd.f32 %v974_v38, %v973_v36  ;;  %v714_v58 = vadd.f32 %v1000_v51, %v665_v50 }
  0xeb   :  { %v976_v40 = vpop.f32.mrf.mxu0  ;;  %v1003_v63 = vadd.f32 %v1002_v39, %v1001_v37 }
  0xec   :  { %v1004_v41 = vpop.f32.mrf.mxu1  ;;  %v668_v59 = vadd.f32 %v975_v52, %v854_v47 }
  0xed   :  { %v977_v42 = vpop.f32.mrf.mxu0 }
  0xee   :  { %v1005_v43 = vpop.f32.mrf.mxu1  ;;  %v978_v55 = vadd.f32 %v977_v42, %v976_v40  ;;  %v717_v5 = vadd.f32 %v1003_v63, %v668_v59 }
  0xef   :  { %v979_v44 = vpop.f32.mrf.mxu0  ;;  %v1006_v2 = vadd.f32 %v1005_v43, %v1004_v41 }
  0xf0   :  { %v1007_v45 = vpop.f32.mrf.mxu1  ;;  %v673_v1 = vadd.f32 %v978_v55, %v854_v47 }
  0xf1   :  { %v980_v48 = vpop.f32.mrf.mxu0 }
  0xf2   :  { %v1008_v49 = vpop.f32.mrf.mxu1  ;;  %v981_v6 = vadd.f32 %v980_v48, %v979_v44  ;;  %v722_v14 = vadd.f32 %v1006_v2, %v673_v1 }
  0xf3   :  { %v1009_v18 = vadd.f32 %v1008_v49, %v1007_v45 }
  0xf4   :  { %v676_v17 = vadd.f32 %v981_v6, %v854_v47 }
  0xf6   :  { %v725_v28 = vadd.f32 %v1009_v18, %v676_v17 }
 0x103   :  { %v1026_v53 = vpop.f32.mrf.mxu0 }
 0x104   :  { %v1054_v54 = vpop.f32.mrf.mxu1 }
 0x105   :  { %v1027_v56 = vpop.f32.mrf.mxu0 }
 0x106   :  { %v1055_v57 = vpop.f32.mrf.mxu1  ;;  %v1028_v60 = vadd.f32 %v1027_v56, %v1026_v53 }
 0x107   :  { %v1029_v61 = vpop.f32.mrf.mxu0  ;;  %v1056_v7 = vadd.f32 %v1055_v57, %v1054_v54 }
 0x108   :  { %v1057_v62 = vpop.f32.mrf.mxu1  ;;  %v763_v0 = vadd.f32 %v1028_v60, %v714_v58 }
 0x109   :  { %v1030_v3 = vpop.f32.mrf.mxu0 }
 0x10a   :  { %v1058_v4 = vpop.f32.mrf.mxu1  ;;  %v1031_v8 = vadd.f32 %v1030_v3, %v1029_v61  ;;  %v812_v11 = vadd.f32 %v1056_v7, %v763_v0 }
 0x10b   :  { %v1032_v9 = vpop.f32.mrf.mxu0  ;;  %v1059_v13 = vadd.f32 %v1058_v4, %v1057_v62 }
 0x10c   :  { %v1060_v10 = vpop.f32.mrf.mxu1  ;;  %v766_v12 = vadd.f32 %v1031_v8, %v717_v5  ;;  %v826_v23 = vmax.f32 %v812_v11, 0.0 }
 0x10d   :  { %v1033_v15 = vpop.f32.mrf.mxu0 }
 0x10e   :  { %v1061_v16 = vpop.f32.mrf.mxu1  ;;  %v815_v19 = vadd.f32 %v1059_v13, %v766_v12  ;;  %v1034_v20 = vadd.f32 %v1033_v15, %v1032_v9 }
 0x10f   :  { %v1035_v21 = vpop.f32.mrf.mxu0  ;;  %v1062_v30 = vadd.f32 %v1061_v16, %v1060_v10 }
 0x110   :  { %v1063_v22 = vpop.f32.mrf.mxu1  ;;  %v827_v24 = vmax.f32 %v815_v19, 0.0  ;;  %v771_v25 = vadd.f32 %v1034_v20, %v722_v14 }
 0x111   :  { %v1036_v26 = vpop.f32.mrf.mxu0 }
 0x112   :  { %v1064_v27 = vpop.f32.mrf.mxu1  ;;  %v946_v29 = vpack.c.bf16 %v827_v24, %v826_v23  ;;  %v1037_v31 = vadd.f32 %v1036_v26, %v1035_v21  ;;  %v820_v32 = vadd.f32 %v1062_v30, %v771_v25 }
 0x113   :  { %v1065_v34 = vadd.f32 %v1064_v27, %v1063_v22 }
 0x114   :  { %947 = vst [vmem:[%s1402_s3] sm:$0xff] %v946_v29   ;;  %v774_v33 = vadd.f32 %v1037_v31, %v725_v28  ;;  %v828_v36 = vmax.f32 %v820_v32, 0.0 }
 0x116   :  { %v823_v35 = vadd.f32 %v1065_v34, %v774_v33 }
 0x118   :  { %v829_v37 = vmax.f32 %v823_v35, 0.0 }
 0x11a   :  { %v951_v38 = vpack.c.bf16 %v829_v37, %v828_v36 }
 0x11c   :  { %953 = vst [vmem:[%s1402_s3 + $0x8] sm:$0xff] %v951_v38  }

// kernel: vae_forward.10
= control target key start
LH: loop header
LB: loop body
LE: loop exit
PB: predicated region body
PF: predicated region fallthrough
CT: control target
= control target key end

     0   :  { %14 = vsyncpa [#allocation3], 0  ;;  %v289_v36 = vlaneseq  ;;  %v4157_v37 = vmov 1966171168   ;;  %s5485_s0 = inlined_call_operand.vmem [shape: bf16[2,2048], index: 0, kind: input, shape index: {}]   ;;  %s5486_s1 = inlined_call_operand.vmem [shape: bf16[2048,256], index: 1, kind: input, shape index: {}]   ;;  %s5487_s2 = inlined_call_operand.vmem [shape: f32[1,256], index: 2, kind: input, shape index: {}]   ;;  %s5488_s3 = inlined_call_operand.vmem [shape: f32[2,128], index: 3, kind: input, shape index: {}]   ;;  %s5489_s4 = inlined_call_operand.vmem [shape: bf16[128,2048], index: 4, kind: input, shape index: {}]   ;;  %s5490_s5 = inlined_call_operand.vmem [shape: f32[1,2048], index: 5, kind: input, shape index: {}]   ;;  %s5491_s6 = inlined_call_operand.hbm [shape: f32[2,128], index: 6, kind: output, shape index: {0}]   ;;  %s5492_s7 = inlined_call_operand.hbm [shape: f32[2,128], index: 7, kind: output, shape index: {1}]   ;;  %s5493_s8 = inlined_call_operand.vmem [shape: f32[2,2048], index: 8, kind: output, shape index: {2}]  }
   0x1   :  { %v3725_v0 = vld [vmem:[%s5486_s1 + $0x74] ss:$8 sps:$4 sm:$0xff]   ;;  %v3729_v2 = vld [vmem:[%s5486_s1 + $0x70] ss:$8 sps:$4 sm:$0xff]   ;;  %v3731_v4 = vld [vmem:[%s5486_s1 + $0x64] ss:$8 sps:$4 sm:$0xff]   ;;  %v303_v38 = vunpack.c.l.s4 %v4157_v37 }
   0x2   :  { %v3727_v1 = vld [vmem:[%s5486_s1 + $0x174] ss:$8 sps:$4 sm:$0xff]   ;;  %1695 = vmatprep.subr.bf16.mxu0 %v3725_v0  ;;  %v3730_v3 = vld [vmem:[%s5486_s1 + $0x170] ss:$8 sps:$4 sm:$0xff]   ;;  %v3733_v5 = vld [vmem:[%s5486_s1 + $0x164] ss:$8 sps:$4 sm:$0xff]  }
   0x3   :  { %1736 = vmatprep.subr.bf16.mxu1 %v3727_v1  ;;  %1696 = vmatpush1.bf16.msra.mxu0 %v3729_v2  ;;  %v3735_v6 = vld [vmem:[%s5486_s1 + $0x60] ss:$8 sps:$4 sm:$0xff]   ;;  %v3737_v8 = vld [vmem:[%s5486_s1 + $0x54] ss:$8 sps:$4 sm:$0xff]   ;;  %v3741_v10 = vld [vmem:[%s5486_s1 + $0x50] ss:$8 sps:$4 sm:$0xff]   ;;  %v304_v43 = vunpack.c.0.s8 %v303_v38 }
   0x4   :  { %1737 = vmatpush1.bf16.msra.mxu1 %v3730_v3  ;;  %1697 = vmatprep.subr.bf16.mxu0 %v3731_v4  ;;  %v3736_v7 = vld [vmem:[%s5486_s1 + $0x160] ss:$8 sps:$4 sm:$0xff]   ;;  %v3739_v9 = vld [vmem:[%s5486_s1 + $0x154] ss:$8 sps:$4 sm:$0xff]   ;;  %v3742_v11 = vld [vmem:[%s5486_s1 + $0x150] ss:$8 sps:$4 sm:$0xff]  }
   0x5   :  { %1738 = vmatprep.subr.bf16.mxu1 %v3733_v5  ;;  %v3743_v12 = vld [vmem:[%s5486_s1 + $0x44] ss:$8 sps:$4 sm:$0xff]   ;;  %v3747_v14 = vld [vmem:[%s5486_s1 + $0x40] ss:$8 sps:$4 sm:$0xff]   ;;  %v3749_v16 = vld [vmem:[%s5486_s1 + $0x34] ss:$8 sps:$4 sm:$0xff]  }
   0x6   :  { %v3745_v13 = vld [vmem:[%s5486_s1 + $0x144] ss:$8 sps:$4 sm:$0xff]   ;;  %v3748_v15 = vld [vmem:[%s5486_s1 + $0x140] ss:$8 sps:$4 sm:$0xff]   ;;  %v3751_v17 = vld [vmem:[%s5486_s1 + $0x134] ss:$8 sps:$4 sm:$0xff]  }
   0x7   :  { %1698 = vmatpush1.bf16.msra.mxu0 %v3735_v6  ;;  %v3753_v18 = vld [vmem:[%s5486_s1 + $0x30] ss:$8 sps:$4 sm:$0xff]   ;;  %v3755_v20 = vld [vmem:[%s5486_s1 + $0x24] ss:$8 sps:$4 sm:$0xff]   ;;  %v3759_v22 = vld [vmem:[%s5486_s1 + $0x20] ss:$8 sps:$4 sm:$0xff]  }
   0x8   :  { %1739 = vmatpush1.bf16.msra.mxu1 %v3736_v7  ;;  %1699 = vmatprep.subr.bf16.mxu0 %v3737_v8  ;;  %v3754_v19 = vld [vmem:[%s5486_s1 + $0x130] ss:$8 sps:$4 sm:$0xff]   ;;  %v3757_v21 = vld [vmem:[%s5486_s1 + $0x124] ss:$8 sps:$4 sm:$0xff]   ;;  %v3760_v23 = vld [vmem:[%s5486_s1 + $0x120] ss:$8 sps:$4 sm:$0xff]  }
   0x9   :  { %1740 = vmatprep.subr.bf16.mxu1 %v3739_v9  ;;  %v3761_v24 = vld [vmem:[%s5486_s1 + $0x14] ss:$8 sps:$4 sm:$0xff]   ;;  %v3765_v26 = vld [vmem:[%s5486_s1 + $0x10] ss:$8 sps:$4 sm:$0xff]   ;;  %v3767_v28 = vld [vmem:[%s5486_s1 + $0x4] ss:$8 sps:$4 sm:$0xff]  }
   0xa   :  { %v3763_v25 = vld [vmem:[%s5486_s1 + $0x114] ss:$8 sps:$4 sm:$0xff]   ;;  %v3766_v27 = vld [vmem:[%s5486_s1 + $0x110] ss:$8 sps:$4 sm:$0xff]   ;;  %v3769_v29 = vld [vmem:[%s5486_s1 + $0x104] ss:$8 sps:$4 sm:$0xff]  }
   0xb   :  { %1700 = vmatpush1.bf16.msra.mxu0 %v3741_v10  ;;  %v3771_v30 = vld [vmem:[%s5486_s1] ss:$8 sps:$4 sm:$0xff]   ;;  %v3773_v32 = vld [vmem:[%s5486_s1 + $0xf4] ss:$8 sps:$4 sm:$0xff]   ;;  %v3777_v34 = vld [vmem:[%s5486_s1 + $0xf0] ss:$8 sps:$4 sm:$0xff]  }
   0xc   :  { %1741 = vmatpush1.bf16.msra.mxu1 %v3742_v11  ;;  %1701 = vmatprep.subr.bf16.mxu0 %v3743_v12  ;;  %v3772_v31 = vld [vmem:[%s5486_s1 + $0x100] ss:$8 sps:$4 sm:$0xff]   ;;  %v3775_v33 = vld [vmem:[%s5486_s1 + $0x1f4] ss:$8 sps:$4 sm:$0xff]   ;;  %v3778_v35 = vld [vmem:[%s5486_s1 + $0x1f0] ss:$8 sps:$4 sm:$0xff]  }
   0xd   :  { %1742 = vmatprep.subr.bf16.mxu1 %v3745_v13  ;;  %v3779_v39 = vld [vmem:[%s5486_s1 + $0xe4] ss:$8 sps:$4 sm:$0xff]   ;;  %v3783_v41 = vld [vmem:[%s5486_s1 + $0xe0] ss:$8 sps:$4 sm:$0xff]   ;;  %v4324_v42 = vshrl.u32 %v289_v36, 7 }
   0xe   :  { %v3781_v40 = vld [vmem:[%s5486_s1 + $0x1e4] ss:$8 sps:$4 sm:$0xff]   ;;  %v3784_v44 = vld [vmem:[%s5486_s1 + $0x1e0] ss:$8 sps:$4 sm:$0xff]   ;;  %v3785_v45 = vld [vmem:[%s5486_s1 + $0xd4] ss:$8 sps:$4 sm:$0xff]  }
   0xf   :  { %1702 = vmatpush1.bf16.msra.mxu0 %v3747_v14  ;;  %v3787_v46 = vld [vmem:[%s5486_s1 + $0x1d4] ss:$8 sps:$4 sm:$0xff]   ;;  %v3789_v47 = vld [vmem:[%s5486_s1 + $0xd0] ss:$8 sps:$4 sm:$0xff]   ;;  %v4342_v49 = vsub.s32 %v304_v43, %v4324_v42  ;;  %v3791_v50 = vld [vmem:[%s5486_s1 + $0xc4] ss:$8 sps:$4 sm:$0xff]  }
  0x10   :  { %1743 = vmatpush1.bf16.msra.mxu1 %v3748_v15  ;;  %1703 = vmatprep.subr.bf16.mxu0 %v3749_v16  ;;  %v3790_v48 = vld [vmem:[%s5486_s1 + $0x1d0] ss:$8 sps:$4 sm:$0xff]   ;;  %v3793_v51 = vld [vmem:[%s5486_s1 + $0x1c4] ss:$8 sps:$4 sm:$0xff]   ;;  %v3795_v53 = vld [vmem:[%s5486_s1 + $0xc0] ss:$8 sps:$4 sm:$0xff]  }
  0x11   :  { %1744 = vmatprep.subr.bf16.mxu1 %v3751_v17  ;;  %v29_v52 = vld [vmem:[%s5485_s0] sm:$0xff]  ;;  %v3797_v56 = vld [vmem:[%s5486_s1 + $0xb4] ss:$8 sps:$4 sm:$0xff]   ;;  %v3801_v59 = vld [vmem:[%s5486_s1 + $0xb0] ss:$8 sps:$4 sm:$0xff]  }
  0x12   :  { %v308_v54 = vrot.slane %v29_v52, %v4342_v49  ;;  %v3796_v55 = vld [vmem:[%s5486_s1 + $0x1c0] ss:$8 sps:$4 sm:$0xff]   ;;  %v3799_v57 = vld [vmem:[%s5486_s1 + $0x1b4] ss:$8 sps:$4 sm:$0xff]   ;;  %v3802_v61 = vld [vmem:[%s5486_s1 + $0x1b0] ss:$8 sps:$4 sm:$0xff]   ;;  %v301_v1 = vcombine.high %v29_v52, %v29_v52 }
  0x13   :  { %1704 = vmatpush1.bf16.msra.mxu0 %v3753_v18  ;;  %v3803_v62 = vld [vmem:[%s5486_s1 + $0xa4] ss:$8 sps:$4 sm:$0xff]   ;;  %v3807_v2 = vld [vmem:[%s5486_s1 + $0xa0] ss:$8 sps:$4 sm:$0xff]   ;;  %v3809_v4 = vld [vmem:[%s5486_s1 + $0x94] ss:$8 sps:$4 sm:$0xff]  }
  0x14   :  { %1745 = vmatpush1.bf16.msra.mxu1 %v3754_v19  ;;  %1705 = vmatprep.subr.bf16.mxu0 %v3755_v20  ;;  %v316_v58 = vcombine.high %v308_v54, %v308_v54  ;;  %v3805_v63 = vld [vmem:[%s5486_s1 + $0x1a4] ss:$8 sps:$4 sm:$0xff]   ;;  %v3808_v3 = vld [vmem:[%s5486_s1 + $0x1a0] ss:$8 sps:$4 sm:$0xff]   ;;  %v3811_v5 = vld [vmem:[%s5486_s1 + $0x194] ss:$8 sps:$4 sm:$0xff]   ;;  %v4392_v6 = vrot.slane %v301_v1, %v4342_v49  ;;  %v324_v13 = vrot.slane %v308_v54, %v4342_v49 }
  0x15   :  { %1746 = vmatprep.subr.bf16.mxu1 %v3757_v21  ;;  %v3813_v7 = vld [vmem:[%s5486_s1 + $0x90] ss:$8 sps:$4 sm:$0xff]   ;;  %v3815_v9 = vld [vmem:[%s5486_s1 + $0x84] ss:$8 sps:$4 sm:$0xff]   ;;  %v3819_v12 = vld [vmem:[%s5486_s1 + $0x80] ss:$8 sps:$4 sm:$0xff]  }
  0x16   :  { %v338_v60 = vrot.slane %v316_v58, %v4342_v49  ;;  %v3814_v8 = vld [vmem:[%s5486_s1 + $0x190] ss:$8 sps:$4 sm:$0xff]   ;;  %v3817_v10 = vld [vmem:[%s5486_s1 + $0x184] ss:$8 sps:$4 sm:$0xff]   ;;  %v317_v11 = vcombine.high %v4392_v6, %v4392_v6  ;;  %v3820_v14 = vld [vmem:[%s5486_s1 + $0x180] ss:$8 sps:$4 sm:$0xff]   ;;  %v346_v18 = vcombine.high %v324_v13, %v324_v13 }
  0x17   :  { %1706 = vmatpush1.bf16.msra.mxu0 %v3759_v22  ;;  %v3824_v15 = vld [vmem:[%s5486_s1 + $0x274] ss:$8 sps:$4 sm:$0xff]   ;;  %v3822_v19 = vld [vmem:[%s5486_s1 + $0x270] ss:$8 sps:$4 sm:$0xff]   ;;  %v3830_v21 = vld [vmem:[%s5486_s1 + $0x264] ss:$8 sps:$4 sm:$0xff]  }
  0x18   :  { %1747 = vmatpush1.bf16.msra.mxu1 %v3760_v23  ;;  %1707 = vmatprep.subr.bf16.mxu0 %v3761_v24  ;;  %v348_v0 = vcombine.high %v338_v60, %v338_v60  ;;  %v3827_v16 = vld [vmem:[%s5486_s1 + $0x374] ss:$8 sps:$4 sm:$0xff]   ;;  %v345_v17 = vrot.slane %v317_v11, %v4342_v49  ;;  %v3825_v20 = vld [vmem:[%s5486_s1 + $0x370] ss:$8 sps:$4 sm:$0xff]   ;;  %v3833_v22 = vld [vmem:[%s5486_s1 + $0x364] ss:$8 sps:$4 sm:$0xff]  }
  0x19   :  { %1748 = vmatprep.subr.bf16.mxu1 %v3763_v25  ;;  %1727 = vmatprep.mubr.bf16.mxu0 %v338_v60  ;;  %v3828_v24 = vld [vmem:[%s5486_s1 + $0x260] ss:$8 sps:$4 sm:$0xff]   ;;  %v3846_v36 = vld [vmem:[%s5486_s1 + $0x230] ss:$8 sps:$4 sm:$0xff]   ;;  %v3854_v38 = vld [vmem:[%s5486_s1 + $0x224] ss:$8 sps:$4 sm:$0xff]  }
  0x1a   :  { %1768 = vmatprep.mubr.bf16.mxu1 %v348_v0  ;;  %v349_v23 = vcombine.high %v345_v17, %v345_v17  ;;  %v3831_v25 = vld [vmem:[%s5486_s1 + $0x360] ss:$8 sps:$4 sm:$0xff]   ;;  %v3849_v37 = vld [vmem:[%s5486_s1 + $0x330] ss:$8 sps:$4 sm:$0xff]   ;;  %v3860_v43 = vld [vmem:[%s5486_s1 + $0x214] ss:$8 sps:$4 sm:$0xff]  }
  0x1b   :  { %1708 = vmatpush1.bf16.msra.mxu0 %v3765_v26  ;;  %v3836_v26 = vld [vmem:[%s5486_s1 + $0x254] ss:$8 sps:$4 sm:$0xff]   ;;  %v3870_v54 = vld [vmem:[%s5486_s1 + $0x2f0] ss:$8 sps:$4 sm:$0xff]   ;;  %v3876_v58 = vld [vmem:[%s5486_s1 + $0x2e0] ss:$8 sps:$4 sm:$0xff]  }
  0x1c   :  { %1749 = vmatpush1.bf16.msra.mxu1 %v3766_v27  ;;  %1709 = vmatprep.subr.bf16.mxu0 %v3767_v28  ;;  %v3839_v27 = vld [vmem:[%s5486_s1 + $0x354] ss:$8 sps:$4 sm:$0xff]   ;;  %v3834_v28 = vld [vmem:[%s5486_s1 + $0x250] ss:$8 sps:$4 sm:$0xff]   ;;  %v3890_v0 = vld [vmem:[%s5486_s1 + $0x2c4] ss:$8 sps:$4 sm:$0xff]  }
  0x1d   :  { %1750 = vmatprep.subr.bf16.mxu1 %v3769_v29  ;;  %v3837_v29 = vld [vmem:[%s5486_s1 + $0x350] ss:$8 sps:$4 sm:$0xff]   ;;  %v3872_v52 = vld [vmem:[%s5486_s1 + $0x2f4] ss:$8 sps:$4 sm:$0xff]   ;;  %v3893_v1 = vld [vmem:[%s5486_s1 + $0x3c4] ss:$8 sps:$4 sm:$0xff]  }
  0x1e   :  { %v3884_v60 = vld [vmem:[%s5486_s1 + $0x2d4] ss:$8 sps:$4 sm:$0xff]   ;;  %v3900_v11 = vld [vmem:[%s5486_s1 + $0x2a0] ss:$8 sps:$4 sm:$0xff]  }
  0x1f   :  { %1710 = vmatpush1.bf16.msra.mxu0 %v3771_v30  ;;  %v3842_v30 = vld [vmem:[%s5486_s1 + $0x244] ss:$8 sps:$4 sm:$0xff]  }
  0x20   :  { %1751 = vmatpush1.bf16.msra.mxu1 %v3772_v31  ;;  %1711 = vmatprep.subr.bf16.mxu0 %v3773_v32  ;;  %v3845_v31 = vld [vmem:[%s5486_s1 + $0x344] ss:$8 sps:$4 sm:$0xff]   ;;  %v3840_v32 = vld [vmem:[%s5486_s1 + $0x240] ss:$8 sps:$4 sm:$0xff]  }
  0x21   :  { %1752 = vmatprep.subr.bf16.mxu1 %v3775_v33  ;;  %v3843_v33 = vld [vmem:[%s5486_s1 + $0x340] ss:$8 sps:$4 sm:$0xff]  }
  0x23   :  { %1712 = vmatpush2.bf16.msra.mxu0 %v3777_v34  ;;  %v3848_v34 = vld [vmem:[%s5486_s1 + $0x234] ss:$8 sps:$4 sm:$0xff]  }
  0x24   :  { %1753 = vmatpush2.bf16.msra.mxu1 %v3778_v35  ;;  %1713 = vmatprep.subr.bf16.mxu0 %v3779_v39  ;;  %v3851_v35 = vld [vmem:[%s5486_s1 + $0x334] ss:$8 sps:$4 sm:$0xff]   ;;  %v3857_v39 = vld [vmem:[%s5486_s1 + $0x324] ss:$8 sps:$4 sm:$0xff]  }
  0x25   :  { %1754 = vmatprep.subr.bf16.mxu1 %v3781_v40  ;;  %v3852_v40 = vld [vmem:[%s5486_s1 + $0x220] ss:$8 sps:$4 sm:$0xff]  }
  0x27   :  { %1714 = vmatpush2.bf16.msra.mxu0 %v3783_v41  ;;  %v3855_v41 = vld [vmem:[%s5486_s1 + $0x320] ss:$8 sps:$4 sm:$0xff]  }
  0x28   :  { %1755 = vmatpush2.bf16.msra.mxu1 %v3784_v44  ;;  %1715 = vmatprep.subr.bf16.mxu0 %v3785_v45  ;;  %v3863_v44 = vld [vmem:[%s5486_s1 + $0x314] ss:$8 sps:$4 sm:$0xff]   ;;  %v3858_v45 = vld [vmem:[%s5486_s1 + $0x210] ss:$8 sps:$4 sm:$0xff]  }
  0x29   :  { %1756 = vmatprep.subr.bf16.mxu1 %v3787_v46  ;;  %v3861_v46 = vld [vmem:[%s5486_s1 + $0x310] ss:$8 sps:$4 sm:$0xff]  }
  0x2b   :  { %1716 = vmatpush2.bf16.msra.mxu0 %v3789_v47  ;;  %v3866_v47 = vld [vmem:[%s5486_s1 + $0x204] ss:$8 sps:$4 sm:$0xff]  }
  0x2c   :  { %1757 = vmatpush2.bf16.msra.mxu1 %v3790_v48  ;;  %1717 = vmatprep.subr.bf16.mxu0 %v3791_v50  ;;  %v3869_v48 = vld [vmem:[%s5486_s1 + $0x304] ss:$8 sps:$4 sm:$0xff]   ;;  %v3864_v50 = vld [vmem:[%s5486_s1 + $0x200] ss:$8 sps:$4 sm:$0xff]  }
  0x2d   :  { %1758 = vmatprep.subr.bf16.mxu1 %v3793_v51  ;;  %v3867_v51 = vld [vmem:[%s5486_s1 + $0x300] ss:$8 sps:$4 sm:$0xff]  }
  0x2f   :  { %1718 = vmatpush2.bf16.msra.mxu0 %v3795_v53  ;;  %v3875_v53 = vld [vmem:[%s5486_s1 + $0x3f4] ss:$8 sps:$4 sm:$0xff]  }
  0x30   :  { %1759 = vmatpush2.bf16.msra.mxu1 %v3796_v55  ;;  %1719 = vmatprep.subr.bf16.mxu0 %v3797_v56  ;;  %v3873_v55 = vld [vmem:[%s5486_s1 + $0x3f0] ss:$8 sps:$4 sm:$0xff]   ;;  %v3878_v56 = vld [vmem:[%s5486_s1 + $0x2e4] ss:$8 sps:$4 sm:$0xff]  }
  0x31   :  { %1760 = vmatprep.subr.bf16.mxu1 %v3799_v57  ;;  %v3881_v57 = vld [vmem:[%s5486_s1 + $0x3e4] ss:$8 sps:$4 sm:$0xff]  }
  0x33   :  { %1720 = vmatpush2.bf16.msra.mxu0 %v3801_v59  ;;  %v3879_v59 = vld [vmem:[%s5486_s1 + $0x3e0] ss:$8 sps:$4 sm:$0xff]  }
  0x34   :  { %1761 = vmatpush2.bf16.msra.mxu1 %v3802_v61  ;;  %1721 = vmatprep.subr.bf16.mxu0 %v3803_v62  ;;  %v3887_v61 = vld [vmem:[%s5486_s1 + $0x3d4] ss:$8 sps:$4 sm:$0xff]   ;;  %v3882_v62 = vld [vmem:[%s5486_s1 + $0x2d0] ss:$8 sps:$4 sm:$0xff]  }
  0x35   :  { %1762 = vmatprep.subr.bf16.mxu1 %v3805_v63  ;;  %v3885_v63 = vld [vmem:[%s5486_s1 + $0x3d0] ss:$8 sps:$4 sm:$0xff]  }
  0x37   :  { %1722 = vmatpush2.bf16.msra.mxu0 %v3807_v2  ;;  %v3888_v2 = vld [vmem:[%s5486_s1 + $0x2c0] ss:$8 sps:$4 sm:$0xff]  }
  0x38   :  { %1763 = vmatpush2.bf16.msra.mxu1 %v3808_v3  ;;  %1723 = vmatprep.subr.bf16.mxu0 %v3809_v4  ;;  %v3891_v3 = vld [vmem:[%s5486_s1 + $0x3c0] ss:$8 sps:$4 sm:$0xff]   ;;  %v3896_v4 = vld [vmem:[%s5486_s1 + $0x2b4] ss:$8 sps:$4 sm:$0xff]  }
  0x39   :  { %1764 = vmatprep.subr.bf16.mxu1 %v3811_v5  ;;  %v3899_v5 = vld [vmem:[%s5486_s1 + $0x3b4] ss:$8 sps:$4 sm:$0xff]  }
  0x3b   :  { %1724 = vmatpush2.bf16.msra.mxu0 %v3813_v7  ;;  %v3894_v7 = vld [vmem:[%s5486_s1 + $0x2b0] ss:$8 sps:$4 sm:$0xff]  }
  0x3c   :  { %1765 = vmatpush2.bf16.msra.mxu1 %v3814_v8  ;;  %1725 = vmatprep.subr.bf16.mxu0 %v3815_v9  ;;  %v3897_v8 = vld [vmem:[%s5486_s1 + $0x3b0] ss:$8 sps:$4 sm:$0xff]   ;;  %v3902_v9 = vld [vmem:[%s5486_s1 + $0x2a4] ss:$8 sps:$4 sm:$0xff]  }
  0x3d   :  { %1766 = vmatprep.subr.bf16.mxu1 %v3817_v10  ;;  %v3905_v10 = vld [vmem:[%s5486_s1 + $0x3a4] ss:$8 sps:$4 sm:$0xff]  }
  0x3f   :  { %1726 = vmatpush2.bf16.msra.mxu0 %v3819_v12  ;;  %v3903_v12 = vld [vmem:[%s5486_s1 + $0x3a0] ss:$8 sps:$4 sm:$0xff]  }
  0x40   :  { %1767 = vmatpush2.bf16.msra.mxu1 %v3820_v14  ;;  %1777 = vmatprep.subr.bf16.mxu0 %v3824_v15  ;;  %v3911_v14 = vld [vmem:[%s5486_s1 + $0x394] ss:$8 sps:$4 sm:$0xff]   ;;  %v3906_v15 = vld [vmem:[%s5486_s1 + $0x290] ss:$8 sps:$4 sm:$0xff]  }
  0x41   :  { %1818 = vmatprep.subr.bf16.mxu1 %v3827_v16  ;;  %v3909_v16 = vld [vmem:[%s5486_s1 + $0x390] ss:$8 sps:$4 sm:$0xff]  }
  0x42   :  { %1728 = vmatmul.mubr.bf16.vlgmr.msra.gmra.mxu0 %v324_v13  ;;  %v3908_v13 = vld [vmem:[%s5486_s1 + $0x294] ss:$8 sps:$4 sm:$0xff]  }
  0x43   :  { %1769 = vmatmul.mubr.bf16.vlgmr.msra.gmra.mxu1 %v346_v18  ;;  %1778 = vmatpush1.bf16.msra.mxu0 %v3822_v19  ;;  %v3917_v18 = vld [vmem:[%s5486_s1 + $0x384] ss:$8 sps:$4 sm:$0xff]   ;;  %v3912_v19 = vld [vmem:[%s5486_s1 + $0x280] ss:$8 sps:$4 sm:$0xff]  }
  0x44   :  { %1819 = vmatpush1.bf16.msra.mxu1 %v3825_v20  ;;  %1779 = vmatprep.subr.bf16.mxu0 %v3830_v21  ;;  %v331_v20 = vrot.slane %v4392_v6, %v4342_v49  ;;  %v3915_v21 = vld [vmem:[%s5486_s1 + $0x380] ss:$8 sps:$4 sm:$0xff]   ;;  %v3918_v6 = vld [vmem:[%s5486_s1 + $0x470] ss:$8 sps:$4 sm:$0xff]  }
  0x45   :  { %1820 = vmatprep.subr.bf16.mxu1 %v3833_v22  ;;  %1809 = vmatprep.mubr.bf16.mxu0 %v345_v17  ;;  %v3914_v17 = vld [vmem:[%s5486_s1 + $0x284] ss:$8 sps:$4 sm:$0xff]   ;;  %v3920_v22 = vld [vmem:[%s5486_s1 + $0x474] ss:$8 sps:$4 sm:$0xff]  }
  0x46   :  { %1850 = vmatprep.mubr.bf16.mxu1 %v349_v23  ;;  %v3923_v23 = vld [vmem:[%s5486_s1 + $0x574] ss:$8 sps:$4 sm:$0xff]  }
  0x47   :  { %1780 = vmatpush1.bf16.msra.mxu0 %v3828_v24  ;;  %v347_v24 = vcombine.high %v331_v20, %v331_v20 }
  0x48   :  { %1821 = vmatpush1.bf16.msra.mxu1 %v3831_v25  ;;  %1781 = vmatprep.subr.bf16.mxu0 %v3836_v26  ;;  %v3921_v25 = vld [vmem:[%s5486_s1 + $0x570] ss:$8 sps:$4 sm:$0xff]   ;;  %v4625_v26 = vld [vmem:[%s5485_s0 + $0x8] sm:$0xff] }
  0x49   :  { %1822 = vmatprep.subr.bf16.mxu1 %v3839_v27  ;;  %v3926_v27 = vld [vmem:[%s5486_s1 + $0x464] ss:$8 sps:$4 sm:$0xff]  }
  0x4b   :  { %1782 = vmatpush1.bf16.msra.mxu0 %v3834_v28  ;;  %v3929_v28 = vld [vmem:[%s5486_s1 + $0x564] ss:$8 sps:$4 sm:$0xff]  }
  0x4c   :  { %1823 = vmatpush1.bf16.msra.mxu1 %v3837_v29  ;;  %1783 = vmatprep.subr.bf16.mxu0 %v3842_v30  ;;  %v4635_v29 = vrot.slane %v4625_v26, %v4342_v49 }
  0x4d   :  { %1824 = vmatprep.subr.bf16.mxu1 %v3845_v31  ;;  %v3924_v31 = vld [vmem:[%s5486_s1 + $0x460] ss:$8 sps:$4 sm:$0xff]  }
  0x4e   :  { %v365_v30 = vcombine.high %v4635_v29, %v4635_v29 }
  0x4f   :  { %1784 = vmatpush1.bf16.msra.mxu0 %v3840_v32  ;;  %v3927_v32 = vld [vmem:[%s5486_s1 + $0x560] ss:$8 sps:$4 sm:$0xff]  }
  0x50   :  { %1825 = vmatpush1.bf16.msra.mxu1 %v3843_v33  ;;  %1785 = vmatprep.subr.bf16.mxu0 %v3848_v34  ;;  %v3932_v33 = vld [vmem:[%s5486_s1 + $0x454] ss:$8 sps:$4 sm:$0xff]  }
  0x51   :  { %1826 = vmatprep.subr.bf16.mxu1 %v3851_v35  ;;  %v3935_v34 = vld [vmem:[%s5486_s1 + $0x554] ss:$8 sps:$4 sm:$0xff]   ;;  %v387_v35 = vrot.slane %v365_v30, %v4342_v49 }
  0x53   :  { %1786 = vmatpush1.bf16.msra.mxu0 %v3846_v36  ;;  %v397_v36 = vcombine.high %v387_v35, %v387_v35 }
  0x54   :  { %1827 = vmatpush1.bf16.msra.mxu1 %v3849_v37  ;;  %1787 = vmatprep.subr.bf16.mxu0 %v3854_v38  ;;  %v3930_v37 = vld [vmem:[%s5486_s1 + $0x450] ss:$8 sps:$4 sm:$0xff]  }
  0x55   :  { %1828 = vmatprep.subr.bf16.mxu1 %v3857_v39  ;;  %v3933_v38 = vld [vmem:[%s5486_s1 + $0x550] ss:$8 sps:$4 sm:$0xff]   ;;  %v3938_v39 = vld [vmem:[%s5486_s1 + $0x444] ss:$8 sps:$4 sm:$0xff]  }
  0x57   :  { %1788 = vmatpush1.bf16.msra.mxu0 %v3852_v40  ;;  %v3941_v40 = vld [vmem:[%s5486_s1 + $0x544] ss:$8 sps:$4 sm:$0xff]  }
  0x58   :  { %1829 = vmatpush1.bf16.msra.mxu1 %v3855_v41  ;;  %1789 = vmatprep.subr.bf16.mxu0 %v3860_v43  ;;  %v3936_v41 = vld [vmem:[%s5486_s1 + $0x440] ss:$8 sps:$4 sm:$0xff]  }
  0x59   :  { %1830 = vmatprep.subr.bf16.mxu1 %v3863_v44  ;;  %v3939_v43 = vld [vmem:[%s5486_s1 + $0x540] ss:$8 sps:$4 sm:$0xff]   ;;  %v3944_v44 = vld [vmem:[%s5486_s1 + $0x434] ss:$8 sps:$4 sm:$0xff]  }
  0x5b   :  { %1790 = vmatpush1.bf16.msra.mxu0 %v3858_v45  ;;  %v3947_v45 = vld [vmem:[%s5486_s1 + $0x534] ss:$8 sps:$4 sm:$0xff]  }
  0x5c   :  { %1831 = vmatpush1.bf16.msra.mxu1 %v3861_v46  ;;  %1791 = vmatprep.subr.bf16.mxu0 %v3866_v47  ;;  %v3942_v46 = vld [vmem:[%s5486_s1 + $0x430] ss:$8 sps:$4 sm:$0xff]  }
  0x5d   :  { %1832 = vmatprep.subr.bf16.mxu1 %v3869_v48  ;;  %v3945_v47 = vld [vmem:[%s5486_s1 + $0x530] ss:$8 sps:$4 sm:$0xff]   ;;  %v3950_v48 = vld [vmem:[%s5486_s1 + $0x424] ss:$8 sps:$4 sm:$0xff]  }
  0x5f   :  { %1792 = vmatpush1.bf16.msra.mxu0 %v3864_v50  ;;  %v3953_v50 = vld [vmem:[%s5486_s1 + $0x524] ss:$8 sps:$4 sm:$0xff]  }
  0x60   :  { %1833 = vmatpush1.bf16.msra.mxu1 %v3867_v51  ;;  %1793 = vmatprep.subr.bf16.mxu0 %v3872_v52  ;;  %v3948_v51 = vld [vmem:[%s5486_s1 + $0x420] ss:$8 sps:$4 sm:$0xff]  }
  0x61   :  { %1834 = vmatprep.subr.bf16.mxu1 %v3875_v53  ;;  %v3951_v52 = vld [vmem:[%s5486_s1 + $0x520] ss:$8 sps:$4 sm:$0xff]   ;;  %v3956_v53 = vld [vmem:[%s5486_s1 + $0x414] ss:$8 sps:$4 sm:$0xff]  }
  0x63   :  { %1794 = vmatpush2.bf16.msra.mxu0 %v3870_v54  ;;  %v3959_v54 = vld [vmem:[%s5486_s1 + $0x514] ss:$8 sps:$4 sm:$0xff]  }
  0x64   :  { %1835 = vmatpush2.bf16.msra.mxu1 %v3873_v55  ;;  %1795 = vmatprep.subr.bf16.mxu0 %v3878_v56  ;;  %v3954_v55 = vld [vmem:[%s5486_s1 + $0x410] ss:$8 sps:$4 sm:$0xff]  }
  0x65   :  { %1836 = vmatprep.subr.bf16.mxu1 %v3881_v57  ;;  %v3957_v56 = vld [vmem:[%s5486_s1 + $0x510] ss:$8 sps:$4 sm:$0xff]   ;;  %v3962_v57 = vld [vmem:[%s5486_s1 + $0x404] ss:$8 sps:$4 sm:$0xff]  }
  0x67   :  { %1796 = vmatpush2.bf16.msra.mxu0 %v3876_v58  ;;  %v3965_v58 = vld [vmem:[%s5486_s1 + $0x504] ss:$8 sps:$4 sm:$0xff]  }
  0x68   :  { %1837 = vmatpush2.bf16.msra.mxu1 %v3879_v59  ;;  %1797 = vmatprep.subr.bf16.mxu0 %v3884_v60  ;;  %v3960_v59 = vld [vmem:[%s5486_s1 + $0x400] ss:$8 sps:$4 sm:$0xff]  }
  0x69   :  { %1838 = vmatprep.subr.bf16.mxu1 %v3887_v61  ;;  %v3963_v60 = vld [vmem:[%s5486_s1 + $0x500] ss:$8 sps:$4 sm:$0xff]   ;;  %v3968_v61 = vld [vmem:[%s5486_s1 + $0x4f4] ss:$8 sps:$4 sm:$0xff]  }
  0x6b   :  { %1798 = vmatpush2.bf16.msra.mxu0 %v3882_v62  ;;  %v3971_v62 = vld [vmem:[%s5486_s1 + $0x5f4] ss:$8 sps:$4 sm:$0xff]  }
  0x6c   :  { %1839 = vmatpush2.bf16.msra.mxu1 %v3885_v63  ;;  %1799 = vmatprep.subr.bf16.mxu0 %v3890_v0  ;;  %v3966_v63 = vld [vmem:[%s5486_s1 + $0x4f0] ss:$8 sps:$4 sm:$0xff]  }
  0x6d   :  { %1840 = vmatprep.subr.bf16.mxu1 %v3893_v1  ;;  %v3969_v0 = vld [vmem:[%s5486_s1 + $0x5f0] ss:$8 sps:$4 sm:$0xff]   ;;  %v3974_v1 = vld [vmem:[%s5486_s1 + $0x4e4] ss:$8 sps:$4 sm:$0xff]  }
  0x6f   :  { %1800 = vmatpush2.bf16.msra.mxu0 %v3888_v2  ;;  %v3977_v2 = vld [vmem:[%s5486_s1 + $0x5e4] ss:$8 sps:$4 sm:$0xff]  }
  0x70   :  { %1841 = vmatpush2.bf16.msra.mxu1 %v3891_v3  ;;  %1801 = vmatprep.subr.bf16.mxu0 %v3896_v4  ;;  %v3972_v3 = vld [vmem:[%s5486_s1 + $0x4e0] ss:$8 sps:$4 sm:$0xff]  }
  0x71   :  { %1842 = vmatprep.subr.bf16.mxu1 %v3899_v5  ;;  %v3975_v4 = vld [vmem:[%s5486_s1 + $0x5e0] ss:$8 sps:$4 sm:$0xff]   ;;  %v3980_v5 = vld [vmem:[%s5486_s1 + $0x4d4] ss:$8 sps:$4 sm:$0xff]  }
  0x73   :  { %1802 = vmatpush2.bf16.msra.mxu0 %v3894_v7  ;;  %v3983_v7 = vld [vmem:[%s5486_s1 + $0x5d4] ss:$8 sps:$4 sm:$0xff]  }
  0x74   :  { %1843 = vmatpush2.bf16.msra.mxu1 %v3897_v8  ;;  %1803 = vmatprep.subr.bf16.mxu0 %v3902_v9  ;;  %v3978_v8 = vld [vmem:[%s5486_s1 + $0x4d0] ss:$8 sps:$4 sm:$0xff]  }
  0x75   :  { %1844 = vmatprep.subr.bf16.mxu1 %v3905_v10  ;;  %v3981_v9 = vld [vmem:[%s5486_s1 + $0x5d0] ss:$8 sps:$4 sm:$0xff]   ;;  %v3986_v10 = vld [vmem:[%s5486_s1 + $0x4c4] ss:$8 sps:$4 sm:$0xff]  }
  0x77   :  { %1804 = vmatpush2.bf16.msra.mxu0 %v3900_v11  ;;  %v3989_v11 = vld [vmem:[%s5486_s1 + $0x5c4] ss:$8 sps:$4 sm:$0xff]  }
  0x78   :  { %1845 = vmatpush2.bf16.msra.mxu1 %v3903_v12  ;;  %1805 = vmatprep.subr.bf16.mxu0 %v3908_v13 }
  0x79   :  { %1846 = vmatprep.subr.bf16.mxu1 %v3911_v14 }
  0x7b   :  { %1806 = vmatpush2.bf16.msra.mxu0 %v3906_v15 }
  0x7c   :  { %1847 = vmatpush2.bf16.msra.mxu1 %v3909_v16  ;;  %1807 = vmatprep.subr.bf16.mxu0 %v3914_v17 }
  0x7d   :  { %1848 = vmatprep.subr.bf16.mxu1 %v3917_v18 }
  0x7f   :  { %1808 = vmatpush2.bf16.msra.mxu0 %v3912_v19 }
  0x80   :  { %1849 = vmatpush2.bf16.msra.mxu1 %v3915_v21  ;;  %1859 = vmatprep.subr.bf16.mxu0 %v3920_v22 }
  0x81   :  { %1900 = vmatprep.subr.bf16.mxu1 %v3923_v23 }
  0x82   :  { %1810 = vmatmul.mubr.bf16.vlgmr.msra.gmra.mxu0 %v331_v20 }
  0x83   :  { %1851 = vmatmul.mubr.bf16.vlgmr.msra.gmra.mxu1 %v347_v24  ;;  %1860 = vmatpush1.bf16.msra.mxu0 %v3918_v6 }
  0x84   :  { %1901 = vmatpush1.bf16.msra.mxu1 %v3921_v25  ;;  %1861 = vmatprep.subr.bf16.mxu0 %v3926_v27 }
  0x85   :  { %1902 = vmatprep.subr.bf16.mxu1 %v3929_v28  ;;  %1891 = vmatprep.mubr.bf16.mxu0 %v387_v35 }
  0x86   :  { %1932 = vmatprep.mubr.bf16.mxu1 %v397_v36 }
  0x87   :  { %1862 = vmatpush1.bf16.msra.mxu0 %v3924_v31 }
  0x88   :  { %1903 = vmatpush1.bf16.msra.mxu1 %v3927_v32  ;;  %1863 = vmatprep.subr.bf16.mxu0 %v3932_v33 }
  0x89   :  { %1904 = vmatprep.subr.bf16.mxu1 %v3935_v34 }
  0x8b   :  { %1864 = vmatpush1.bf16.msra.mxu0 %v3930_v37 }
  0x8c   :  { %1905 = vmatpush1.bf16.msra.mxu1 %v3933_v38  ;;  %1865 = vmatprep.subr.bf16.mxu0 %v3938_v39 }
  0x8d   :  { %1906 = vmatprep.subr.bf16.mxu1 %v3941_v40 }
  0x8f   :  { %1866 = vmatpush1.bf16.msra.mxu0 %v3936_v41 }
  0x90   :  { %1907 = vmatpush1.bf16.msra.mxu1 %v3939_v43  ;;  %1867 = vmatprep.subr.bf16.mxu0 %v3944_v44 }
  0x91   :  { %1908 = vmatprep.subr.bf16.mxu1 %v3947_v45 }
  0x93   :  { %1868 = vmatpush1.bf16.msra.mxu0 %v3942_v46 }
  0x94   :  { %1909 = vmatpush1.bf16.msra.mxu1 %v3945_v47  ;;  %1869 = vmatprep.subr.bf16.mxu0 %v3950_v48 }
  0x95   :  { %1910 = vmatprep.subr.bf16.mxu1 %v3953_v50 }
  0x97   :  { %1870 = vmatpush1.bf16.msra.mxu0 %v3948_v51 }
  0x98   :  { %1911 = vmatpush1.bf16.msra.mxu1 %v3951_v52  ;;  %1871 = vmatprep.subr.bf16.mxu0 %v3956_v53 }
  0x99   :  { %1912 = vmatprep.subr.bf16.mxu1 %v3959_v54 }
  0x9b   :  { %1872 = vmatpush1.bf16.msra.mxu0 %v3954_v55 }
  0x9c   :  { %1913 = vmatpush1.bf16.msra.mxu1 %v3957_v56  ;;  %1873 = vmatprep.subr.bf16.mxu0 %v3962_v57 }
  0x9d   :  { %1914 = vmatprep.subr.bf16.mxu1 %v3965_v58 }
  0x9f   :  { %1874 = vmatpush1.bf16.msra.mxu0 %v3960_v59 }
  0xa0   :  { %1915 = vmatpush1.bf16.msra.mxu1 %v3963_v60  ;;  %1875 = vmatprep.subr.bf16.mxu0 %v3968_v61 }
  0xa1   :  { %1916 = vmatprep.subr.bf16.mxu1 %v3971_v62 }
  0xa3   :  { %1876 = vmatpush2.bf16.msra.mxu0 %v3966_v63 }
  0xa4   :  { %1917 = vmatpush2.bf16.msra.mxu1 %v3969_v0  ;;  %1877 = vmatprep.subr.bf16.mxu0 %v3974_v1 }
  0xa5   :  { %1918 = vmatprep.subr.bf16.mxu1 %v3977_v2 }
  0xa7   :  { %1878 = vmatpush2.bf16.msra.mxu0 %v3972_v3 }
  0xa8   :  { %1919 = vmatpush2.bf16.msra.mxu1 %v3975_v4  ;;  %1879 = vmatprep.subr.bf16.mxu0 %v3980_v5 }
  0xa9   :  { %1920 = vmatprep.subr.bf16.mxu1 %v3983_v7 }
  0xaa   :  { %15 = vsyncpa [#allocation5], 0  ;;  %v3984_v12 = vld [vmem:[%s5486_s1 + $0x4c0] ss:$8 sps:$4 sm:$0xff]   ;;  %v3992_v14 = vld [vmem:[%s5486_s1 + $0x4b4] ss:$8 sps:$4 sm:$0xff]   ;;  %v350_v20 = vcombine.high %v4625_v26, %v4625_v26  ;;  %v373_v31 = vrot.slane %v4635_v29, %v4342_v49 }
  0xab   :  { %1880 = vmatpush2.bf16.msra.mxu0 %v3978_v8  ;;  %v3987_v13 = vld [vmem:[%s5486_s1 + $0x5c0] ss:$8 sps:$4 sm:$0xff]   ;;  %v3995_v15 = vld [vmem:[%s5486_s1 + $0x5b4] ss:$8 sps:$4 sm:$0xff]   ;;  %v3990_v16 = vld [vmem:[%s5486_s1 + $0x4b0] ss:$8 sps:$4 sm:$0xff]  }
  0xac   :  { %1921 = vmatpush2.bf16.msra.mxu1 %v3981_v9  ;;  %1881 = vmatprep.subr.bf16.mxu0 %v3986_v10  ;;  %v3993_v17 = vld [vmem:[%s5486_s1 + $0x5b0] ss:$8 sps:$4 sm:$0xff]   ;;  %v3998_v18 = vld [vmem:[%s5486_s1 + $0x4a4] ss:$8 sps:$4 sm:$0xff]   ;;  %v3996_v21 = vld [vmem:[%s5486_s1 + $0x4a0] ss:$8 sps:$4 sm:$0xff]   ;;  %v4799_v6 = vrot.slane %v350_v20, %v4342_v49  ;;  %v395_v36 = vcombine.high %v373_v31, %v373_v31 }
  0xad   :  { %1922 = vmatprep.subr.bf16.mxu1 %v3989_v11  ;;  %v4001_v19 = vld [vmem:[%s5486_s1 + $0x5a4] ss:$8 sps:$4 sm:$0xff]   ;;  %v3999_v22 = vld [vmem:[%s5486_s1 + $0x5a0] ss:$8 sps:$4 sm:$0xff]   ;;  %v4004_v23 = vld [vmem:[%s5486_s1 + $0x494] ss:$8 sps:$4 sm:$0xff]  }
  0xae   :  { %v4007_v24 = vld [vmem:[%s5486_s1 + $0x594] ss:$8 sps:$4 sm:$0xff]   ;;  %v4002_v25 = vld [vmem:[%s5486_s1 + $0x490] ss:$8 sps:$4 sm:$0xff]   ;;  %v4010_v27 = vld [vmem:[%s5486_s1 + $0x484] ss:$8 sps:$4 sm:$0xff]   ;;  %v366_v30 = vcombine.high %v4799_v6, %v4799_v6 }
  0xaf   :  { %1882 = vmatpush2.bf16.msra.mxu0 %v3984_v12  ;;  %v4005_v26 = vld [vmem:[%s5486_s1 + $0x590] ss:$8 sps:$4 sm:$0xff]   ;;  %v4013_v28 = vld [vmem:[%s5486_s1 + $0x584] ss:$8 sps:$4 sm:$0xff]   ;;  %v4008_v32 = vld [vmem:[%s5486_s1 + $0x480] ss:$8 sps:$4 sm:$0xff]  }
  0xb0   :  { %1923 = vmatpush2.bf16.msra.mxu1 %v3987_v13  ;;  %1883 = vmatprep.subr.bf16.mxu0 %v3992_v14  ;;  %v4011_v33 = vld [vmem:[%s5486_s1 + $0x580] ss:$8 sps:$4 sm:$0xff]   ;;  %v4016_v34 = vld [vmem:[%s5486_s1 + $0x674] ss:$8 sps:$4 sm:$0xff]   ;;  %v394_v35 = vrot.slane %v366_v30, %v4342_v49  ;;  %v4014_v37 = vld [vmem:[%s5486_s1 + $0x670] ss:$8 sps:$4 sm:$0xff]  }
  0xb1   :  { %1924 = vmatprep.subr.bf16.mxu1 %v3995_v15  ;;  %v4019_v29 = vld [vmem:[%s5486_s1 + $0x774] ss:$8 sps:$4 sm:$0xff]   ;;  %v4017_v38 = vld [vmem:[%s5486_s1 + $0x770] ss:$8 sps:$4 sm:$0xff]   ;;  %v4022_v39 = vld [vmem:[%s5486_s1 + $0x664] ss:$8 sps:$4 sm:$0xff]  }
  0xb2   :  { %v4025_v40 = vld [vmem:[%s5486_s1 + $0x764] ss:$8 sps:$4 sm:$0xff]   ;;  %v398_v41 = vcombine.high %v394_v35, %v394_v35  ;;  %v4020_v43 = vld [vmem:[%s5486_s1 + $0x660] ss:$8 sps:$4 sm:$0xff]   ;;  %v4028_v45 = vld [vmem:[%s5486_s1 + $0x654] ss:$8 sps:$4 sm:$0xff]  }
  0xb3   :  { %1884 = vmatpush2.bf16.msra.mxu0 %v3990_v16  ;;  %v4023_v44 = vld [vmem:[%s5486_s1 + $0x760] ss:$8 sps:$4 sm:$0xff]   ;;  %v4031_v46 = vld [vmem:[%s5486_s1 + $0x754] ss:$8 sps:$4 sm:$0xff]   ;;  %v4026_v47 = vld [vmem:[%s5486_s1 + $0x650] ss:$8 sps:$4 sm:$0xff]  }
  0xb4   :  { %1925 = vmatpush2.bf16.msra.mxu1 %v3993_v17  ;;  %1885 = vmatprep.subr.bf16.mxu0 %v3998_v18  ;;  %v4029_v48 = vld [vmem:[%s5486_s1 + $0x750] ss:$8 sps:$4 sm:$0xff]   ;;  %v4034_v50 = vld [vmem:[%s5486_s1 + $0x644] ss:$8 sps:$4 sm:$0xff]   ;;  %v4032_v52 = vld [vmem:[%s5486_s1 + $0x640] ss:$8 sps:$4 sm:$0xff]  }
  0xb5   :  { %1926 = vmatprep.subr.bf16.mxu1 %v4001_v19  ;;  %v4037_v51 = vld [vmem:[%s5486_s1 + $0x744] ss:$8 sps:$4 sm:$0xff]   ;;  %v4035_v53 = vld [vmem:[%s5486_s1 + $0x740] ss:$8 sps:$4 sm:$0xff]   ;;  %v4040_v54 = vld [vmem:[%s5486_s1 + $0x634] ss:$8 sps:$4 sm:$0xff]  }
  0xb6   :  { %v4043_v55 = vld [vmem:[%s5486_s1 + $0x734] ss:$8 sps:$4 sm:$0xff]   ;;  %v4038_v56 = vld [vmem:[%s5486_s1 + $0x630] ss:$8 sps:$4 sm:$0xff]   ;;  %v4046_v58 = vld [vmem:[%s5486_s1 + $0x624] ss:$8 sps:$4 sm:$0xff]  }
  0xb7   :  { %1886 = vmatpush2.bf16.msra.mxu0 %v3996_v21  ;;  %v4041_v57 = vld [vmem:[%s5486_s1 + $0x730] ss:$8 sps:$4 sm:$0xff]   ;;  %v4049_v59 = vld [vmem:[%s5486_s1 + $0x724] ss:$8 sps:$4 sm:$0xff]   ;;  %v4044_v60 = vld [vmem:[%s5486_s1 + $0x620] ss:$8 sps:$4 sm:$0xff]  }
  0xb8   :  { %1927 = vmatpush2.bf16.msra.mxu1 %v3999_v22  ;;  %1887 = vmatprep.subr.bf16.mxu0 %v4004_v23  ;;  %v4047_v61 = vld [vmem:[%s5486_s1 + $0x720] ss:$8 sps:$4 sm:$0xff]   ;;  %v4052_v62 = vld [vmem:[%s5486_s1 + $0x614] ss:$8 sps:$4 sm:$0xff]   ;;  %v4050_v0 = vld [vmem:[%s5486_s1 + $0x610] ss:$8 sps:$4 sm:$0xff]  }
  0xb9   :  { %1928 = vmatprep.subr.bf16.mxu1 %v4007_v24  ;;  %v4055_v63 = vld [vmem:[%s5486_s1 + $0x714] ss:$8 sps:$4 sm:$0xff]   ;;  %v4053_v1 = vld [vmem:[%s5486_s1 + $0x710] ss:$8 sps:$4 sm:$0xff]   ;;  %v4058_v2 = vld [vmem:[%s5486_s1 + $0x604] ss:$8 sps:$4 sm:$0xff]  }
  0xba   :  { %v4061_v3 = vld [vmem:[%s5486_s1 + $0x704] ss:$8 sps:$4 sm:$0xff]   ;;  %v4056_v4 = vld [vmem:[%s5486_s1 + $0x600] ss:$8 sps:$4 sm:$0xff]   ;;  %v4064_v7 = vld [vmem:[%s5486_s1 + $0x6f4] ss:$8 sps:$4 sm:$0xff]  }
  0xbb   :  { %1888 = vmatpush2.bf16.msra.mxu0 %v4002_v25  ;;  %v4059_v5 = vld [vmem:[%s5486_s1 + $0x700] ss:$8 sps:$4 sm:$0xff]   ;;  %v4067_v8 = vld [vmem:[%s5486_s1 + $0x7f4] ss:$8 sps:$4 sm:$0xff]   ;;  %v4062_v9 = vld [vmem:[%s5486_s1 + $0x6f0] ss:$8 sps:$4 sm:$0xff]  }
  0xbc   :  { %1929 = vmatpush2.bf16.msra.mxu1 %v4005_v26  ;;  %1889 = vmatprep.subr.bf16.mxu0 %v4010_v27  ;;  %v4065_v10 = vld [vmem:[%s5486_s1 + $0x7f0] ss:$8 sps:$4 sm:$0xff]   ;;  %v4070_v11 = vld [vmem:[%s5486_s1 + $0x6e4] ss:$8 sps:$4 sm:$0xff]   ;;  %v4068_v13 = vld [vmem:[%s5486_s1 + $0x6e0] ss:$8 sps:$4 sm:$0xff]  }
  0xbd   :  { %1930 = vmatprep.subr.bf16.mxu1 %v4013_v28  ;;  %v4073_v12 = vld [vmem:[%s5486_s1 + $0x7e4] ss:$8 sps:$4 sm:$0xff]   ;;  %v4071_v14 = vld [vmem:[%s5486_s1 + $0x7e0] ss:$8 sps:$4 sm:$0xff]   ;;  %v4076_v15 = vld [vmem:[%s5486_s1 + $0x6d4] ss:$8 sps:$4 sm:$0xff]  }
  0xbe   :  { %v4079_v16 = vld [vmem:[%s5486_s1 + $0x7d4] ss:$8 sps:$4 sm:$0xff]   ;;  %v4074_v17 = vld [vmem:[%s5486_s1 + $0x6d0] ss:$8 sps:$4 sm:$0xff]   ;;  %v4082_v19 = vld [vmem:[%s5486_s1 + $0x6c4] ss:$8 sps:$4 sm:$0xff]  }
  0xbf   :  { %1890 = vmatpush2.bf16.msra.mxu0 %v4008_v32  ;;  %v4077_v18 = vld [vmem:[%s5486_s1 + $0x7d0] ss:$8 sps:$4 sm:$0xff]   ;;  %v4085_v20 = vld [vmem:[%s5486_s1 + $0x7c4] ss:$8 sps:$4 sm:$0xff]   ;;  %v4080_v21 = vld [vmem:[%s5486_s1 + $0x6c0] ss:$8 sps:$4 sm:$0xff]  }
  0xc0   :  { %1931 = vmatpush2.bf16.msra.mxu1 %v4011_v33  ;;  %1941 = vmatprep.subr.bf16.mxu0 %v4016_v34  ;;  %v4083_v22 = vld [vmem:[%s5486_s1 + $0x7c0] ss:$8 sps:$4 sm:$0xff]   ;;  %v4088_v23 = vld [vmem:[%s5486_s1 + $0x6b4] ss:$8 sps:$4 sm:$0xff]   ;;  %v4086_v25 = vld [vmem:[%s5486_s1 + $0x6b0] ss:$8 sps:$4 sm:$0xff]  }
  0xc1   :  { %1982 = vmatprep.subr.bf16.mxu1 %v4019_v29  ;;  %v4091_v24 = vld [vmem:[%s5486_s1 + $0x7b4] ss:$8 sps:$4 sm:$0xff]   ;;  %v4089_v26 = vld [vmem:[%s5486_s1 + $0x7b0] ss:$8 sps:$4 sm:$0xff]   ;;  %v4094_v27 = vld [vmem:[%s5486_s1 + $0x6a4] ss:$8 sps:$4 sm:$0xff]  }
  0xc2   :  { %1892 = vmatmul.mubr.bf16.vlgmr.msra.gmra.mxu0 %v373_v31  ;;  %v4097_v28 = vld [vmem:[%s5486_s1 + $0x7a4] ss:$8 sps:$4 sm:$0xff]   ;;  %v4092_v30 = vld [vmem:[%s5486_s1 + $0x6a0] ss:$8 sps:$4 sm:$0xff]   ;;  %v4100_v32 = vld [vmem:[%s5486_s1 + $0x694] ss:$8 sps:$4 sm:$0xff]  }
  0xc3   :  { %1933 = vmatmul.mubr.bf16.vlgmr.msra.gmra.mxu1 %v395_v36  ;;  %1942 = vmatpush1.bf16.msra.mxu0 %v4014_v37  ;;  %v4095_v31 = vld [vmem:[%s5486_s1 + $0x7a0] ss:$8 sps:$4 sm:$0xff]   ;;  %v4103_v33 = vld [vmem:[%s5486_s1 + $0x794] ss:$8 sps:$4 sm:$0xff]   ;;  %v4098_v34 = vld [vmem:[%s5486_s1 + $0x690] ss:$8 sps:$4 sm:$0xff]   ;;  %v380_v37 = vrot.slane %v4799_v6, %v4342_v49 }
  0xc4   :  { %1983 = vmatpush1.bf16.msra.mxu1 %v4017_v38  ;;  %1943 = vmatprep.subr.bf16.mxu0 %v4022_v39  ;;  %v4101_v29 = vld [vmem:[%s5486_s1 + $0x790] ss:$8 sps:$4 sm:$0xff]   ;;  %v4109_v36 = vld [vmem:[%s5486_s1 + $0x784] ss:$8 sps:$4 sm:$0xff]   ;;  %v4104_v38 = vld [vmem:[%s5486_s1 + $0x680] ss:$8 sps:$4 sm:$0xff]  }
  0xc5   :  { %1984 = vmatprep.subr.bf16.mxu1 %v4025_v40  ;;  %1973 = vmatprep.mubr.bf16.mxu0 %v394_v35  ;;  %v4106_v35 = vld [vmem:[%s5486_s1 + $0x684] ss:$8 sps:$4 sm:$0xff]   ;;  %v4107_v39 = vld [vmem:[%s5486_s1 + $0x780] ss:$8 sps:$4 sm:$0xff]   ;;  %v5019_v40 = vsub.s32 0, %v4324_v42  ;;  %v5025_v49 = vsub.s32 1, %v4324_v42  ;;  %v396_v6 = vcombine.high %v380_v37, %v380_v37 }
  0xc6   :  { %2014 = vmatprep.mubr.bf16.mxu1 %v398_v41  ;;  %v287_v41 = vld [vmem:[%s5487_s2] sm:$0x3]  ;;  %s4160_s28 = smov [#allocation4]  }
  0xc7   :  { %1944 = vmatpush1.bf16.msra.mxu0 %v4020_v43  ;;  %v292_v43 = vrot.slane %v287_v41, %v5019_v40  ;;  %s3320_s29 = sshll.u32 %s4160_s28, 4  ;;  %s3321_s29 = int_to_ptr.vmem [resolvable:$true] %s3320_s29 }
  0xc8   :  { %1985 = vmatpush1.bf16.msra.mxu1 %v4023_v44  ;;  %1945 = vmatprep.subr.bf16.mxu0 %v4028_v45  ;;  %v296_v44 = vrot.slane %v287_v41, %v5025_v49  ;;  %v2088_v41 = vld [vmem:[%s5489_s4 + $0x1c0] sm:$0xff] }
  0xc9   :  { %1986 = vmatprep.subr.bf16.mxu1 %v4031_v46 }
  0xcb   :  { %1946 = vmatpush1.bf16.msra.mxu0 %v4026_v47 }
  0xcc   :  { %1987 = vmatpush1.bf16.msra.mxu1 %v4029_v48  ;;  %1947 = vmatprep.subr.bf16.mxu0 %v4034_v50 }
  0xcd   :  { %1988 = vmatprep.subr.bf16.mxu1 %v4037_v51 }
  0xcf   :  { %1948 = vmatpush1.bf16.msra.mxu0 %v4032_v52 }
  0xd0   :  { %1989 = vmatpush1.bf16.msra.mxu1 %v4035_v53  ;;  %1949 = vmatprep.subr.bf16.mxu0 %v4040_v54 }
  0xd1   :  { %1990 = vmatprep.subr.bf16.mxu1 %v4043_v55 }
  0xd3   :  { %1950 = vmatpush1.bf16.msra.mxu0 %v4038_v56 }
  0xd4   :  { %1991 = vmatpush1.bf16.msra.mxu1 %v4041_v57  ;;  %1951 = vmatprep.subr.bf16.mxu0 %v4046_v58  ;;  %v2144_v58 = vld [vmem:[%s5489_s4 + $0x380] sm:$0xff] }
  0xd5   :  { %1992 = vmatprep.subr.bf16.mxu1 %v4049_v59  ;;  %v2152_v59 = vld [vmem:[%s5489_s4 + $0x3c0] sm:$0xff] }
  0xd7   :  { %1952 = vmatpush1.bf16.msra.mxu0 %v4044_v60  ;;  %v2145_v60 = vld [vmem:[%s5489_s4 + $0x388] sm:$0xff] }
  0xd8   :  { %1993 = vmatpush1.bf16.msra.mxu1 %v4047_v61  ;;  %1953 = vmatprep.subr.bf16.mxu0 %v4052_v62  ;;  %v3704_v61 = vcombine.low %v2144_v58, %v2152_v59  ;;  %v3705_v62 = vcombine.high %v2144_v58, %v2152_v59  ;;  %v2056_v58 = vld [vmem:[%s5489_s4 + $0xc0] sm:$0xff]  ;;  %v2049_v59 = vld [vmem:[%s5489_s4 + $0x88] sm:$0xff] }
  0xd9   :  { %1994 = vmatprep.subr.bf16.mxu1 %v4055_v63  ;;  %v2153_v63 = vld [vmem:[%s5489_s4 + $0x3c8] sm:$0xff] }
  0xdb   :  { %1954 = vmatpush1.bf16.msra.mxu0 %v4050_v0  ;;  %v3706_v0 = vcombine.low %v2145_v60, %v2153_v63 }
  0xdc   :  { %1995 = vmatpush1.bf16.msra.mxu1 %v4053_v1  ;;  %1955 = vmatprep.subr.bf16.mxu0 %v4058_v2  ;;  %v3707_v1 = vcombine.high %v2145_v60, %v2153_v63  ;;  %v2128_v2 = vld [vmem:[%s5489_s4 + $0x300] sm:$0xff] }
  0xdd   :  { %1996 = vmatprep.subr.bf16.mxu1 %v4061_v3  ;;  %v2136_v3 = vld [vmem:[%s5489_s4 + $0x340] sm:$0xff] }
  0xdf   :  { %1956 = vmatpush1.bf16.msra.mxu0 %v4056_v4  ;;  %v2129_v4 = vld [vmem:[%s5489_s4 + $0x308] sm:$0xff] }
  0xe0   :  { %1997 = vmatpush1.bf16.msra.mxu1 %v4059_v5  ;;  %1957 = vmatprep.subr.bf16.mxu0 %v4064_v7 }
  0xe1   :  { %1998 = vmatprep.subr.bf16.mxu1 %v4067_v8  ;;  %v3689_v8 = vcombine.high %v2128_v2, %v2136_v3 }
  0xe3   :  { %1958 = vmatpush2.bf16.msra.mxu0 %v4062_v9  ;;  %v2137_v9 = vld [vmem:[%s5489_s4 + $0x348] sm:$0xff] }
  0xe4   :  { %1999 = vmatpush2.bf16.msra.mxu1 %v4065_v10  ;;  %1959 = vmatprep.subr.bf16.mxu0 %v4070_v11  ;;  %v3688_v11 = vcombine.low %v2128_v2, %v2136_v3  ;;  %v2040_v2 = vld [vmem:[%s5489_s4 + $0x40] sm:$0xff]  ;;  %v2033_v3 = vld [vmem:[%s5489_s4 + $0x8] sm:$0xff] }
  0xe5   :  { %2000 = vmatprep.subr.bf16.mxu1 %v4073_v12  ;;  %v3690_v12 = vcombine.low %v2129_v4, %v2137_v9 }
  0xe7   :  { %1960 = vmatpush2.bf16.msra.mxu0 %v4068_v13  ;;  %v3691_v13 = vcombine.high %v2129_v4, %v2137_v9 }
  0xe8   :  { %2001 = vmatpush2.bf16.msra.mxu1 %v4071_v14  ;;  %1961 = vmatprep.subr.bf16.mxu0 %v4076_v15 }
  0xe9   :  { %2002 = vmatprep.subr.bf16.mxu1 %v4079_v16 }
  0xeb   :  { %1962 = vmatpush2.bf16.msra.mxu0 %v4074_v17 }
  0xec   :  { %2003 = vmatpush2.bf16.msra.mxu1 %v4077_v18  ;;  %1963 = vmatprep.subr.bf16.mxu0 %v4082_v19  ;;  %v2112_v18 = vld [vmem:[%s5489_s4 + $0x280] sm:$0xff] }
  0xed   :  { %2004 = vmatprep.subr.bf16.mxu1 %v4085_v20  ;;  %v2120_v19 = vld [vmem:[%s5489_s4 + $0x2c0] sm:$0xff]  ;;  %v2113_v20 = vld [vmem:[%s5489_s4 + $0x288] sm:$0xff] }
  0xef   :  { %1964 = vmatpush2.bf16.msra.mxu0 %v4080_v21 }
  0xf0   :  { %2005 = vmatpush2.bf16.msra.mxu1 %v4083_v22  ;;  %1965 = vmatprep.subr.bf16.mxu0 %v4088_v23  ;;  %v3673_v23 = vcombine.high %v2112_v18, %v2120_v19 }
  0xf1   :  { %2006 = vmatprep.subr.bf16.mxu1 %v4091_v24  ;;  %v2121_v24 = vld [vmem:[%s5489_s4 + $0x2c8] sm:$0xff] }
  0xf3   :  { %1966 = vmatpush2.bf16.msra.mxu0 %v4086_v25 }
  0xf4   :  { %2007 = vmatpush2.bf16.msra.mxu1 %v4089_v26  ;;  %1967 = vmatprep.subr.bf16.mxu0 %v4094_v27  ;;  %v3672_v26 = vcombine.low %v2112_v18, %v2120_v19  ;;  %v3674_v27 = vcombine.low %v2113_v20, %v2121_v24  ;;  %v4158_v19 = vmov 0  }
  0xf5   :  { %2008 = vmatprep.subr.bf16.mxu1 %v4097_v28  ;;  %v3675_v28 = vcombine.high %v2113_v20, %v2121_v24 }
  0xf7   :  { %1968 = vmatpush2.bf16.msra.mxu0 %v4092_v30 }
  0xf8   :  { %2009 = vmatpush2.bf16.msra.mxu1 %v4095_v31  ;;  %1969 = vmatprep.subr.bf16.mxu0 %v4100_v32  ;;  %v2096_v32 = vld [vmem:[%s5489_s4 + $0x200] sm:$0xff] }
  0xf9   :  { %2010 = vmatprep.subr.bf16.mxu1 %v4103_v33  ;;  %v2104_v33 = vld [vmem:[%s5489_s4 + $0x240] sm:$0xff] }
  0xfb   :  { %1970 = vmatpush2.bf16.msra.mxu0 %v4098_v34  ;;  %v2097_v34 = vld [vmem:[%s5489_s4 + $0x208] sm:$0xff] }
  0xfc   :  { %2011 = vmatpush2.bf16.msra.mxu1 %v4101_v29  ;;  %1971 = vmatprep.subr.bf16.mxu0 %v4106_v35  ;;  %v3657_v29 = vcombine.high %v2096_v32, %v2104_v33  ;;  %v2105_v35 = vld [vmem:[%s5489_s4 + $0x248] sm:$0xff] }
  0xfd   :  { %2012 = vmatprep.subr.bf16.mxu1 %v4109_v36  ;;  %v3656_v36 = vcombine.low %v2096_v32, %v2104_v33 }
  0xff   :  { %1972 = vmatpush2.bf16.msra.mxu0 %v4104_v38  ;;  %v3659_v38 = vcombine.high %v2097_v34, %v2105_v35 }
 0x100   :  { %2013 = vmatpush2.bf16.msra.mxu1 %v4107_v39  ;;  %2884 = vmatprep.subr.bf16.mxu0 %v3705_v62  ;;  %v2080_v39 = vld [vmem:[%s5489_s4 + $0x180] sm:$0xff] }
 0x101   :  { %2925 = vmatprep.subr.bf16.mxu1 %v3707_v1  ;;  %v2032_v1 = vld [vmem:[%s5489_s4] sm:$0xff] }
 0x102   :  { %v1729_v45 = vpop.f32.mrf.mxu0  ;;  %1974 = vmatmul.mubr.bf16.vlgmr.msra.gmra.mxu0 %v380_v37  ;;  %v3658_v37 = vcombine.low %v2097_v34, %v2105_v35  ;;  %v3593_v4 = vcombine.high %v2032_v1, %v2040_v2 }
 0x103   :  { %v1770_v46 = vpop.f32.mrf.mxu1  ;;  %2015 = vmatmul.mubr.bf16.vlgmr.msra.gmra.mxu1 %v396_v6  ;;  %v1730_v47 = vadd.f32 %v1729_v45, %v292_v43  ;;  %2885 = vmatpush1.bf16.msra.mxu0 %v3704_v61  ;;  %v2081_v6 = vld [vmem:[%s5489_s4 + $0x188] sm:$0xff]  ;;  %v3641_v43 = vcombine.high %v2080_v39, %v2088_v41  ;;  %v3640_v45 = vcombine.low %v2080_v39, %v2088_v41 }
 0x104   :  { %v1731_v48 = vpop.f32.mrf.mxu0  ;;  %2926 = vmatpush1.bf16.msra.mxu1 %v3706_v0  ;;  %2886 = vmatprep.subr.bf16.mxu0 %v3689_v8  ;;  %v2057_v61 = vld [vmem:[%s5489_s4 + $0xc8] sm:$0xff] }
 0x105   :  { %v1772_v50 = vpop.f32.mrf.mxu1  ;;  %v1771_v51 = vadd.f32 %v1770_v46, %v1730_v47  ;;  %v1732_v52 = vadd.f32 %v1731_v48, %v296_v44  ;;  %2927 = vmatprep.subr.bf16.mxu1 %v3691_v13  ;;  %v2089_v44 = vld [vmem:[%s5489_s4 + $0x1c8] sm:$0xff]  ;;  %v2064_v48 = vld [vmem:[%s5489_s4 + $0x100] sm:$0xff]  ;;  %v3610_v63 = vcombine.low %v2049_v59, %v2057_v61  ;;  %v3611_v0 = vcombine.high %v2049_v59, %v2057_v61  ;;  %v2122_v59 = vld [vmem:[%s5489_s4 + $0x2d0] sm:$0xff] }
 0x106   :  { %v1733_v53 = vpop.f32.mrf.mxu0  ;;  %v3642_v46 = vcombine.low %v2081_v6, %v2089_v44  ;;  %v3643_v47 = vcombine.high %v2081_v6, %v2089_v44  ;;  %2916 = vmatprep.mubr.bf16.mxu0 %v4158_v19  ;;  %2957 = vmatprep.mubr.bf16.mxu1 %v4158_v19  ;;  %v2123_v61 = vld [vmem:[%s5489_s4 + $0x2d8] sm:$0xff] }
 0x107   :  { %v1774_v54 = vpop.f32.mrf.mxu1  ;;  %v1773_v55 = vadd.f32 %v1772_v50, %v1732_v52  ;;  %2887 = vmatpush1.bf16.msra.mxu0 %v3688_v11  ;;  %v2072_v50 = vld [vmem:[%s5489_s4 + $0x140] sm:$0xff]  ;;  %v2073_v53 = vld [vmem:[%s5489_s4 + $0x148] sm:$0xff]  ;;  %v2154_v11 = vld [vmem:[%s5489_s4 + $0x3d0] sm:$0xff] }
 0x108   :  { %v1734_v56 = vpop.f32.mrf.mxu0  ;;  %2928 = vmatpush1.bf16.msra.mxu1 %v3690_v12  ;;  %2888 = vmatprep.subr.bf16.mxu0 %v3673_v23  ;;  %v3625_v52 = vcombine.high %v2064_v48, %v2072_v50  ;;  %v3624_v54 = vcombine.low %v2064_v48, %v2072_v50  ;;  %v2147_v12 = vld [vmem:[%s5489_s4 + $0x398] sm:$0xff]  ;;  %v2130_v50 = vld [vmem:[%s5489_s4 + $0x310] sm:$0xff] }
 0x109   :  { %v1775_v57 = vpop.f32.mrf.mxu1  ;;  %2929 = vmatprep.subr.bf16.mxu1 %v3675_v28 }
 0x10a   :  { %v2048_v57 = vld [vmem:[%s5489_s4 + $0x80] sm:$0xff] }
 0x10b   :  { %2889 = vmatpush1.bf16.msra.mxu0 %v3672_v26  ;;  %v3609_v60 = vcombine.high %v2048_v57, %v2056_v58  ;;  %v3608_v62 = vcombine.low %v2048_v57, %v2056_v58  ;;  %v2114_v58 = vld [vmem:[%s5489_s4 + $0x290] sm:$0xff] }
 0x10c   :  { %2930 = vmatpush1.bf16.msra.mxu1 %v3674_v27  ;;  %2890 = vmatprep.subr.bf16.mxu0 %v3657_v29 }
 0x10d   :  { %2931 = vmatprep.subr.bf16.mxu1 %v3659_v38 }
 0x10f   :  { %2891 = vmatpush1.bf16.msra.mxu0 %v3656_v36 }
 0x110   :  { %2932 = vmatpush1.bf16.msra.mxu1 %v3658_v37  ;;  %2892 = vmatprep.subr.bf16.mxu0 %v3641_v43 }
 0x111   :  { %2933 = vmatprep.subr.bf16.mxu1 %v3643_v47 }
 0x113   :  { %2893 = vmatpush1.bf16.msra.mxu0 %v3640_v45 }
 0x114   :  { %2934 = vmatpush1.bf16.msra.mxu1 %v3642_v46  ;;  %2894 = vmatprep.subr.bf16.mxu0 %v3625_v52  ;;  %v2131_v52 = vld [vmem:[%s5489_s4 + $0x318] sm:$0xff] }
 0x117   :  { %2895 = vmatpush1.bf16.msra.mxu0 %v3624_v54 }
 0x118   :  { %2896 = vmatprep.subr.bf16.mxu0 %v3609_v60  ;;  %v2115_v60 = vld [vmem:[%s5489_s4 + $0x298] sm:$0xff] }
 0x11b   :  { %2897 = vmatpush1.bf16.msra.mxu0 %v3608_v62 }
 0x11c   :  { %2898 = vmatprep.subr.bf16.mxu0 %v3593_v4  ;;  %v2099_v4 = vld [vmem:[%s5489_s4 + $0x218] sm:$0xff] }
 0x142   :  { %v1811_v5 = vpop.f32.mrf.mxu0 }
 0x143   :  { %v1852_v7 = vpop.f32.mrf.mxu1  ;;  %v1812_v10 = vadd.f32 %v1811_v5, %v1771_v51  ;;  %v2065_v51 = vld [vmem:[%s5489_s4 + $0x108] sm:$0xff] }
 0x144   :  { %v1813_v14 = vpop.f32.mrf.mxu0  ;;  %v3627_v56 = vcombine.high %v2065_v51, %v2073_v53  ;;  %v2041_v5 = vld [vmem:[%s5489_s4 + $0x48] sm:$0xff] }
 0x145   :  { %v1854_v15 = vpop.f32.mrf.mxu1  ;;  %v5053_v16 = vadd.f32 %v1852_v7, %v1812_v10  ;;  %v1814_v17 = vadd.f32 %v1813_v14, %v1773_v55  ;;  %v3626_v55 = vcombine.low %v2065_v51, %v2073_v53  ;;  %v3592_v7 = vcombine.low %v2032_v1, %v2040_v2  ;;  %v2146_v10 = vld [vmem:[%s5489_s4 + $0x390] sm:$0xff]  ;;  %v2155_v14 = vld [vmem:[%s5489_s4 + $0x3d8] sm:$0xff] }
 0x146   :  { %v1815_v21 = vpop.f32.mrf.mxu0  ;;  %2935 = vmatprep.subr.bf16.mxu1 %v3627_v56  ;;  %v3594_v8 = vcombine.low %v2033_v3, %v2041_v5  ;;  %v3595_v9 = vcombine.high %v2033_v3, %v2041_v5  ;;  %v3709_v13 = vcombine.high %v2146_v10, %v2154_v11  ;;  %v3711_v18 = vcombine.high %v2147_v12, %v2155_v14  ;;  %v2138_v51 = vld [vmem:[%s5489_s4 + $0x350] sm:$0xff]  ;;  %v2139_v53 = vld [vmem:[%s5489_s4 + $0x358] sm:$0xff] }
 0x147   :  { %v1856_v22 = vpop.f32.mrf.mxu1  ;;  %v5067_v25 = vadd.f32 %v1854_v15, %v1814_v17  ;;  %2936 = vmatpush1.bf16.msra.mxu1 %v3626_v55  ;;  %2899 = vmatpush1.bf16.msra.mxu0 %v3592_v7  ;;  %v3708_v15 = vcombine.low %v2146_v10, %v2154_v11  ;;  %v3710_v17 = vcombine.low %v2147_v12, %v2155_v14  ;;  %v2098_v2 = vld [vmem:[%s5489_s4 + $0x210] sm:$0xff]  ;;  %v2107_v5 = vld [vmem:[%s5489_s4 + $0x258] sm:$0xff] }
 0x148   :  { %v1816_v30 = vpop.f32.mrf.mxu0  ;;  %2937 = vmatprep.subr.bf16.mxu1 %v3611_v0  ;;  %2966 = vmatprep.subr.bf16.mxu0 %v3709_v13  ;;  %v3693_v56 = vcombine.high %v2130_v50, %v2138_v51  ;;  %v3695_v57 = vcombine.high %v2131_v52, %v2139_v53  ;;  %v3692_v62 = vcombine.low %v2130_v50, %v2138_v51  ;;  %v2106_v3 = vld [vmem:[%s5489_s4 + $0x250] sm:$0xff]  ;;  %v2083_v13 = vld [vmem:[%s5489_s4 + $0x198] sm:$0xff] }
 0x149   :  { %v1857_v31 = vpop.f32.mrf.mxu1  ;;  %v3677_v0 = vcombine.high %v2114_v58, %v2122_v59  ;;  %v3679_v1 = vcombine.high %v2115_v60, %v2123_v61  ;;  %v3676_v7 = vcombine.low %v2114_v58, %v2122_v59  ;;  %v3663_v10 = vcombine.high %v2099_v4, %v2107_v5  ;;  %v2082_v11 = vld [vmem:[%s5489_s4 + $0x190] sm:$0xff]  ;;  %v2091_v14 = vld [vmem:[%s5489_s4 + $0x1d8] sm:$0xff]  ;;  %v2141_v58 = vld [vmem:[%s5489_s4 + $0x368] sm:$0xff] }
 0x14a   :  { %v2090_v12 = vld [vmem:[%s5489_s4 + $0x1d0] sm:$0xff] }
 0x14b   :  { %2938 = vmatpush1.bf16.msra.mxu1 %v3610_v63  ;;  %v3694_v63 = vcombine.low %v2131_v52, %v2139_v53 }
 0x14c   :  { %2939 = vmatprep.subr.bf16.mxu1 %v3595_v9  ;;  %v3661_v9 = vcombine.high %v2098_v2, %v2106_v3 }
 0x14f   :  { %2940 = vmatpush1.bf16.msra.mxu1 %v3594_v8  ;;  %v3678_v8 = vcombine.low %v2115_v60, %v2123_v61 }
 0x150   :  { %3007 = vmatprep.subr.bf16.mxu1 %v3711_v18  ;;  %v3645_v18 = vcombine.high %v2082_v11, %v2090_v12 }
 0x182   :  { %v1893_v20 = vpop.f32.mrf.mxu0 }
 0x183   :  { %v1934_v21 = vpop.f32.mrf.mxu1  ;;  %v1894_v30 = vadd.f32 %v1893_v20, %v5053_v16  ;;  %v3647_v20 = vcombine.high %v2083_v13, %v2091_v14 }
 0x184   :  { %v1895_v22 = vpop.f32.mrf.mxu0 }
 0x185   :  { %v1936_v23 = vpop.f32.mrf.mxu1  ;;  %v1896_v31 = vadd.f32 %v1895_v22, %v5067_v25  ;;  %v1935_v32 = vadd.f32 %v1934_v21, %v1894_v30  ;;  %v2025_v25 = vld [vmem:[%s5488_s3] sm:$0x3]  ;;  %v2066_v21 = vld [vmem:[%s5489_s4 + $0x110] sm:$0xff] }
 0x186   :  { %v1897_v24 = vpop.f32.mrf.mxu0  ;;  %v2074_v22 = vld [vmem:[%s5489_s4 + $0x150] sm:$0xff] }
 0x187   :  { %v1938_v26 = vpop.f32.mrf.mxu1  ;;  %v1937_v29 = vadd.f32 %v1936_v23, %v1896_v31  ;;  %v2067_v23 = vld [vmem:[%s5489_s4 + $0x118] sm:$0xff]  ;;  %v2050_v31 = vld [vmem:[%s5489_s4 + $0x90] sm:$0xff] }
 0x188   :  { %v1898_v27 = vpop.f32.mrf.mxu0  ;;  %v2075_v24 = vld [vmem:[%s5489_s4 + $0x158] sm:$0xff]  ;;  %v3644_v26 = vcombine.low %v2082_v11, %v2090_v12  ;;  %v2109_v11 = vld [vmem:[%s5489_s4 + $0x268] sm:$0xff] }
 0x189   :  { %v1939_v28 = vpop.f32.mrf.mxu1  ;;  %v3646_v27 = vcombine.low %v2083_v13, %v2091_v14  ;;  %v3631_v30 = vcombine.high %v2067_v23, %v2075_v24 }
 0x18a   :  { %v3629_v28 = vcombine.high %v2066_v21, %v2074_v22 }
 0x1c2   :  { %v1975_v33 = vpop.f32.mrf.mxu0 }
 0x1c3   :  { %v2016_v34 = vpop.f32.mrf.mxu1  ;;  %v1976_v35 = vadd.f32 %v1975_v33, %v1935_v32  ;;  %v2058_v32 = vld [vmem:[%s5489_s4 + $0xd0] sm:$0xff]  ;;  %v2051_v33 = vld [vmem:[%s5489_s4 + $0x98] sm:$0xff] }
 0x1c4   :  { %v1977_v36 = vpop.f32.mrf.mxu0 }
 0x1c5   :  { %v2018_v37 = vpop.f32.mrf.mxu1  ;;  %v2017_v38 = vadd.f32 %v2016_v34, %v1976_v35  ;;  %v1978_v39 = vadd.f32 %v1977_v36, %v1937_v29  ;;  %v2059_v34 = vld [vmem:[%s5489_s4 + $0xd8] sm:$0xff]  ;;  %v3628_v29 = vcombine.low %v2066_v21, %v2074_v22  ;;  %v3630_v35 = vcombine.low %v2067_v23, %v2075_v24  ;;  %v2093_v21 = vld [vmem:[%s5489_s4 + $0x1e8] sm:$0xff] }
 0x1c6   :  { %v1979_v41 = vpop.f32.mrf.mxu0  ;;  %v3613_v36 = vcombine.high %v2050_v31, %v2058_v32 }
 0x1c7   :  { %v2020_v6 = vpop.f32.mrf.mxu1  ;;  %2023 = vst [vmem:[#allocation2] sm:$0x3] %v2017_v38  ;;  %v2019_v43 = vadd.f32 %v2018_v37, %v1978_v39  ;;  %v3615_v37 = vcombine.high %v2051_v33, %v2059_v34  ;;  %v2042_v39 = vld [vmem:[%s5489_s4 + $0x50] sm:$0xff]  ;;  %v2035_v41 = vld [vmem:[%s5489_s4 + $0x18] sm:$0xff] }
 0x1c8   :  { %v1980_v44 = vpop.f32.mrf.mxu0  ;;  %v2043_v6 = vld [vmem:[%s5489_s4 + $0x58] sm:$0xff] }
 0x1c9   :  { %v2021_v45 = vpop.f32.mrf.mxu1  ;;  %v2026_v46 = vmul.f32 0.5, %v2019_v43  ;;  %2024 = vst [vmem:[#allocation4] sm:$0x3] %v2019_v43  ;;  %v3612_v43 = vcombine.low %v2050_v31, %v2058_v32  ;;  %v3614_v44 = vcombine.low %v2051_v33, %v2059_v34  ;;  %v3598_v51 = vcombine.low %v2035_v41, %v2043_v6  ;;  %v2077_v31 = vld [vmem:[%s5489_s4 + $0x168] sm:$0xff] }
 0x1cb   :  { %v2027_v16 = vmul.f32 1.442695, %v2026_v46  ;;  %v3599_v46 = vcombine.high %v2035_v41, %v2043_v6 }
 0x1cd   :  { %4111 = vpow2.f32 %v2027_v16  ;;  %v2148_v16 = vld [vmem:[%s5489_s4 + $0x3a0] sm:$0xff] }
 0x1da   :  { %v4112_v47 = vpop.eup %4111 }
 0x1db   :  { %v2029_v48 = vmul.f32 %v4112_v47, %v2025_v25  ;;  %v2156_v25 = vld [vmem:[%s5489_s4 + $0x3e0] sm:$0xff]  ;;  %v2149_v47 = vld [vmem:[%s5489_s4 + $0x3a8] sm:$0xff] }
 0x1dc   :  { %v3713_v52 = vcombine.high %v2148_v16, %v2156_v25  ;;  %v3712_v59 = vcombine.low %v2148_v16, %v2156_v25  ;;  %v2045_v16 = vld [vmem:[%s5489_s4 + $0x68] sm:$0xff] }
 0x1dd   :  { %v2030_v54 = vadd.f32 %v2029_v48, %v2017_v38  ;;  %v2034_v38 = vld [vmem:[%s5489_s4 + $0x10] sm:$0xff]  ;;  %v2157_v48 = vld [vmem:[%s5489_s4 + $0x3e8] sm:$0xff] }
 0x1de   :  { %v3597_v45 = vcombine.high %v2034_v38, %v2042_v39  ;;  %v3596_v50 = vcombine.low %v2034_v38, %v2042_v39  ;;  %v3715_v53 = vcombine.high %v2149_v47, %v2157_v48  ;;  %v3714_v60 = vcombine.low %v2149_v47, %v2157_v48  ;;  %v2061_v38 = vld [vmem:[%s5489_s4 + $0xe8] sm:$0xff] }
 0x1df   :  { %v5160_v55 = vpack.c.bf16 %v2030_v54, %v2030_v54  ;;  %v2132_v54 = vld [vmem:[%s5489_s4 + $0x320] sm:$0xff] }
 0x1e1   :  { %2917 = vmatmul.mubr.bf16.vlgmr.msra.gmra.mxu0 %v5160_v55  ;;  %2958 = vmatmul.mubr.bf16.vlgmr.msra.gmra.mxu1 %v5160_v55 }
 0x1e2   :  { %2967 = vmatpush1.bf16.msra.mxu0 %v3708_v15  ;;  %3008 = vmatpush1.bf16.msra.mxu1 %v3710_v17  ;;  %v3660_v15 = vcombine.low %v2098_v2, %v2106_v3  ;;  %v3662_v17 = vcombine.low %v2099_v4, %v2107_v5  ;;  %v2125_v2 = vld [vmem:[%s5489_s4 + $0x2e8] sm:$0xff] }
 0x1e3   :  { %2968 = vmatprep.subr.bf16.mxu0 %v3693_v56  ;;  %3009 = vmatprep.subr.bf16.mxu1 %v3695_v57  ;;  %v2140_v56 = vld [vmem:[%s5489_s4 + $0x360] sm:$0xff]  ;;  %v2133_v57 = vld [vmem:[%s5489_s4 + $0x328] sm:$0xff] }
 0x1e4   :  { %2998 = vmatprep.mubr.bf16.mxu0 %v4158_v19  ;;  %3039 = vmatprep.mubr.bf16.mxu1 %v4158_v19  ;;  %v3697_v61 = vcombine.high %v2132_v54, %v2140_v56  ;;  %v3696_v3 = vcombine.low %v2132_v54, %v2140_v56  ;;  %v3698_v4 = vcombine.low %v2133_v57, %v2141_v58  ;;  %v2159_v54 = vld [vmem:[%s5489_s4 + $0x3f8] sm:$0xff] }
 0x1e6   :  { %2969 = vmatpush1.bf16.msra.mxu0 %v3692_v62  ;;  %3010 = vmatpush1.bf16.msra.mxu1 %v3694_v63  ;;  %v3699_v62 = vcombine.high %v2133_v57, %v2141_v58  ;;  %v2116_v63 = vld [vmem:[%s5489_s4 + $0x2a0] sm:$0xff] }
 0x1e7   :  { %2970 = vmatprep.subr.bf16.mxu0 %v3677_v0  ;;  %3011 = vmatprep.subr.bf16.mxu1 %v3679_v1  ;;  %v2124_v0 = vld [vmem:[%s5489_s4 + $0x2e0] sm:$0xff]  ;;  %v2117_v1 = vld [vmem:[%s5489_s4 + $0x2a8] sm:$0xff] }
 0x1e8   :  { %v3681_v5 = vcombine.high %v2116_v63, %v2124_v0  ;;  %v3680_v12 = vcombine.low %v2116_v63, %v2124_v0  ;;  %v3682_v13 = vcombine.low %v2117_v1, %v2125_v2  ;;  %v2143_v63 = vld [vmem:[%s5489_s4 + $0x378] sm:$0xff] }
 0x1ea   :  { %2971 = vmatpush1.bf16.msra.mxu0 %v3676_v7  ;;  %3012 = vmatpush1.bf16.msra.mxu1 %v3678_v8  ;;  %v3683_v7 = vcombine.high %v2117_v1, %v2125_v2  ;;  %v2100_v8 = vld [vmem:[%s5489_s4 + $0x220] sm:$0xff] }
 0x1eb   :  { %2972 = vmatprep.subr.bf16.mxu0 %v3661_v9  ;;  %3013 = vmatprep.subr.bf16.mxu1 %v3663_v10  ;;  %v2108_v9 = vld [vmem:[%s5489_s4 + $0x260] sm:$0xff]  ;;  %v2101_v10 = vld [vmem:[%s5489_s4 + $0x228] sm:$0xff] }
 0x1ec   :  { %v3665_v14 = vcombine.high %v2100_v8, %v2108_v9  ;;  %v3664_v22 = vcombine.low %v2100_v8, %v2108_v9  ;;  %v3666_v23 = vcombine.low %v2101_v10, %v2109_v11  ;;  %v2127_v8 = vld [vmem:[%s5489_s4 + $0x2f8] sm:$0xff] }
 0x1ee   :  { %2973 = vmatpush1.bf16.msra.mxu0 %v3660_v15  ;;  %3014 = vmatpush1.bf16.msra.mxu1 %v3662_v17  ;;  %v3667_v15 = vcombine.high %v2101_v10, %v2109_v11  ;;  %v2084_v17 = vld [vmem:[%s5489_s4 + $0x1a0] sm:$0xff] }
 0x1ef   :  { %2974 = vmatprep.subr.bf16.mxu0 %v3645_v18  ;;  %3015 = vmatprep.subr.bf16.mxu1 %v3647_v20  ;;  %v2092_v18 = vld [vmem:[%s5489_s4 + $0x1e0] sm:$0xff]  ;;  %v2085_v20 = vld [vmem:[%s5489_s4 + $0x1a8] sm:$0xff] }
 0x1f0   :  { %v3649_v24 = vcombine.high %v2084_v17, %v2092_v18  ;;  %v3648_v32 = vcombine.low %v2084_v17, %v2092_v18  ;;  %v3650_v33 = vcombine.low %v2085_v20, %v2093_v21  ;;  %v2111_v17 = vld [vmem:[%s5489_s4 + $0x278] sm:$0xff] }
 0x1f2   :  { %2975 = vmatpush1.bf16.msra.mxu0 %v3644_v26  ;;  %3016 = vmatpush1.bf16.msra.mxu1 %v3646_v27  ;;  %v3651_v26 = vcombine.high %v2085_v20, %v2093_v21  ;;  %v2068_v27 = vld [vmem:[%s5489_s4 + $0x120] sm:$0xff] }
 0x1f3   :  { %2976 = vmatprep.subr.bf16.mxu0 %v3629_v28  ;;  %3017 = vmatprep.subr.bf16.mxu1 %v3631_v30  ;;  %v2076_v28 = vld [vmem:[%s5489_s4 + $0x160] sm:$0xff]  ;;  %v2069_v30 = vld [vmem:[%s5489_s4 + $0x128] sm:$0xff] }
 0x1f4   :  { %v3633_v34 = vcombine.high %v2068_v27, %v2076_v28  ;;  %v3632_v39 = vcombine.low %v2068_v27, %v2076_v28  ;;  %v3634_v41 = vcombine.low %v2069_v30, %v2077_v31 }
 0x1f6   :  { %2977 = vmatpush1.bf16.msra.mxu0 %v3628_v29  ;;  %3018 = vmatpush1.bf16.msra.mxu1 %v3630_v35  ;;  %v3635_v29 = vcombine.high %v2069_v30, %v2077_v31  ;;  %v2052_v35 = vld [vmem:[%s5489_s4 + $0xa0] sm:$0xff] }
 0x1f7   :  { %2978 = vmatprep.subr.bf16.mxu0 %v3613_v36  ;;  %3019 = vmatprep.subr.bf16.mxu1 %v3615_v37  ;;  %v2060_v36 = vld [vmem:[%s5489_s4 + $0xe0] sm:$0xff]  ;;  %v2053_v37 = vld [vmem:[%s5489_s4 + $0xa8] sm:$0xff] }
 0x1f8   :  { %v3617_v6 = vcombine.high %v2052_v35, %v2060_v36  ;;  %v3616_v25 = vcombine.low %v2052_v35, %v2060_v36  ;;  %v3618_v47 = vcombine.low %v2053_v37, %v2061_v38 }
 0x1fa   :  { %2979 = vmatpush1.bf16.msra.mxu0 %v3612_v43  ;;  %3020 = vmatpush1.bf16.msra.mxu1 %v3614_v44  ;;  %v3619_v43 = vcombine.high %v2053_v37, %v2061_v38  ;;  %v2036_v44 = vld [vmem:[%s5489_s4 + $0x20] sm:$0xff] }
 0x1fb   :  { %2980 = vmatprep.subr.bf16.mxu0 %v3597_v45  ;;  %3021 = vmatprep.subr.bf16.mxu1 %v3599_v46  ;;  %v2044_v45 = vld [vmem:[%s5489_s4 + $0x60] sm:$0xff]  ;;  %v2037_v46 = vld [vmem:[%s5489_s4 + $0x28] sm:$0xff] }
 0x1fc   :  { %v3601_v48 = vcombine.high %v2036_v44, %v2044_v45  ;;  %v3600_v56 = vcombine.low %v2036_v44, %v2044_v45  ;;  %v3602_v57 = vcombine.low %v2037_v46, %v2045_v16 }
 0x1fe   :  { %2981 = vmatpush1.bf16.msra.mxu0 %v3596_v50  ;;  %3022 = vmatpush1.bf16.msra.mxu1 %v3598_v51  ;;  %v3603_v50 = vcombine.high %v2037_v46, %v2045_v16  ;;  %v2150_v51 = vld [vmem:[%s5489_s4 + $0x3b0] sm:$0xff] }
 0x1ff   :  { %3048 = vmatprep.subr.bf16.mxu0 %v3713_v52  ;;  %3089 = vmatprep.subr.bf16.mxu1 %v3715_v53  ;;  %v2158_v52 = vld [vmem:[%s5489_s4 + $0x3f0] sm:$0xff]  ;;  %v2151_v53 = vld [vmem:[%s5489_s4 + $0x3b8] sm:$0xff] }
 0x200   :  { %v3717_v58 = vcombine.high %v2150_v51, %v2158_v52  ;;  %v3716_v0 = vcombine.low %v2150_v51, %v2158_v52  ;;  %v3718_v1 = vcombine.low %v2151_v53, %v2159_v54 }
 0x201   :  { %2999 = vmatmul.mubr.bf16.vlgmr.msra.gmra.mxu0 %v5160_v55  ;;  %3040 = vmatmul.mubr.bf16.vlgmr.msra.gmra.mxu1 %v5160_v55 }
 0x202   :  { %3049 = vmatpush1.bf16.msra.mxu0 %v3712_v59  ;;  %3090 = vmatpush1.bf16.msra.mxu1 %v3714_v60  ;;  %v3719_v59 = vcombine.high %v2151_v53, %v2159_v54  ;;  %v2134_v60 = vld [vmem:[%s5489_s4 + $0x330] sm:$0xff] }
 0x203   :  { %3050 = vmatprep.subr.bf16.mxu0 %v3697_v61  ;;  %3091 = vmatprep.subr.bf16.mxu1 %v3699_v62  ;;  %v2142_v61 = vld [vmem:[%s5489_s4 + $0x370] sm:$0xff]  ;;  %v2135_v62 = vld [vmem:[%s5489_s4 + $0x338] sm:$0xff] }
 0x204   :  { %3080 = vmatprep.mubr.bf16.mxu0 %v4158_v19  ;;  %3121 = vmatprep.mubr.bf16.mxu1 %v4158_v19  ;;  %v3701_v2 = vcombine.high %v2134_v60, %v2142_v61  ;;  %v3700_v9 = vcombine.low %v2134_v60, %v2142_v61  ;;  %v3702_v10 = vcombine.low %v2135_v62, %v2143_v63 }
 0x206   :  { %3051 = vmatpush1.bf16.msra.mxu0 %v3696_v3  ;;  %3092 = vmatpush1.bf16.msra.mxu1 %v3698_v4  ;;  %v3703_v3 = vcombine.high %v2135_v62, %v2143_v63  ;;  %v2118_v4 = vld [vmem:[%s5489_s4 + $0x2b0] sm:$0xff] }
 0x207   :  { %3052 = vmatprep.subr.bf16.mxu0 %v3681_v5  ;;  %3093 = vmatprep.subr.bf16.mxu1 %v3683_v7  ;;  %v2126_v5 = vld [vmem:[%s5489_s4 + $0x2f0] sm:$0xff]  ;;  %v2119_v7 = vld [vmem:[%s5489_s4 + $0x2b8] sm:$0xff] }
 0x208   :  { %v3685_v11 = vcombine.high %v2118_v4, %v2126_v5  ;;  %v3684_v18 = vcombine.low %v2118_v4, %v2126_v5  ;;  %v3686_v20 = vcombine.low %v2119_v7, %v2127_v8 }
 0x20a   :  { %3053 = vmatpush1.bf16.msra.mxu0 %v3680_v12  ;;  %3094 = vmatpush1.bf16.msra.mxu1 %v3682_v13  ;;  %v3687_v12 = vcombine.high %v2119_v7, %v2127_v8  ;;  %v2102_v13 = vld [vmem:[%s5489_s4 + $0x230] sm:$0xff] }
 0x20b   :  { %3054 = vmatprep.subr.bf16.mxu0 %v3665_v14  ;;  %3095 = vmatprep.subr.bf16.mxu1 %v3667_v15  ;;  %v2110_v14 = vld [vmem:[%s5489_s4 + $0x270] sm:$0xff]  ;;  %v2103_v15 = vld [vmem:[%s5489_s4 + $0x238] sm:$0xff] }
 0x20c   :  { %v3669_v21 = vcombine.high %v2102_v13, %v2110_v14  ;;  %v3668_v27 = vcombine.low %v2102_v13, %v2110_v14  ;;  %v3670_v28 = vcombine.low %v2103_v15, %v2111_v17 }
 0x20e   :  { %3055 = vmatpush1.bf16.msra.mxu0 %v3664_v22  ;;  %3096 = vmatpush1.bf16.msra.mxu1 %v3666_v23  ;;  %v3671_v22 = vcombine.high %v2103_v15, %v2111_v17  ;;  %v2086_v23 = vld [vmem:[%s5489_s4 + $0x1b0] sm:$0xff] }
 0x20f   :  { %3056 = vmatprep.subr.bf16.mxu0 %v3649_v24  ;;  %3097 = vmatprep.subr.bf16.mxu1 %v3651_v26  ;;  %v2094_v24 = vld [vmem:[%s5489_s4 + $0x1f0] sm:$0xff]  ;;  %v2095_v26 = vld [vmem:[%s5489_s4 + $0x1f8] sm:$0xff] }
 0x210   :  { %v3653_v30 = vcombine.high %v2086_v23, %v2094_v24  ;;  %v3652_v35 = vcombine.low %v2086_v23, %v2094_v24 }
 0x212   :  { %3057 = vmatpush1.bf16.msra.mxu0 %v3648_v32  ;;  %3098 = vmatpush1.bf16.msra.mxu1 %v3650_v33  ;;  %v2070_v32 = vld [vmem:[%s5489_s4 + $0x130] sm:$0xff] }
 0x213   :  { %3058 = vmatprep.subr.bf16.mxu0 %v3633_v34  ;;  %3099 = vmatprep.subr.bf16.mxu1 %v3635_v29  ;;  %v2078_v33 = vld [vmem:[%s5489_s4 + $0x170] sm:$0xff]  ;;  %v2071_v34 = vld [vmem:[%s5489_s4 + $0x138] sm:$0xff] }
 0x214   :  { %v2079_v29 = vld [vmem:[%s5489_s4 + $0x178] sm:$0xff]  ;;  %v3637_v37 = vcombine.high %v2070_v32, %v2078_v33  ;;  %v3636_v44 = vcombine.low %v2070_v32, %v2078_v33 }
 0x215   :  { %v3639_v38 = vcombine.high %v2071_v34, %v2079_v29  ;;  %v3638_v45 = vcombine.low %v2071_v34, %v2079_v29 }
 0x216   :  { %3059 = vmatpush1.bf16.msra.mxu0 %v3632_v39  ;;  %3100 = vmatpush1.bf16.msra.mxu1 %v3634_v41  ;;  %v2054_v39 = vld [vmem:[%s5489_s4 + $0xb0] sm:$0xff] }
 0x217   :  { %3060 = vmatprep.subr.bf16.mxu0 %v3617_v6  ;;  %3101 = vmatprep.subr.bf16.mxu1 %v3619_v43  ;;  %v2062_v41 = vld [vmem:[%s5489_s4 + $0xf0] sm:$0xff]  ;;  %v2055_v6 = vld [vmem:[%s5489_s4 + $0xb8] sm:$0xff] }
 0x218   :  { %v2063_v43 = vld [vmem:[%s5489_s4 + $0xf8] sm:$0xff]  ;;  %v3621_v46 = vcombine.high %v2054_v39, %v2062_v41  ;;  %v3620_v51 = vcombine.low %v2054_v39, %v2062_v41 }
 0x219   :  { %v3623_v16 = vcombine.high %v2055_v6, %v2063_v43  ;;  %v3622_v52 = vcombine.low %v2055_v6, %v2063_v43 }
 0x21a   :  { %3061 = vmatpush1.bf16.msra.mxu0 %v3616_v25  ;;  %3102 = vmatpush1.bf16.msra.mxu1 %v3618_v47  ;;  %v2038_v25 = vld [vmem:[%s5489_s4 + $0x30] sm:$0xff] }
 0x21b   :  { %3062 = vmatprep.subr.bf16.mxu0 %v3601_v48  ;;  %3103 = vmatprep.subr.bf16.mxu1 %v3603_v50  ;;  %v2046_v47 = vld [vmem:[%s5489_s4 + $0x70] sm:$0xff]  ;;  %v2039_v48 = vld [vmem:[%s5489_s4 + $0x38] sm:$0xff] }
 0x21c   :  { %v2047_v50 = vld [vmem:[%s5489_s4 + $0x78] sm:$0xff]  ;;  %v3605_v53 = vcombine.high %v2038_v25, %v2046_v47 }
 0x21d   :  { %v3607_v54 = vcombine.high %v2039_v48, %v2047_v50 }
 0x21e   :  { %3063 = vmatpush1.bf16.msra.mxu0 %v3600_v56  ;;  %3104 = vmatpush1.bf16.msra.mxu1 %v3602_v57  ;;  %v3604_v56 = vcombine.low %v2038_v25, %v2046_v47  ;;  %v3606_v57 = vcombine.low %v2039_v48, %v2047_v50 }
 0x21f   :  { %3130 = vmatprep.subr.bf16.mxu0 %v3717_v58  ;;  %3171 = vmatprep.subr.bf16.mxu1 %v3719_v59 }
 0x221   :  { %3081 = vmatmul.mubr.bf16.vlgmr.msra.gmra.mxu0 %v5160_v55  ;;  %3122 = vmatmul.mubr.bf16.vlgmr.msra.gmra.mxu1 %v5160_v55 }
 0x222   :  { %3131 = vmatpush1.bf16.msra.mxu0 %v3716_v0  ;;  %3172 = vmatpush1.bf16.msra.mxu1 %v3718_v1 }
 0x223   :  { %3132 = vmatprep.subr.bf16.mxu0 %v3701_v2  ;;  %3173 = vmatprep.subr.bf16.mxu1 %v3703_v3 }
 0x224   :  { %3162 = vmatprep.mubr.bf16.mxu0 %v4158_v19  ;;  %3203 = vmatprep.mubr.bf16.mxu1 %v4158_v19  ;;  %v2087_v19 = vld [vmem:[%s5489_s4 + $0x1b8] sm:$0xff]  ;;  %s4159_s4 = smov [#allocation2]  }
 0x225   :  { %v3655_v31 = vcombine.high %v2087_v19, %v2095_v26  ;;  %v3654_v36 = vcombine.low %v2087_v19, %v2095_v26  ;;  %s3310_s2 = sshll.u32 %s4159_s4, 4  ;;  %s3311_s2 = int_to_ptr.vmem [resolvable:$true] %s3310_s2 }
 0x226   :  { %3133 = vmatpush1.bf16.msra.mxu0 %v3700_v9  ;;  %3174 = vmatpush1.bf16.msra.mxu1 %v3702_v10  ;;  %s4113_s30 = scalar_lea.vmem %s3311_s2, 32  ;;  %p4118_p1 = scmp.lt.s32.totalorder %s3311_s2, %s3311_s2 }
 0x227   :  { %3134 = vmatprep.subr.bf16.mxu0 %v3685_v11  ;;  %3175 = vmatprep.subr.bf16.mxu1 %v3687_v12  ;;  %p4114_p0 = scmp.ne.s32.totalorder %s3311_s2, %s4113_s30  ;;  %p4119_p2 = scmp.lt.s32.totalorder %s4113_s30, %s4113_s30 }
 0x229   :  { %p4120_p3 = por %p4119_p2, %p4118_p1 }
 0x22a   :  { %3135 = vmatpush1.bf16.msra.mxu0 %v3684_v18  ;;  %3176 = vmatpush1.bf16.msra.mxu1 %v3686_v20 }
 0x22b   :  { %3136 = vmatprep.subr.bf16.mxu0 %v3669_v21  ;;  %3177 = vmatprep.subr.bf16.mxu1 %v3671_v22  ;;  %p4121_p4 = pnand %p4120_p3, %p4114_p0 }
 0x22e   :  { %3137 = vmatpush1.bf16.msra.mxu0 %v3668_v27  ;;  %3178 = vmatpush1.bf16.msra.mxu1 %v3670_v28 }
 0x22f   :  { %3138 = vmatprep.subr.bf16.mxu0 %v3653_v30  ;;  %3179 = vmatprep.subr.bf16.mxu1 %v3655_v31 }
 0x232   :  { %3139 = vmatpush1.bf16.msra.mxu0 %v3652_v35  ;;  %3180 = vmatpush1.bf16.msra.mxu1 %v3654_v36 }
 0x233   :  { %3140 = vmatprep.subr.bf16.mxu0 %v3637_v37  ;;  %3181 = vmatprep.subr.bf16.mxu1 %v3639_v38 }
 0x236   :  { %3141 = vmatpush1.bf16.msra.mxu0 %v3636_v44  ;;  %3182 = vmatpush1.bf16.msra.mxu1 %v3638_v45 }
 0x237   :  { %3142 = vmatprep.subr.bf16.mxu0 %v3621_v46  ;;  %3183 = vmatprep.subr.bf16.mxu1 %v3623_v16 }
 0x23a   :  { %3143 = vmatpush1.bf16.msra.mxu0 %v3620_v51  ;;  %3184 = vmatpush1.bf16.msra.mxu1 %v3622_v52 }
 0x23b   :  { %3144 = vmatprep.subr.bf16.mxu0 %v3605_v53  ;;  %3185 = vmatprep.subr.bf16.mxu1 %v3607_v54 }
 0x23e   :  { %3145 = vmatpush1.bf16.msra.mxu0 %v3604_v56  ;;  %3186 = vmatpush1.bf16.msra.mxu1 %v3606_v57 }
 0x241   :  { %3163 = vmatmul.mubr.bf16.vlgmr.msra.gmra.mxu0 %v5160_v55  ;;  %3204 = vmatmul.mubr.bf16.vlgmr.msra.gmra.mxu1 %v5160_v55 }
 0x242   :  { %4124 = shalt.err (!%p4121_p4)
}
 0x243   :  { %3313 = dma.vmem_to_hbm [thread:$0]  %s3311_s2, 32, %s5491_s6, [#allocation3]  }
 0x244   :  { %s4133_s3 = scalar_lea.vmem %s3321_s29, 32  ;;  %p4138_p6 = scmp.lt.s32.totalorder %s3321_s29, %s3321_s29 }
 0x245   :  { %p4134_p5 = scmp.ne.s32.totalorder %s3321_s29, %s4133_s3  ;;  %p4139_p7 = scmp.lt.s32.totalorder %s4133_s3, %s4133_s3 }
 0x247   :  { %p4140_p8 = por %p4139_p7, %p4138_p6 }
 0x249   :  { %p4141_p9 = pnand %p4140_p8, %p4134_p5 }
 0x24b   :  { %4144 = shalt.err (!%p4141_p9)
}
 0x24c   :  { %3323 = dma.vmem_to_hbm [thread:$0]  %s3321_s29, 32, %s5492_s7, [#allocation5]   ;;  %v4161_v55 = vmov 1983009808   ;;  %v2174_v59 = vsub.s32 2, %v4324_v42  ;;  %v2178_v60 = vsub.s32 3, %v4324_v42 }
 0x24d   :  { %v3231_v58 = vunpack.c.l.s4 %v4161_v55  ;;  %v2160_v61 = vld [vmem:[%s5490_s5] sm:$0xff]  ;;  %v2182_v24 = vsub.s32 4, %v4324_v42  ;;  %v2190_v19 = vsub.s32 6, %v4324_v42  ;;  %v2186_v26 = vsub.s32 5, %v4324_v42  ;;  %v2161_v47 = vld [vmem:[%s5490_s5 + $0x8] sm:$0xff] }
 0x24e   :  { %v2167_v63 = vrot.slane %v2160_v61, %v5019_v40  ;;  %v2175_v0 = vrot.slane %v2160_v61, %v2174_v59  ;;  %v2171_v1 = vrot.slane %v2160_v61, %v5025_v49  ;;  %v2179_v2 = vrot.slane %v2160_v61, %v2178_v60 }
 0x24f   :  { %v3232_v62 = vunpack.c.0.s8 %v3231_v58  ;;  %v2194_v27 = vsub.s32 7, %v4324_v42  ;;  %v2183_v28 = vrot.slane %v2160_v61, %v2182_v24  ;;  %v2191_v30 = vrot.slane %v2160_v61, %v2190_v19 }
 0x250   :  { %v2187_v31 = vrot.slane %v2160_v61, %v2186_v26  ;;  %v2199_v48 = vrot.slane %v2161_v47, %v5019_v40  ;;  %v2207_v50 = vrot.slane %v2161_v47, %v2174_v59  ;;  %v2203_v51 = vrot.slane %v2161_v47, %v5025_v49 }
 0x251   :  { %v5454_v7 = vsub.s32 %v3232_v62, %v4324_v42  ;;  %v2195_v32 = vrot.slane %v2160_v61, %v2194_v27  ;;  %v2211_v52 = vrot.slane %v2161_v47, %v2178_v60  ;;  %v2215_v60 = vrot.slane %v2161_v47, %v2182_v24 }
 0x2a1   :  { %v2918_v3 = vpop.f32.mrf.mxu0  ;;  %v2959_v4 = vpop.f32.mrf.mxu1 }
 0x2a2   :  { %v2919_v9 = vadd.f32 %v2918_v3, %v2167_v63  ;;  %v2960_v10 = vadd.f32 %v2959_v4, %v2175_v0 }
 0x2a3   :  { %v2920_v5 = vpop.f32.mrf.mxu0  ;;  %v2961_v8 = vpop.f32.mrf.mxu1 }
 0x2a4   :  { %v2921_v11 = vadd.f32 %v2920_v5, %v2171_v1  ;;  %v2962_v12 = vadd.f32 %v2961_v8, %v2179_v2  ;;  %v2223_v5 = vrot.slane %v2161_v47, %v2190_v19  ;;  %v2219_v8 = vrot.slane %v2161_v47, %v2186_v26 }
 0x2a5   :  { %v2922_v13 = vpop.f32.mrf.mxu0  ;;  %v2963_v14 = vpop.f32.mrf.mxu1 }
 0x2a6   :  { %v3228_v15 = vcombine.low %v2919_v9, %v2921_v11  ;;  %v3229_v17 = vcombine.low %v2960_v10, %v2962_v12  ;;  %v2227_v9 = vrot.slane %v2161_v47, %v2194_v27 }
 0x2a7   :  { %v2923_v18 = vpop.f32.mrf.mxu0  ;;  %v2964_v20 = vpop.f32.mrf.mxu1 }
 0x2a8   :  { %v3236_v21 = vrot.slane %v3228_v15, %v5454_v7  ;;  %v3243_v22 = vrot.slane %v3229_v17, %v5454_v7 }
 0x2aa   :  { %v3244_v23 = vcombine.low %v3236_v21, %v3243_v22 }
 0x2ac   :  { %3300 = vst [vmem:[%s5493_s8] sm:$0xff] %v3244_v23 }
 0x2c1   :  { %v3000_v33 = vpop.f32.mrf.mxu0  ;;  %v3041_v34 = vpop.f32.mrf.mxu1 }
 0x2c2   :  { %v3001_v36 = vadd.f32 %v3000_v33, %v2183_v28  ;;  %v3042_v37 = vadd.f32 %v3041_v34, %v2191_v30 }
 0x2c3   :  { %v3002_v29 = vpop.f32.mrf.mxu0  ;;  %v3043_v35 = vpop.f32.mrf.mxu1 }
 0x2c4   :  { %v3003_v38 = vadd.f32 %v3002_v29, %v2187_v31  ;;  %v3044_v39 = vadd.f32 %v3043_v35, %v2195_v32 }
 0x2c5   :  { %v3004_v41 = vpop.f32.mrf.mxu0  ;;  %v3045_v6 = vpop.f32.mrf.mxu1 }
 0x2c6   :  { %v3245_v43 = vcombine.low %v3001_v36, %v3003_v38  ;;  %v3246_v44 = vcombine.low %v3042_v37, %v3044_v39 }
 0x2c7   :  { %v3005_v45 = vpop.f32.mrf.mxu0  ;;  %v3046_v46 = vpop.f32.mrf.mxu1 }
 0x2c8   :  { %v3253_v42 = vrot.slane %v3245_v43, %v5454_v7  ;;  %v3260_v16 = vrot.slane %v3246_v44, %v5454_v7 }
 0x2ca   :  { %v3261_v25 = vcombine.low %v3253_v42, %v3260_v16 }
 0x2cc   :  { %3301 = vst [vmem:[%s5493_s8 + $0x8] sm:$0xff] %v3261_v25 }
 0x2e1   :  { %v3082_v53 = vpop.f32.mrf.mxu0  ;;  %v3123_v54 = vpop.f32.mrf.mxu1 }
 0x2e2   :  { %v3083_v55 = vadd.f32 %v3082_v53, %v2199_v48  ;;  %v3124_v58 = vadd.f32 %v3123_v54, %v2207_v50 }
 0x2e3   :  { %v3084_v56 = vpop.f32.mrf.mxu0  ;;  %v3125_v57 = vpop.f32.mrf.mxu1 }
 0x2e4   :  { %v3085_v61 = vadd.f32 %v3084_v56, %v2203_v51  ;;  %v3126_v62 = vadd.f32 %v3125_v57, %v2211_v52 }
 0x2e5   :  { %v3086_v63 = vpop.f32.mrf.mxu0  ;;  %v3127_v0 = vpop.f32.mrf.mxu1 }
 0x2e6   :  { %v3262_v1 = vcombine.low %v3083_v55, %v3085_v61  ;;  %v3263_v2 = vcombine.low %v3124_v58, %v3126_v62 }
 0x2e7   :  { %v3087_v3 = vpop.f32.mrf.mxu0  ;;  %v3128_v4 = vpop.f32.mrf.mxu1 }
 0x2e8   :  { %v3270_v40 = vrot.slane %v3262_v1, %v5454_v7  ;;  %v3277_v59 = vrot.slane %v3263_v2, %v5454_v7 }
 0x2ea   :  { %v3278_v49 = vcombine.low %v3270_v40, %v3277_v59 }
 0x2ec   :  { %3302 = vst [vmem:[%s5493_s8 + $0x10] sm:$0xff] %v3278_v49 }
 0x301   :  { %v3164_v10 = vpop.f32.mrf.mxu0  ;;  %v3205_v11 = vpop.f32.mrf.mxu1 }
 0x302   :  { %v3165_v14 = vadd.f32 %v3164_v10, %v2215_v60  ;;  %v3206_v15 = vadd.f32 %v3205_v11, %v2223_v5 }
 0x303   :  { %v3166_v12 = vpop.f32.mrf.mxu0  ;;  %v3207_v13 = vpop.f32.mrf.mxu1 }
 0x304   :  { %v3167_v17 = vadd.f32 %v3166_v12, %v2219_v8  ;;  %v3208_v18 = vadd.f32 %v3207_v13, %v2227_v9 }
 0x305   :  { %v3168_v20 = vpop.f32.mrf.mxu0  ;;  %v3209_v21 = vpop.f32.mrf.mxu1 }
 0x306   :  { %v3279_v22 = vcombine.low %v3165_v14, %v3167_v17  ;;  %v3280_v23 = vcombine.low %v3206_v15, %v3208_v18 }
 0x307   :  { %v3169_v28 = vpop.f32.mrf.mxu0  ;;  %v3210_v30 = vpop.f32.mrf.mxu1 }
 0x308   :  { %v3287_v31 = vrot.slane %v3279_v22, %v5454_v7  ;;  %v3294_v24 = vrot.slane %v3280_v23, %v5454_v7 }
 0x30a   :  { %v3295_v19 = vcombine.low %v3287_v31, %v3294_v24 }
 0x30c   :  { %3303 = vst [vmem:[%s5493_s8 + $0x18] sm:$0xff] %v3295_v19 }
 0x30d   :  { %4153 = dma.done.wait [#allocation3], 32  }
 0x30e   :  { %4154 = vsyncadd [#allocation3], 4294967264 }
 0x30f   :  { %4155 = dma.done.wait [#allocation5], 32  }
 0x310   :  { %4156 = vsyncadd [#allocation5], 4294967264 }
 0x311   :  { %3334 = vsyncpa [#allocation3], 1 }
 0x312   :  { %3335 = vsyncpa [#allocation5], 1 }

// kernel: tile.18
= control target key start
LH: loop header
LB: loop body
LE: loop exit
PB: predicated region body
PF: predicated region fallthrough
CT: control target
= control target key end

     0   :  { %s22_s0 = inlined_call_operand.vmem [shape: f32[64], index: 0, kind: input, shape index: {}]   ;;  %s23_s1 = inlined_call_operand.vmem [shape: f32[4,64], index: 1, kind: output, shape index: {}]  }
   0x1   :  { %v4_v0 = vld [vmem:[%s22_s0] ss:$0 sm:$0xff] }
   0x2   :  { %5 = vst [vmem:[%s23_s1] sm:$0xf] %v4_v0 }

// kernel: tile.19
= control target key start
LH: loop header
LB: loop body
LE: loop exit
PB: predicated region body
PF: predicated region fallthrough
CT: control target
= control target key end

     0   :  { %s7_s8 = smov 3  ;;  %vm9_vm0 = vcmask 523264   ;;  %s34_s9 = smov 64   ;;  %vm16_vm1 = vcmask 1048064   ;;  %s54_s0 = inlined_call_operand.vmem [shape: f32[4,64], index: 0, kind: input, shape index: {}]   ;;  %s55_s1 = inlined_call_operand.vmem [shape: f32[1,256], index: 1, kind: output, shape index: {}]  }
   0x1   :  { %v5_v0 = vld [vmem:[%s54_s0] sm:$0xf]  ;;  %s12_s0 = smov 3 }
   0x2   :  { %6 = vst [vmem:[#allocation1] sm:$0xf] %v5_v0 }
   0x9   :  { %v13_v1 = vld [vmem:[#allocation1 + $0x1] ss:$2 sm:%s12_s0]   ;;  %v8_v2 = vld [vmem:[#allocation1] ss:$2 sm:%s7_s8]  }
   0xa   :  { %14 = vrot.lane.b32.xlu0 %v13_v1, %s34_s9  ;;  %10 = vst.msk [vmem:[#allocation0] ss:$8 sm:$0x3] %vm9_vm0, %v8_v2  }
  0x7c   :  { %v15_v3 = vpop.permute.xlu0 %14  }
  0x7d   :  { %17 = vst.msk [vmem:[#allocation0] ss:$8 sm:$0x3] %vm16_vm1, %v15_v3  }
  0x84   :  { %v22_v4 = vld [vmem:[#allocation0] sm:$0x1]  ;;  %v27_v5 = vld [vmem:[#allocation0 + $0x8] sm:$0x1] }
  0x85   :  { %25 = vst [vmem:[%s55_s1] sm:$0x1] %v22_v4  ;;  %32 = vst [vmem:[%s55_s1 + $0x1] sm:$0x1] %v27_v5 }

// kernel: vae_forward.11
= control target key start
LH: loop header
LB: loop body
LE: loop exit
PB: predicated region body
PF: predicated region fallthrough
CT: control target
= control target key end

     0   :  { %s1217_s1 = inlined_call_operand.vmem [shape: bf16[512,256], index: 1, kind: input, shape index: {}]   ;;  %s1218_s0 = inlined_call_operand.vmem [shape: bf16[50,512], index: 0, kind: input, shape index: {}]   ;;  %s1219_s2 = inlined_call_operand.vmem [shape: f32[1,256], index: 2, kind: input, shape index: {}]   ;;  %s1220_s3 = inlined_call_operand.vmem [shape: bf16[50,256], index: 3, kind: output, shape index: {}]  }
   0x1   :  { %v803_v0 = vld [vmem:[%s1217_s1 + $0x74] ss:$8 sps:$4 sm:$0xff]   ;;  %v807_v2 = vld [vmem:[%s1217_s1 + $0x70] ss:$8 sps:$4 sm:$0xff]   ;;  %v809_v4 = vld [vmem:[%s1217_s1 + $0x64] ss:$8 sps:$4 sm:$0xff]  }
   0x2   :  { %v805_v1 = vld [vmem:[%s1217_s1 + $0x174] ss:$8 sps:$4 sm:$0xff]   ;;  %498 = vmatprep.subr.bf16.mxu0 %v803_v0  ;;  %v808_v3 = vld [vmem:[%s1217_s1 + $0x170] ss:$8 sps:$4 sm:$0xff]   ;;  %v811_v5 = vld [vmem:[%s1217_s1 + $0x164] ss:$8 sps:$4 sm:$0xff]  }
   0x3   :  { %569 = vmatprep.subr.bf16.mxu1 %v805_v1  ;;  %499 = vmatpush1.bf16.msra.mxu0 %v807_v2  ;;  %v813_v6 = vld [vmem:[%s1217_s1 + $0x60] ss:$8 sps:$4 sm:$0xff]   ;;  %v815_v8 = vld [vmem:[%s1217_s1 + $0x54] ss:$8 sps:$4 sm:$0xff]   ;;  %v819_v10 = vld [vmem:[%s1217_s1 + $0x50] ss:$8 sps:$4 sm:$0xff]  }
   0x4   :  { %570 = vmatpush1.bf16.msra.mxu1 %v808_v3  ;;  %500 = vmatprep.subr.bf16.mxu0 %v809_v4  ;;  %v814_v7 = vld [vmem:[%s1217_s1 + $0x160] ss:$8 sps:$4 sm:$0xff]   ;;  %v817_v9 = vld [vmem:[%s1217_s1 + $0x154] ss:$8 sps:$4 sm:$0xff]   ;;  %v820_v11 = vld [vmem:[%s1217_s1 + $0x150] ss:$8 sps:$4 sm:$0xff]  }
   0x5   :  { %571 = vmatprep.subr.bf16.mxu1 %v811_v5  ;;  %v821_v12 = vld [vmem:[%s1217_s1 + $0x44] ss:$8 sps:$4 sm:$0xff]   ;;  %v825_v14 = vld [vmem:[%s1217_s1 + $0x40] ss:$8 sps:$4 sm:$0xff]   ;;  %v827_v16 = vld [vmem:[%s1217_s1 + $0x34] ss:$8 sps:$4 sm:$0xff]  }
   0x6   :  { %v823_v13 = vld [vmem:[%s1217_s1 + $0x144] ss:$8 sps:$4 sm:$0xff]   ;;  %v826_v15 = vld [vmem:[%s1217_s1 + $0x140] ss:$8 sps:$4 sm:$0xff]   ;;  %v829_v17 = vld [vmem:[%s1217_s1 + $0x134] ss:$8 sps:$4 sm:$0xff]  }
   0x7   :  { %501 = vmatpush1.bf16.msra.mxu0 %v813_v6  ;;  %v831_v18 = vld [vmem:[%s1217_s1 + $0x30] ss:$8 sps:$4 sm:$0xff]   ;;  %v833_v20 = vld [vmem:[%s1217_s1 + $0x24] ss:$8 sps:$4 sm:$0xff]   ;;  %v837_v22 = vld [vmem:[%s1217_s1 + $0x20] ss:$8 sps:$4 sm:$0xff]  }
   0x8   :  { %572 = vmatpush1.bf16.msra.mxu1 %v814_v7  ;;  %502 = vmatprep.subr.bf16.mxu0 %v815_v8  ;;  %v832_v19 = vld [vmem:[%s1217_s1 + $0x130] ss:$8 sps:$4 sm:$0xff]   ;;  %v835_v21 = vld [vmem:[%s1217_s1 + $0x124] ss:$8 sps:$4 sm:$0xff]   ;;  %v838_v23 = vld [vmem:[%s1217_s1 + $0x120] ss:$8 sps:$4 sm:$0xff]  }
   0x9   :  { %573 = vmatprep.subr.bf16.mxu1 %v817_v9  ;;  %v839_v24 = vld [vmem:[%s1217_s1 + $0x14] ss:$8 sps:$4 sm:$0xff]   ;;  %v843_v26 = vld [vmem:[%s1217_s1 + $0x10] ss:$8 sps:$4 sm:$0xff]   ;;  %v845_v28 = vld [vmem:[%s1217_s1 + $0x4] ss:$8 sps:$4 sm:$0xff]  }
   0xa   :  { %v841_v25 = vld [vmem:[%s1217_s1 + $0x114] ss:$8 sps:$4 sm:$0xff]   ;;  %v844_v27 = vld [vmem:[%s1217_s1 + $0x110] ss:$8 sps:$4 sm:$0xff]   ;;  %v847_v29 = vld [vmem:[%s1217_s1 + $0x104] ss:$8 sps:$4 sm:$0xff]  }
   0xb   :  { %503 = vmatpush1.bf16.msra.mxu0 %v819_v10  ;;  %v849_v30 = vld [vmem:[%s1217_s1] ss:$8 sps:$4 sm:$0xff]   ;;  %v851_v32 = vld [vmem:[%s1217_s1 + $0xf4] ss:$8 sps:$4 sm:$0xff]   ;;  %v855_v34 = vld [vmem:[%s1217_s1 + $0xf0] ss:$8 sps:$4 sm:$0xff]  }
   0xc   :  { %574 = vmatpush1.bf16.msra.mxu1 %v820_v11  ;;  %504 = vmatprep.subr.bf16.mxu0 %v821_v12  ;;  %v850_v31 = vld [vmem:[%s1217_s1 + $0x100] ss:$8 sps:$4 sm:$0xff]   ;;  %v853_v33 = vld [vmem:[%s1217_s1 + $0x1f4] ss:$8 sps:$4 sm:$0xff]   ;;  %v856_v35 = vld [vmem:[%s1217_s1 + $0x1f0] ss:$8 sps:$4 sm:$0xff]  }
   0xd   :  { %575 = vmatprep.subr.bf16.mxu1 %v823_v13  ;;  %v857_v36 = vld [vmem:[%s1217_s1 + $0xe4] ss:$8 sps:$4 sm:$0xff]   ;;  %v861_v38 = vld [vmem:[%s1217_s1 + $0xe0] ss:$8 sps:$4 sm:$0xff]   ;;  %v863_v40 = vld [vmem:[%s1217_s1 + $0xd4] ss:$8 sps:$4 sm:$0xff]  }
   0xe   :  { %v859_v37 = vld [vmem:[%s1217_s1 + $0x1e4] ss:$8 sps:$4 sm:$0xff]   ;;  %v862_v39 = vld [vmem:[%s1217_s1 + $0x1e0] ss:$8 sps:$4 sm:$0xff]   ;;  %v865_v41 = vld [vmem:[%s1217_s1 + $0x1d4] ss:$8 sps:$4 sm:$0xff]  }
   0xf   :  { %505 = vmatpush1.bf16.msra.mxu0 %v825_v14  ;;  %v867_v42 = vld [vmem:[%s1217_s1 + $0xd0] ss:$8 sps:$4 sm:$0xff]   ;;  %v869_v44 = vld [vmem:[%s1217_s1 + $0xc4] ss:$8 sps:$4 sm:$0xff]   ;;  %v873_v46 = vld [vmem:[%s1217_s1 + $0xc0] ss:$8 sps:$4 sm:$0xff]  }
  0x10   :  { %576 = vmatpush1.bf16.msra.mxu1 %v826_v15  ;;  %506 = vmatprep.subr.bf16.mxu0 %v827_v16  ;;  %v868_v43 = vld [vmem:[%s1217_s1 + $0x1d0] ss:$8 sps:$4 sm:$0xff]   ;;  %v871_v45 = vld [vmem:[%s1217_s1 + $0x1c4] ss:$8 sps:$4 sm:$0xff]   ;;  %v874_v47 = vld [vmem:[%s1217_s1 + $0x1c0] ss:$8 sps:$4 sm:$0xff]  }
  0x11   :  { %577 = vmatprep.subr.bf16.mxu1 %v829_v17  ;;  %v875_v48 = vld [vmem:[%s1217_s1 + $0xb4] ss:$8 sps:$4 sm:$0xff]   ;;  %v879_v52 = vld [vmem:[%s1217_s1 + $0xb0] ss:$8 sps:$4 sm:$0xff]   ;;  %v881_v54 = vld [vmem:[%s1217_s1 + $0xa4] ss:$8 sps:$4 sm:$0xff]  }
  0x12   :  { %v901_v49 = vld [vmem:[%s1218_s0 + $0x4] ss:$16 sps:$4 sm:$0xff]   ;;  %v904_v51 = vld [vmem:[%s1218_s0 + $0xc] ss:$16 sps:$4 sm:$0xff]   ;;  %v880_v53 = vld [vmem:[%s1217_s1 + $0x1b0] ss:$8 sps:$4 sm:$0xff]  }
  0x13   :  { %507 = vmatpush1.bf16.msra.mxu0 %v831_v18  ;;  %v877_v50 = vld [vmem:[%s1217_s1 + $0x1b4] ss:$8 sps:$4 sm:$0xff]   ;;  %530 = vmatprep.mubr.bf16.mxu0 %v901_v49  ;;  %v883_v55 = vld [vmem:[%s1217_s1 + $0x1a4] ss:$8 sps:$4 sm:$0xff]   ;;  %v885_v56 = vld [vmem:[%s1217_s1 + $0xa0] ss:$8 sps:$4 sm:$0xff]   ;;  %v94_v18 = vlaneseq }
  0x14   :  { %578 = vmatpush1.bf16.msra.mxu1 %v832_v19  ;;  %508 = vmatprep.subr.bf16.mxu0 %v833_v20  ;;  %v886_v57 = vld [vmem:[%s1217_s1 + $0x1a0] ss:$8 sps:$4 sm:$0xff]   ;;  %v887_v58 = vld [vmem:[%s1217_s1 + $0x94] ss:$8 sps:$4 sm:$0xff]   ;;  %v891_v60 = vld [vmem:[%s1217_s1 + $0x90] ss:$8 sps:$4 sm:$0xff]  }
  0x15   :  { %579 = vmatprep.subr.bf16.mxu1 %v835_v21  ;;  %601 = vmatprep.mubr.bf16.mxu1 %v904_v51  ;;  %v889_v59 = vld [vmem:[%s1217_s1 + $0x194] ss:$8 sps:$4 sm:$0xff]   ;;  %v892_v61 = vld [vmem:[%s1217_s1 + $0x190] ss:$8 sps:$4 sm:$0xff]   ;;  %v893_v62 = vld [vmem:[%s1217_s1 + $0x84] ss:$8 sps:$4 sm:$0xff]  }
  0x16   :  { %v895_v63 = vld [vmem:[%s1217_s1 + $0x184] ss:$8 sps:$4 sm:$0xff]   ;;  %v897_v0 = vld [vmem:[%s1217_s1 + $0x80] ss:$8 sps:$4 sm:$0xff]   ;;  %v95_v19 = vshrl.u32 %v94_v18, 7 }
  0x17   :  { %509 = vmatpush1.bf16.msra.mxu0 %v837_v22  ;;  %v898_v1 = vld [vmem:[%s1217_s1 + $0x180] ss:$8 sps:$4 sm:$0xff]   ;;  %v905_v4 = vld [vmem:[%s1218_s0 + $0x24] ss:$16 sps:$4 sm:$0xff]   ;;  %v907_v5 = vld [vmem:[%s1218_s0 + $0x2c] ss:$16 sps:$4 sm:$0xff]  }
  0x18   :  { %580 = vmatpush1.bf16.msra.mxu1 %v838_v23  ;;  %510 = vmatprep.subr.bf16.mxu0 %v839_v24  ;;  %v899_v2 = vld [vmem:[%s1218_s0] ss:$16 sps:$4 sm:$0xff]   ;;  %v902_v3 = vld [vmem:[%s1218_s0 + $0x8] ss:$16 sps:$4 sm:$0xff]   ;;  %v911_v8 = vld [vmem:[%s1218_s0 + $0x44] ss:$16 sps:$4 sm:$0xff]  }
  0x19   :  { %581 = vmatprep.subr.bf16.mxu1 %v841_v25  ;;  %v909_v6 = vld [vmem:[%s1218_s0 + $0x20] ss:$16 sps:$4 sm:$0xff]   ;;  %v910_v7 = vld [vmem:[%s1218_s0 + $0x28] ss:$16 sps:$4 sm:$0xff]   ;;  %v913_v9 = vld [vmem:[%s1218_s0 + $0x4c] ss:$16 sps:$4 sm:$0xff]  }
  0x1a   :  { %v26_v10 = vld [vmem:[%s1218_s0 + $0x60] sm:$0x11]  ;;  %v27_v11 = vld [vmem:[%s1218_s0 + $0x68] sm:$0x11]  ;;  %v96_v20 = vsub.s32 0, %v95_v19  ;;  %v100_v22 = vsub.s32 1, %v95_v19 }
  0x1b   :  { %511 = vmatpush1.bf16.msra.mxu0 %v843_v26  ;;  %v915_v12 = vld [vmem:[%s1218_s0 + $0x40] ss:$16 sps:$4 sm:$0xff]   ;;  %v916_v13 = vld [vmem:[%s1218_s0 + $0x48] ss:$16 sps:$4 sm:$0xff]   ;;  %v722_v14 = vcombine.high %v26_v10, %v26_v10  ;;  %v724_v15 = vcombine.high %v27_v11, %v27_v11  ;;  %v721_v16 = vcombine.low %v26_v10, %v26_v10  ;;  %v723_v17 = vcombine.low %v27_v11, %v27_v11 }
  0x1c   :  { %582 = vmatpush1.bf16.msra.mxu1 %v844_v27  ;;  %512 = vmatprep.subr.bf16.mxu0 %v845_v28  ;;  %v92_v21 = vld [vmem:[%s1219_s2] sm:$0x3] }
  0x1d   :  { %583 = vmatprep.subr.bf16.mxu1 %v847_v29  ;;  %v1178_v23 = vrot.slane %v92_v21, %v96_v20  ;;  %v1180_v24 = vrot.slane %v92_v21, %v100_v22 }
  0x1f   :  { %513 = vmatpush1.bf16.msra.mxu0 %v849_v30 }
  0x20   :  { %584 = vmatpush1.bf16.msra.mxu1 %v850_v31  ;;  %514 = vmatprep.subr.bf16.mxu0 %v851_v32 }
  0x21   :  { %585 = vmatprep.subr.bf16.mxu1 %v853_v33 }
  0x23   :  { %515 = vmatpush2.bf16.msra.mxu0 %v855_v34 }
  0x24   :  { %586 = vmatpush2.bf16.msra.mxu1 %v856_v35  ;;  %516 = vmatprep.subr.bf16.mxu0 %v857_v36 }
  0x25   :  { %587 = vmatprep.subr.bf16.mxu1 %v859_v37 }
  0x27   :  { %517 = vmatpush2.bf16.msra.mxu0 %v861_v38 }
  0x28   :  { %588 = vmatpush2.bf16.msra.mxu1 %v862_v39  ;;  %518 = vmatprep.subr.bf16.mxu0 %v863_v40 }
  0x29   :  { %589 = vmatprep.subr.bf16.mxu1 %v865_v41 }
  0x2b   :  { %519 = vmatpush2.bf16.msra.mxu0 %v867_v42 }
  0x2c   :  { %590 = vmatpush2.bf16.msra.mxu1 %v868_v43  ;;  %520 = vmatprep.subr.bf16.mxu0 %v869_v44 }
  0x2d   :  { %591 = vmatprep.subr.bf16.mxu1 %v871_v45 }
  0x2f   :  { %521 = vmatpush2.bf16.msra.mxu0 %v873_v46 }
  0x30   :  { %592 = vmatpush2.bf16.msra.mxu1 %v874_v47  ;;  %522 = vmatprep.subr.bf16.mxu0 %v875_v48 }
  0x31   :  { %593 = vmatprep.subr.bf16.mxu1 %v877_v50 }
  0x33   :  { %523 = vmatpush2.bf16.msra.mxu0 %v879_v52 }
  0x34   :  { %594 = vmatpush2.bf16.msra.mxu1 %v880_v53  ;;  %524 = vmatprep.subr.bf16.mxu0 %v881_v54 }
  0x35   :  { %595 = vmatprep.subr.bf16.mxu1 %v883_v55 }
  0x37   :  { %525 = vmatpush2.bf16.msra.mxu0 %v885_v56 }
  0x38   :  { %596 = vmatpush2.bf16.msra.mxu1 %v886_v57  ;;  %526 = vmatprep.subr.bf16.mxu0 %v887_v58 }
  0x39   :  { %597 = vmatprep.subr.bf16.mxu1 %v889_v59 }
  0x3b   :  { %527 = vmatpush2.bf16.msra.mxu0 %v891_v60 }
  0x3c   :  { %598 = vmatpush2.bf16.msra.mxu1 %v892_v61  ;;  %528 = vmatprep.subr.bf16.mxu0 %v893_v62 }
  0x3d   :  { %599 = vmatprep.subr.bf16.mxu1 %v895_v63 }
  0x3f   :  { %529 = vmatpush2.bf16.msra.mxu0 %v897_v0 }
  0x40   :  { %600 = vmatpush2.bf16.msra.mxu1 %v898_v1 }
  0x42   :  { %531 = vmatmul.mubr.bf16.vlgmr.msra.gmra.mxu0 %v899_v2 }
  0x43   :  { %602 = vmatmul.mubr.bf16.vlgmr.msra.gmra.mxu1 %v902_v3  ;;  %540 = vmatprep.mubr.bf16.mxu0 %v905_v4 }
  0x44   :  { %611 = vmatprep.mubr.bf16.mxu1 %v907_v5 }
  0x4a   :  { %541 = vmatmul.mubr.bf16.gmra.mxu0 %v909_v6 }
  0x4b   :  { %612 = vmatmul.mubr.bf16.gmra.mxu1 %v910_v7  ;;  %550 = vmatprep.mubr.bf16.mxu0 %v911_v8 }
  0x4c   :  { %621 = vmatprep.mubr.bf16.mxu1 %v913_v9 }
  0x52   :  { %551 = vmatmul.mubr.bf16.gmra.mxu0 %v915_v12 }
  0x53   :  { %622 = vmatmul.mubr.bf16.gmra.mxu1 %v916_v13  ;;  %560 = vmatprep.mubr.bf16.mxu0 %v722_v14 }
  0x54   :  { %631 = vmatprep.mubr.bf16.mxu1 %v724_v15 }
  0x5a   :  { %561 = vmatmul.mubr.bf16.gmra.mxu0 %v721_v16 }
  0x5b   :  { %632 = vmatmul.mubr.bf16.gmra.mxu1 %v723_v17 }
 0x102   :  { %v532_v25 = vpop.f32.mrf.mxu0 }
 0x103   :  { %v603_v26 = vpop.f32.mrf.mxu1  ;;  %v533_v27 = vadd.f32 %v532_v25, %v1178_v23 }
 0x104   :  { %v534_v28 = vpop.f32.mrf.mxu0 }
 0x105   :  { %v605_v29 = vpop.f32.mrf.mxu1  ;;  %v604_v30 = vadd.f32 %v603_v26, %v533_v27  ;;  %v535_v31 = vadd.f32 %v534_v28, %v1180_v24 }
 0x106   :  { %v536_v32 = vpop.f32.mrf.mxu0 }
 0x107   :  { %v607_v33 = vpop.f32.mrf.mxu1  ;;  %v606_v34 = vadd.f32 %v605_v29, %v535_v31  ;;  %v537_v35 = vadd.f32 %v536_v32, %v1178_v23  ;;  %v640_v38 = vmax.f32 %v604_v30, 0.0 }
 0x108   :  { %v538_v36 = vpop.f32.mrf.mxu0 }
 0x109   :  { %v609_v37 = vpop.f32.mrf.mxu1  ;;  %v641_v39 = vmax.f32 %v606_v34, 0.0  ;;  %v608_v40 = vadd.f32 %v607_v33, %v537_v35  ;;  %v539_v41 = vadd.f32 %v538_v36, %v1180_v24 }
 0x10a   :  { %v542_v42 = vpop.f32.mrf.mxu0 }
 0x10b   :  { %v613_v43 = vpop.f32.mrf.mxu1  ;;  %v796_v44 = vpack.c.bf16 %v641_v39, %v640_v38  ;;  %v610_v45 = vadd.f32 %v609_v37, %v539_v41  ;;  %v543_v46 = vadd.f32 %v542_v42, %v1178_v23  ;;  %v642_v49 = vmax.f32 %v608_v40, 0.0 }
 0x10c   :  { %v544_v47 = vpop.f32.mrf.mxu0 }
 0x10d   :  { %v615_v48 = vpop.f32.mrf.mxu1  ;;  %698 = vst [vmem:[%s1220_s3] sm:$0xff] %v796_v44  ;;  %v643_v50 = vmax.f32 %v610_v45, 0.0  ;;  %v614_v51 = vadd.f32 %v613_v43, %v543_v46  ;;  %v545_v52 = vadd.f32 %v544_v47, %v1180_v24 }
 0x10e   :  { %v546_v53 = vpop.f32.mrf.mxu0 }
 0x10f   :  { %v617_v54 = vpop.f32.mrf.mxu1  ;;  %v797_v55 = vpack.c.bf16 %v643_v50, %v642_v49  ;;  %v616_v56 = vadd.f32 %v615_v48, %v545_v52  ;;  %v547_v57 = vadd.f32 %v546_v53, %v1178_v23  ;;  %v644_v60 = vmax.f32 %v614_v51, 0.0 }
 0x110   :  { %v548_v58 = vpop.f32.mrf.mxu0 }
 0x111   :  { %v619_v59 = vpop.f32.mrf.mxu1  ;;  %699 = vst [vmem:[%s1220_s3 + $0x8] sm:$0xff] %v797_v55  ;;  %v645_v61 = vmax.f32 %v616_v56, 0.0  ;;  %v618_v62 = vadd.f32 %v617_v54, %v547_v57  ;;  %v549_v63 = vadd.f32 %v548_v58, %v1180_v24 }
 0x112   :  { %v552_v0 = vpop.f32.mrf.mxu0 }
 0x113   :  { %v623_v1 = vpop.f32.mrf.mxu1  ;;  %v798_v2 = vpack.c.bf16 %v645_v61, %v644_v60  ;;  %v620_v3 = vadd.f32 %v619_v59, %v549_v63  ;;  %v553_v4 = vadd.f32 %v552_v0, %v1178_v23  ;;  %v646_v7 = vmax.f32 %v618_v62, 0.0 }
 0x114   :  { %v554_v5 = vpop.f32.mrf.mxu0 }
 0x115   :  { %v625_v6 = vpop.f32.mrf.mxu1  ;;  %700 = vst [vmem:[%s1220_s3 + $0x10] sm:$0xff] %v798_v2  ;;  %v647_v8 = vmax.f32 %v620_v3, 0.0  ;;  %v624_v9 = vadd.f32 %v623_v1, %v553_v4  ;;  %v555_v10 = vadd.f32 %v554_v5, %v1180_v24 }
 0x116   :  { %v556_v11 = vpop.f32.mrf.mxu0 }
 0x117   :  { %v627_v12 = vpop.f32.mrf.mxu1  ;;  %v799_v13 = vpack.c.bf16 %v647_v8, %v646_v7  ;;  %v626_v14 = vadd.f32 %v625_v6, %v555_v10  ;;  %v557_v15 = vadd.f32 %v556_v11, %v1178_v23  ;;  %v648_v18 = vmax.f32 %v624_v9, 0.0 }
 0x118   :  { %v558_v16 = vpop.f32.mrf.mxu0 }
 0x119   :  { %v629_v17 = vpop.f32.mrf.mxu1  ;;  %701 = vst [vmem:[%s1220_s3 + $0x18] sm:$0xff] %v799_v13  ;;  %v649_v19 = vmax.f32 %v626_v14, 0.0  ;;  %v628_v20 = vadd.f32 %v627_v12, %v557_v15  ;;  %v559_v21 = vadd.f32 %v558_v16, %v1180_v24 }
 0x11a   :  { %v562_v22 = vpop.f32.mrf.mxu0 }
 0x11b   :  { %v633_v25 = vpop.f32.mrf.mxu1  ;;  %v800_v26 = vpack.c.bf16 %v649_v19, %v648_v18  ;;  %v630_v27 = vadd.f32 %v629_v17, %v559_v21  ;;  %v563_v28 = vadd.f32 %v562_v22, %v1178_v23  ;;  %v650_v31 = vmax.f32 %v628_v20, 0.0 }
 0x11c   :  { %v564_v29 = vpop.f32.mrf.mxu0 }
 0x11d   :  { %v635_v30 = vpop.f32.mrf.mxu1  ;;  %702 = vst [vmem:[%s1220_s3 + $0x20] sm:$0xff] %v800_v26  ;;  %v651_v32 = vmax.f32 %v630_v27, 0.0  ;;  %v634_v33 = vadd.f32 %v633_v25, %v563_v28  ;;  %v565_v34 = vadd.f32 %v564_v29, %v1180_v24 }
 0x11e   :  { %v566_v35 = vpop.f32.mrf.mxu0 }
 0x11f   :  { %v637_v36 = vpop.f32.mrf.mxu1  ;;  %v801_v37 = vpack.c.bf16 %v651_v32, %v650_v31  ;;  %v636_v38 = vadd.f32 %v635_v30, %v565_v34  ;;  %v652_v23 = vmax.f32 %v634_v33, 0.0 }
 0x120   :  { %v567_v39 = vpop.f32.mrf.mxu0 }
 0x121   :  { %v638_v40 = vpop.f32.mrf.mxu1  ;;  %703 = vst [vmem:[%s1220_s3 + $0x28] sm:$0xff] %v801_v37  ;;  %v653_v41 = vmax.f32 %v636_v38, 0.0 }
 0x123   :  { %v802_v42 = vpack.c.bf16 %v653_v41, %v652_v23 }
 0x125   :  { %704 = vst [vmem:[%s1220_s3 + $0x30] sm:$0x11] %v802_v42 }

// kernel: tile.23
= control target key start
LH: loop header
LB: loop body
LE: loop exit
PB: predicated region body
PF: predicated region fallthrough
CT: control target
= control target key end

     0   :  { %s22_s0 = inlined_call_operand.vmem [shape: f32[32], index: 0, kind: input, shape index: {}]   ;;  %s23_s1 = inlined_call_operand.vmem [shape: f32[4,32], index: 1, kind: output, shape index: {}]  }
   0x1   :  { %v4_v0 = vld [vmem:[%s22_s0] ss:$0 sm:$0xff] }
   0x2   :  { %5 = vst [vmem:[%s23_s1] sm:$0xf] %v4_v0 }

// kernel: tile.24
= control target key start
LH: loop header
LB: loop body
LE: loop exit
PB: predicated region body
PF: predicated region fallthrough
CT: control target
= control target key end

     0   :  { %vm8_vm0 = vcmask 261120   ;;  %s40_s8 = smov 32   ;;  %s41_s9 = smov 64   ;;  %vm14_vm1 = vcmask 1048320   ;;  %vm20_vm2 = vcmask 785920   ;;  %vm26_vm3 = vcmask 523520   ;;  %s58_s0 = inlined_call_operand.vmem [shape: f32[4,32], index: 0, kind: input, shape index: {}]   ;;  %s59_s1 = inlined_call_operand.vmem [shape: f32[1,128], index: 1, kind: output, shape index: {}]  }
   0x1   :  { %v5_v0 = vld [vmem:[%s58_s0] sm:$0xf]  ;;  %s39_s0 = smov 96  }
   0x2   :  { %6 = vst [vmem:[#allocation1] sm:$0xf] %v5_v0 }
   0x9   :  { %v11_v1 = vld [vmem:[#allocation1 + $0x3] sm:$0x1]   ;;  %v23_v2 = vld [vmem:[#allocation1 + $0x1] sm:$0x1]   ;;  %v7_v3 = vld [vmem:[#allocation1] sm:$0x1]  }
   0xa   :  { %12 = vrot.lane.b32.xlu0 %v11_v1, %s39_s0  ;;  %24 = vrot.lane.b32.xlu1 %v23_v2, %s40_s8  ;;  %v17_v4 = vld [vmem:[#allocation1 + $0x2] sm:$0x1]   ;;  %9 = vst.msk [vmem:[#allocation0] sm:$0x1] %vm8_vm0, %v7_v3  }
   0xe   :  { %18 = vrot.lane.b32.xlu0 %v17_v4, %s41_s9 }
  0x7c   :  { %v13_v5 = vpop.permute.xlu0 %12   ;;  %v25_v6 = vpop.permute.xlu1 %24  }
  0x7d   :  { %15 = vst.msk [vmem:[#allocation0] sm:$0x1] %vm14_vm1, %v13_v5  }
  0x80   :  { %v19_v7 = vpop.permute.xlu0 %18  }
  0x81   :  { %21 = vst.msk [vmem:[#allocation0] sm:$0x1] %vm20_vm2, %v19_v7  }
  0x82   :  { %27 = vst.msk [vmem:[#allocation0] sm:$0x1] %vm26_vm3, %v25_v6  }
  0x89   :  { %v32_v8 = vld [vmem:[#allocation0] sm:$0x1] }
  0x8a   :  { %35 = vst [vmem:[%s59_s1] sm:$0x1] %v32_v8 }

// kernel: vae_forward.12
= control target key start
LH: loop header
LB: loop body
LE: loop exit
PB: predicated region body
PF: predicated region fallthrough
CT: control target
= control target key end

     0   :  { %s1005_s1 = inlined_call_operand.vmem [shape: bf16[256,128], index: 1, kind: input, shape index: {}]   ;;  %s1006_s0 = inlined_call_operand.vmem [shape: bf16[162,256], index: 0, kind: input, shape index: {}]   ;;  %s1007_s2 = inlined_call_operand.vmem [shape: f32[1,128], index: 2, kind: input, shape index: {}]   ;;  %s1008_s3 = inlined_call_operand.vmem [shape: bf16[162,128], index: 3, kind: output, shape index: {}]  }
   0x1   :  { %v767_v0 = vld [vmem:[%s1005_s1 + $0x78] sm:$0xff]   ;;  %v769_v2 = vld [vmem:[%s1005_s1 + $0x70] sm:$0xff]   ;;  %v771_v4 = vld [vmem:[%s1005_s1 + $0x68] sm:$0xff]  }
   0x2   :  { %v768_v1 = vld [vmem:[%s1005_s1 + $0x38] sm:$0xff]   ;;  %669 = vmatprep.subr.bf16.mxu0 %v767_v0  ;;  %751 = vmatprep.subr.bf16.mxu1 %v767_v0  ;;  %v770_v3 = vld [vmem:[%s1005_s1 + $0x30] sm:$0xff]   ;;  %v772_v5 = vld [vmem:[%s1005_s1 + $0x28] sm:$0xff]  }
   0x3   :  { %670 = vmatpush3.bf16.msra.mxu0 %v768_v1  ;;  %759 = vmatpush3.bf16.msra.mxu1 %v768_v1  ;;  %v773_v6 = vld [vmem:[%s1005_s1 + $0x60] sm:$0xff]   ;;  %v775_v8 = vld [vmem:[%s1005_s1 + $0x58] sm:$0xff]   ;;  %v777_v10 = vld [vmem:[%s1005_s1 + $0x50] sm:$0xff]  }
   0x4   :  { %671 = vmatprep.subr.bf16.mxu0 %v769_v2  ;;  %752 = vmatprep.subr.bf16.mxu1 %v769_v2  ;;  %v774_v7 = vld [vmem:[%s1005_s1 + $0x20] sm:$0xff]   ;;  %v776_v9 = vld [vmem:[%s1005_s1 + $0x18] sm:$0xff]   ;;  %v778_v13 = vld [vmem:[%s1005_s1 + $0x10] sm:$0xff]  }
   0x5   :  { %v785_v11 = vld [vmem:[%s1006_s0 + $0x4] ss:$8 sps:$4 sm:$0xff]   ;;  %v783_v18 = vld [vmem:[%s1006_s0] ss:$8 sps:$4 sm:$0xff]   ;;  %v789_v20 = vld [vmem:[%s1006_s0 + $0x14] ss:$8 sps:$4 sm:$0xff]  }
   0x6   :  { %v788_v12 = vld [vmem:[%s1006_s0 + $0x64] ss:$8 sps:$4 sm:$0xff]   ;;  %310 = vmatprep.mubr.bf16.mxu0 %v785_v11  ;;  %v786_v19 = vld [vmem:[%s1006_s0 + $0x60] ss:$8 sps:$4 sm:$0xff]   ;;  %v792_v21 = vld [vmem:[%s1006_s0 + $0x74] ss:$8 sps:$4 sm:$0xff]  }
   0x7   :  { %672 = vmatpush3.bf16.msra.mxu0 %v770_v3  ;;  %760 = vmatpush3.bf16.msra.mxu1 %v770_v3  ;;  %v779_v14 = vld [vmem:[%s1005_s1 + $0x48] sm:$0xff]   ;;  %v781_v16 = vld [vmem:[%s1005_s1 + $0x40] sm:$0xff]   ;;  %v791_v22 = vld [vmem:[%s1006_s0 + $0x10] ss:$8 sps:$4 sm:$0xff]  }
   0x8   :  { %673 = vmatprep.subr.bf16.mxu0 %v771_v4  ;;  %753 = vmatprep.subr.bf16.mxu1 %v771_v4  ;;  %v780_v15 = vld [vmem:[%s1005_s1 + $0x8] sm:$0xff]   ;;  %v782_v17 = vld [vmem:[%s1005_s1] sm:$0xff]   ;;  %v794_v23 = vld [vmem:[%s1006_s0 + $0x70] ss:$8 sps:$4 sm:$0xff]  }
   0x9   :  { %358 = vmatprep.mubr.bf16.mxu1 %v788_v12  ;;  %v795_v24 = vld [vmem:[%s1006_s0 + $0x24] ss:$8 sps:$4 sm:$0xff]   ;;  %v797_v26 = vld [vmem:[%s1006_s0 + $0x20] ss:$8 sps:$4 sm:$0xff]   ;;  %v801_v28 = vld [vmem:[%s1006_s0 + $0x34] ss:$8 sps:$4 sm:$0xff]  }
   0xa   :  { %v798_v25 = vld [vmem:[%s1006_s0 + $0x84] ss:$8 sps:$4 sm:$0xff]   ;;  %v800_v27 = vld [vmem:[%s1006_s0 + $0x80] ss:$8 sps:$4 sm:$0xff]   ;;  %v804_v29 = vld [vmem:[%s1006_s0 + $0x94] ss:$8 sps:$4 sm:$0xff]  }
   0xb   :  { %674 = vmatpush3.bf16.msra.mxu0 %v772_v5  ;;  %761 = vmatpush3.bf16.msra.mxu1 %v772_v5  ;;  %v35_v30 = vld [vmem:[%s1006_s0 + $0xa0] sm:$0x11]  ;;  %v803_v31 = vld [vmem:[%s1006_s0 + $0x30] ss:$8 sps:$4 sm:$0xff]   ;;  %v812_v37 = vld [vmem:[%s1006_s0 + $0x54] ss:$8 sps:$4 sm:$0xff]  }
   0xc   :  { %675 = vmatprep.subr.bf16.mxu0 %v773_v6  ;;  %754 = vmatprep.subr.bf16.mxu1 %v773_v6  ;;  %v806_v32 = vld [vmem:[%s1006_s0 + $0x90] ss:$8 sps:$4 sm:$0xff]   ;;  %v807_v33 = vld [vmem:[%s1006_s0 + $0x44] ss:$8 sps:$4 sm:$0xff]   ;;  %v551_v34 = vcombine.high %v35_v30, %v35_v30  ;;  %v809_v35 = vld [vmem:[%s1006_s0 + $0x40] ss:$8 sps:$4 sm:$0xff]   ;;  %v550_v36 = vcombine.low %v35_v30, %v35_v30 }
   0xd   :  { %v814_v38 = vld [vmem:[%s1006_s0 + $0x50] ss:$8 sps:$4 sm:$0xff]   ;;  %v949_v43 = vld [vmem:[%s1007_s2] ss:$0 sm:$0xff] }
   0xf   :  { %676 = vmatpush3.bf16.msra.mxu0 %v774_v7  ;;  %762 = vmatpush3.bf16.msra.mxu1 %v774_v7 }
  0x10   :  { %677 = vmatprep.subr.bf16.mxu0 %v775_v8  ;;  %755 = vmatprep.subr.bf16.mxu1 %v775_v8 }
  0x13   :  { %678 = vmatpush3.bf16.msra.mxu0 %v776_v9  ;;  %763 = vmatpush3.bf16.msra.mxu1 %v776_v9 }
  0x14   :  { %679 = vmatprep.subr.bf16.mxu0 %v777_v10  ;;  %756 = vmatprep.subr.bf16.mxu1 %v777_v10 }
  0x17   :  { %680 = vmatpush3.bf16.msra.mxu0 %v778_v13  ;;  %764 = vmatpush3.bf16.msra.mxu1 %v778_v13 }
  0x18   :  { %681 = vmatprep.subr.bf16.mxu0 %v779_v14  ;;  %757 = vmatprep.subr.bf16.mxu1 %v779_v14 }
  0x1b   :  { %682 = vmatpush3.bf16.msra.mxu0 %v780_v15  ;;  %765 = vmatpush3.bf16.msra.mxu1 %v780_v15 }
  0x1c   :  { %683 = vmatprep.subr.bf16.mxu0 %v781_v16  ;;  %758 = vmatprep.subr.bf16.mxu1 %v781_v16 }
  0x1f   :  { %684 = vmatpush3.bf16.msra.mxu0 %v782_v17  ;;  %766 = vmatpush3.bf16.msra.mxu1 %v782_v17 }
  0x22   :  { %311 = vmatmul.mubr.bf16.vlgmr.msra.gmra.mxu0 %v783_v18  ;;  %359 = vmatmul.mubr.bf16.vlgmr.msra.gmra.mxu1 %v786_v19 }
  0x23   :  { %318 = vmatprep.mubr.bf16.mxu0 %v789_v20  ;;  %366 = vmatprep.mubr.bf16.mxu1 %v792_v21 }
  0x2a   :  { %319 = vmatmul.mubr.bf16.gmra.mxu0 %v791_v22  ;;  %367 = vmatmul.mubr.bf16.gmra.mxu1 %v794_v23 }
  0x2b   :  { %326 = vmatprep.mubr.bf16.mxu0 %v795_v24  ;;  %374 = vmatprep.mubr.bf16.mxu1 %v798_v25 }
  0x32   :  { %327 = vmatmul.mubr.bf16.gmra.mxu0 %v797_v26  ;;  %375 = vmatmul.mubr.bf16.gmra.mxu1 %v800_v27 }
  0x33   :  { %334 = vmatprep.mubr.bf16.mxu0 %v801_v28  ;;  %382 = vmatprep.mubr.bf16.mxu1 %v804_v29 }
  0x3a   :  { %335 = vmatmul.mubr.bf16.gmra.mxu0 %v803_v31  ;;  %383 = vmatmul.mubr.bf16.gmra.mxu1 %v806_v32 }
  0x3b   :  { %342 = vmatprep.mubr.bf16.mxu0 %v807_v33  ;;  %390 = vmatprep.mubr.bf16.mxu1 %v551_v34 }
  0x42   :  { %343 = vmatmul.mubr.bf16.gmra.mxu0 %v809_v35  ;;  %391 = vmatmul.mubr.bf16.gmra.mxu1 %v550_v36 }
  0x43   :  { %350 = vmatprep.mubr.bf16.mxu0 %v812_v37 }
  0x4a   :  { %351 = vmatmul.mubr.bf16.gmra.mxu0 %v814_v38 }
  0xe2   :  { %v685_v39 = vpop.f32.mrf.mxu0  ;;  %v721_v40 = vpop.f32.mrf.mxu1 }
  0xe4   :  { %v686_v41 = vpop.f32.mrf.mxu0  ;;  %v722_v42 = vpop.f32.mrf.mxu1 }
  0xe5   :  { %v687_v44 = vadd.f32 %v686_v41, %v685_v39  ;;  %v723_v45 = vadd.f32 %v722_v42, %v721_v40 }
  0xe6   :  { %v688_v46 = vpop.f32.mrf.mxu0  ;;  %v724_v47 = vpop.f32.mrf.mxu1 }
  0xe7   :  { %v361_v48 = vadd.f32 %v723_v45, %v949_v43  ;;  %v313_v49 = vadd.f32 %v687_v44, %v949_v43 }
  0xe8   :  { %v689_v50 = vpop.f32.mrf.mxu0  ;;  %v725_v51 = vpop.f32.mrf.mxu1 }
  0xe9   :  { %v690_v52 = vadd.f32 %v689_v50, %v688_v46  ;;  %v726_v53 = vadd.f32 %v725_v51, %v724_v47  ;;  %v410_v57 = vmax.f32 %v361_v48, 0.0  ;;  %v398_v59 = vmax.f32 %v313_v49, 0.0 }
  0xea   :  { %v691_v54 = vpop.f32.mrf.mxu0  ;;  %v727_v55 = vpop.f32.mrf.mxu1 }
  0xeb   :  { %v316_v56 = vadd.f32 %v690_v52, %v949_v43  ;;  %v364_v58 = vadd.f32 %v726_v53, %v949_v43 }
  0xec   :  { %v692_v60 = vpop.f32.mrf.mxu0  ;;  %v728_v61 = vpop.f32.mrf.mxu1 }
  0xed   :  { %v399_v62 = vmax.f32 %v316_v56, 0.0  ;;  %v693_v63 = vadd.f32 %v692_v60, %v691_v54  ;;  %v411_v0 = vmax.f32 %v364_v58, 0.0  ;;  %v729_v1 = vadd.f32 %v728_v61, %v727_v55 }
  0xee   :  { %v694_v2 = vpop.f32.mrf.mxu0  ;;  %v730_v3 = vpop.f32.mrf.mxu1 }
  0xef   :  { %v613_v4 = vpack.c.bf16 %v399_v62, %v398_v59  ;;  %v643_v5 = vpack.c.bf16 %v411_v0, %v410_v57  ;;  %v369_v6 = vadd.f32 %v729_v1, %v949_v43  ;;  %v321_v7 = vadd.f32 %v693_v63, %v949_v43 }
  0xf0   :  { %v695_v8 = vpop.f32.mrf.mxu0  ;;  %v731_v9 = vpop.f32.mrf.mxu1 }
  0xf1   :  { %614 = vst [vmem:[%s1008_s3] sm:$0xff] %v613_v4   ;;  %665 = vst [vmem:[%s1008_s3 + $0x30] sm:$0xff] %v643_v5   ;;  %v696_v10 = vadd.f32 %v695_v8, %v694_v2  ;;  %v732_v11 = vadd.f32 %v731_v9, %v730_v3  ;;  %v412_v15 = vmax.f32 %v369_v6, 0.0  ;;  %v400_v17 = vmax.f32 %v321_v7, 0.0 }
  0xf2   :  { %v697_v12 = vpop.f32.mrf.mxu0  ;;  %v733_v13 = vpop.f32.mrf.mxu1 }
  0xf3   :  { %v324_v14 = vadd.f32 %v696_v10, %v949_v43  ;;  %v372_v16 = vadd.f32 %v732_v11, %v949_v43 }
  0xf4   :  { %v698_v18 = vpop.f32.mrf.mxu0  ;;  %v734_v19 = vpop.f32.mrf.mxu1 }
  0xf5   :  { %v401_v20 = vmax.f32 %v324_v14, 0.0  ;;  %v699_v21 = vadd.f32 %v698_v18, %v697_v12  ;;  %v413_v22 = vmax.f32 %v372_v16, 0.0  ;;  %v735_v23 = vadd.f32 %v734_v19, %v733_v13 }
  0xf6   :  { %v700_v24 = vpop.f32.mrf.mxu0  ;;  %v736_v25 = vpop.f32.mrf.mxu1 }
  0xf7   :  { %v618_v26 = vpack.c.bf16 %v401_v20, %v400_v17  ;;  %v648_v27 = vpack.c.bf16 %v413_v22, %v412_v15  ;;  %v377_v28 = vadd.f32 %v735_v23, %v949_v43  ;;  %v329_v29 = vadd.f32 %v699_v21, %v949_v43 }
  0xf8   :  { %v701_v30 = vpop.f32.mrf.mxu0  ;;  %v737_v31 = vpop.f32.mrf.mxu1 }
  0xf9   :  { %660 = vst [vmem:[%s1008_s3 + $0x8] sm:$0xff] %v618_v26   ;;  %666 = vst [vmem:[%s1008_s3 + $0x38] sm:$0xff] %v648_v27   ;;  %v702_v32 = vadd.f32 %v701_v30, %v700_v24  ;;  %v738_v33 = vadd.f32 %v737_v31, %v736_v25  ;;  %v414_v37 = vmax.f32 %v377_v28, 0.0  ;;  %v402_v39 = vmax.f32 %v329_v29, 0.0 }
  0xfa   :  { %v703_v34 = vpop.f32.mrf.mxu0  ;;  %v739_v35 = vpop.f32.mrf.mxu1 }
  0xfb   :  { %v332_v36 = vadd.f32 %v702_v32, %v949_v43  ;;  %v380_v38 = vadd.f32 %v738_v33, %v949_v43 }
  0xfc   :  { %v704_v40 = vpop.f32.mrf.mxu0  ;;  %v740_v41 = vpop.f32.mrf.mxu1 }
  0xfd   :  { %v403_v42 = vmax.f32 %v332_v36, 0.0  ;;  %v705_v44 = vadd.f32 %v704_v40, %v703_v34  ;;  %v415_v45 = vmax.f32 %v380_v38, 0.0  ;;  %v741_v46 = vadd.f32 %v740_v41, %v739_v35 }
  0xfe   :  { %v706_v47 = vpop.f32.mrf.mxu0  ;;  %v742_v48 = vpop.f32.mrf.mxu1 }
  0xff   :  { %v623_v49 = vpack.c.bf16 %v403_v42, %v402_v39  ;;  %v653_v50 = vpack.c.bf16 %v415_v45, %v414_v37  ;;  %v385_v51 = vadd.f32 %v741_v46, %v949_v43  ;;  %v337_v52 = vadd.f32 %v705_v44, %v949_v43 }
 0x100   :  { %v707_v53 = vpop.f32.mrf.mxu0  ;;  %v743_v54 = vpop.f32.mrf.mxu1 }
 0x101   :  { %661 = vst [vmem:[%s1008_s3 + $0x10] sm:$0xff] %v623_v49   ;;  %667 = vst [vmem:[%s1008_s3 + $0x40] sm:$0xff] %v653_v50   ;;  %v708_v55 = vadd.f32 %v707_v53, %v706_v47  ;;  %v744_v56 = vadd.f32 %v743_v54, %v742_v48  ;;  %v416_v60 = vmax.f32 %v385_v51, 0.0  ;;  %v404_v62 = vmax.f32 %v337_v52, 0.0 }
 0x102   :  { %v709_v57 = vpop.f32.mrf.mxu0  ;;  %v745_v58 = vpop.f32.mrf.mxu1 }
 0x103   :  { %v340_v59 = vadd.f32 %v708_v55, %v949_v43  ;;  %v388_v61 = vadd.f32 %v744_v56, %v949_v43 }
 0x104   :  { %v710_v63 = vpop.f32.mrf.mxu0  ;;  %v746_v0 = vpop.f32.mrf.mxu1 }
 0x105   :  { %v405_v1 = vmax.f32 %v340_v59, 0.0  ;;  %v711_v2 = vadd.f32 %v710_v63, %v709_v57  ;;  %v417_v3 = vmax.f32 %v388_v61, 0.0  ;;  %v747_v4 = vadd.f32 %v746_v0, %v745_v58 }
 0x106   :  { %v712_v5 = vpop.f32.mrf.mxu0  ;;  %v748_v6 = vpop.f32.mrf.mxu1 }
 0x107   :  { %v628_v7 = vpack.c.bf16 %v405_v1, %v404_v62  ;;  %v658_v8 = vpack.c.bf16 %v417_v3, %v416_v60  ;;  %v393_v9 = vadd.f32 %v747_v4, %v949_v43  ;;  %v345_v12 = vadd.f32 %v711_v2, %v949_v43 }
 0x108   :  { %v713_v10 = vpop.f32.mrf.mxu0  ;;  %v749_v11 = vpop.f32.mrf.mxu1 }
 0x109   :  { %662 = vst [vmem:[%s1008_s3 + $0x18] sm:$0xff] %v628_v7   ;;  %668 = vst [vmem:[%s1008_s3 + $0x48] sm:$0xff] %v658_v8   ;;  %v714_v13 = vadd.f32 %v713_v10, %v712_v5  ;;  %v418_v14 = vmax.f32 %v393_v9, 0.0  ;;  %v406_v19 = vmax.f32 %v345_v12, 0.0 }
 0x10a   :  { %v715_v15 = vpop.f32.mrf.mxu0 }
 0x10b   :  { %v348_v16 = vadd.f32 %v714_v13, %v949_v43  ;;  %v609_v17 = vpack.c.bf16 %v418_v14, %v418_v14 }
 0x10c   :  { %v716_v18 = vpop.f32.mrf.mxu0 }
 0x10d   :  { %v407_v20 = vmax.f32 %v348_v16, 0.0  ;;  %524 = vst [vmem:[%s1008_s3 + $0x50] sm:$0x1] %v609_v17  ;;  %v717_v21 = vadd.f32 %v716_v18, %v715_v15 }
 0x10e   :  { %v718_v22 = vpop.f32.mrf.mxu0 }
 0x10f   :  { %v633_v23 = vpack.c.bf16 %v407_v20, %v406_v19  ;;  %v353_v25 = vadd.f32 %v717_v21, %v949_v43 }
 0x110   :  { %v719_v24 = vpop.f32.mrf.mxu0 }
 0x111   :  { %663 = vst [vmem:[%s1008_s3 + $0x20] sm:$0xff] %v633_v23   ;;  %v720_v26 = vadd.f32 %v719_v24, %v718_v22  ;;  %v408_v28 = vmax.f32 %v353_v25, 0.0 }
 0x113   :  { %v356_v27 = vadd.f32 %v720_v26, %v949_v43 }
 0x115   :  { %v409_v29 = vmax.f32 %v356_v27, 0.0 }
 0x117   :  { %v638_v30 = vpack.c.bf16 %v409_v29, %v408_v28 }
 0x119   :  { %664 = vst [vmem:[%s1008_s3 + $0x28] sm:$0xff] %v638_v30  }

// kernel: tile.28
= control target key start
LH: loop header
LB: loop body
LE: loop exit
PB: predicated region body
PF: predicated region fallthrough
CT: control target
= control target key end

     0   :  { %s22_s0 = inlined_call_operand.vmem [shape: f32[3], index: 0, kind: input, shape index: {}]   ;;  %s23_s1 = inlined_call_operand.vmem [shape: f32[4,3], index: 1, kind: output, shape index: {}]  }
   0x1   :  { %v4_v0 = vld [vmem:[%s22_s0] ss:$0 sm:$0xff] }
   0x2   :  { %5 = vst [vmem:[%s23_s1] sm:$0xf] %v4_v0 }

// kernel: tile.29
= control target key start
LH: loop header
LB: loop body
LE: loop exit
PB: predicated region body
PF: predicated region fallthrough
CT: control target
= control target key end

     0   :  { %vm8_vm0 = vcmask 23552   ;;  %s40_s8 = smov 3   ;;  %s41_s9 = smov 6   ;;  %vm14_vm1 = vcmask 97352   ;;  %vm20_vm2 = vcmask 72752   ;;  %vm26_vm3 = vcmask 48152   ;;  %s58_s0 = inlined_call_operand.vmem [shape: f32[4,3], index: 0, kind: input, shape index: {}]   ;;  %s59_s1 = inlined_call_operand.vmem [shape: f32[1,12], index: 1, kind: output, shape index: {}]  }
   0x1   :  { %v5_v0 = vld [vmem:[%s58_s0] sm:$0xf]  ;;  %s39_s0 = smov 9  }
   0x2   :  { %6 = vst [vmem:[#allocation1] sm:$0xf] %v5_v0 }
   0x9   :  { %v11_v1 = vld [vmem:[#allocation1 + $0x3] sm:$0x1]   ;;  %v23_v2 = vld [vmem:[#allocation1 + $0x1] sm:$0x1]   ;;  %v7_v3 = vld [vmem:[#allocation1] sm:$0x1]  }
   0xa   :  { %12 = vrot.lane.b32.xlu0 %v11_v1, %s39_s0  ;;  %24 = vrot.lane.b32.xlu1 %v23_v2, %s40_s8  ;;  %v17_v4 = vld [vmem:[#allocation1 + $0x2] sm:$0x1]   ;;  %9 = vst.msk [vmem:[#allocation0] sm:$0x1] %vm8_vm0, %v7_v3  }
   0xe   :  { %18 = vrot.lane.b32.xlu0 %v17_v4, %s41_s9 }
  0x7c   :  { %v13_v5 = vpop.permute.xlu0 %12   ;;  %v25_v6 = vpop.permute.xlu1 %24  }
  0x7d   :  { %15 = vst.msk [vmem:[#allocation0] sm:$0x1] %vm14_vm1, %v13_v5  }
  0x80   :  { %v19_v7 = vpop.permute.xlu0 %18  }
  0x81   :  { %21 = vst.msk [vmem:[#allocation0] sm:$0x1] %vm20_vm2, %v19_v7  }
  0x82   :  { %27 = vst.msk [vmem:[#allocation0] sm:$0x1] %vm26_vm3, %v25_v6  }
  0x89   :  { %v32_v8 = vld [vmem:[#allocation0] sm:$0x1] }
  0x8a   :  { %35 = vst [vmem:[%s59_s1] sm:$0x1] %v32_v8 }

// kernel: vae_forward.13
= control target key start
LH: loop header
LB: loop body
LE: loop exit
PB: predicated region body
PF: predicated region fallthrough
CT: control target
= control target key end

     0   :  { %v1908_v0 = vmov 0.0   ;;  %vm1909_vm0 = vmmov 0   ;;  %vm1145_vm1 = vcmask 97280   ;;  %vm1218_vm2 = vcmask 91136   ;;  %s2529_s1 = inlined_call_operand.vmem [shape: bf16[128,12], index: 1, kind: input, shape index: {}]   ;;  %s2530_s0 = inlined_call_operand.vmem [shape: bf16[578,128], index: 0, kind: input, shape index: {}]   ;;  %s2531_s2 = inlined_call_operand.vmem [shape: f32[1,12], index: 2, kind: input, shape index: {}]   ;;  %s2532_s3 = inlined_call_operand.vmem [shape: f32[578,12], index: 3, kind: output, shape index: {}]  }
   0x1   :  { %1388 = vmatprep.subr.bf16.mxu0 %v1908_v0  ;;  %v1570_v1 = vld [vmem:[%s2529_s1 + $0x38] sm:$0xff]   ;;  %1552 = vmatprep.subr.bf16.mxu1 %v1908_v0  ;;  %v1571_v2 = vld [vmem:[%s2529_s1 + $0x30] sm:$0xff]   ;;  %v1572_v3 = vld [vmem:[%s2529_s1 + $0x28] sm:$0xff]  }
   0x2   :  { %1404 = vmatprep.mubr.msk.bf16.mxu0 %vm1909_vm0, %v1908_v0  ;;  %1480 = vmatprep.mubr.msk.bf16.mxu1 %vm1909_vm0, %v1908_v0  ;;  %v1573_v4 = vld [vmem:[%s2529_s1 + $0x20] sm:$0xff]   ;;  %v1574_v5 = vld [vmem:[%s2529_s1 + $0x18] sm:$0xff]   ;;  %v1575_v6 = vld [vmem:[%s2529_s1 + $0x10] sm:$0xff]  }
   0x3   :  { %1389 = vmatpush3.bf16.msra.mxu0 %v1570_v1  ;;  %1560 = vmatpush3.bf16.msra.mxu1 %v1570_v1  ;;  %v1576_v7 = vld [vmem:[%s2529_s1 + $0x8] sm:$0xff]   ;;  %v1577_v8 = vld [vmem:[%s2529_s1] sm:$0xff]   ;;  %v1579_v10 = vld [vmem:[%s2530_s0 + $0x98] sm:$0xff]  }
   0x4   :  { %1390 = vmatprep.subr.bf16.mxu0 %v1908_v0  ;;  %1553 = vmatprep.subr.bf16.mxu1 %v1908_v0  ;;  %v1578_v9 = vld [vmem:[%s2530_s0] sm:$0xff]   ;;  %v1580_v11 = vld [vmem:[%s2530_s0 + $0x8] sm:$0xff]   ;;  %v1582_v13 = vld [vmem:[%s2530_s0 + $0x10] sm:$0xff]  }
   0x5   :  { %v1581_v12 = vld [vmem:[%s2530_s0 + $0xa0] sm:$0xff]   ;;  %v1583_v14 = vld [vmem:[%s2530_s0 + $0xa8] sm:$0xff]   ;;  %v1584_v15 = vld [vmem:[%s2530_s0 + $0x18] sm:$0xff]  }
   0x6   :  { %v1585_v16 = vld [vmem:[%s2530_s0 + $0xb0] sm:$0xff]   ;;  %v1586_v17 = vld [vmem:[%s2530_s0 + $0x20] sm:$0xff]   ;;  %v1587_v18 = vld [vmem:[%s2530_s0 + $0xb8] sm:$0xff]  }
   0x7   :  { %1391 = vmatpush3.bf16.msra.mxu0 %v1571_v2  ;;  %1561 = vmatpush3.bf16.msra.mxu1 %v1571_v2  ;;  %v1588_v19 = vld [vmem:[%s2530_s0 + $0x28] sm:$0xff]   ;;  %v1589_v20 = vld [vmem:[%s2530_s0 + $0xc0] sm:$0xff]   ;;  %v1590_v21 = vld [vmem:[%s2530_s0 + $0x30] sm:$0xff]  }
   0x8   :  { %1392 = vmatprep.subr.bf16.mxu0 %v1908_v0  ;;  %1554 = vmatprep.subr.bf16.mxu1 %v1908_v0  ;;  %v1591_v22 = vld [vmem:[%s2530_s0 + $0xc8] sm:$0xff]   ;;  %v1592_v23 = vld [vmem:[%s2530_s0 + $0x38] sm:$0xff]   ;;  %v1593_v24 = vld [vmem:[%s2530_s0 + $0xd0] sm:$0xff]  }
   0x9   :  { %v1594_v25 = vld [vmem:[%s2530_s0 + $0x40] sm:$0xff]   ;;  %v1595_v26 = vld [vmem:[%s2530_s0 + $0xd8] sm:$0xff]   ;;  %v1596_v27 = vld [vmem:[%s2530_s0 + $0x48] sm:$0xff]  }
   0xa   :  { %v1597_v28 = vld [vmem:[%s2530_s0 + $0xe0] sm:$0xff]   ;;  %v1598_v29 = vld [vmem:[%s2530_s0 + $0x50] sm:$0xff]   ;;  %v1599_v30 = vld [vmem:[%s2530_s0 + $0xe8] sm:$0xff]  }
   0xb   :  { %1393 = vmatpush3.bf16.msra.mxu0 %v1572_v3  ;;  %1562 = vmatpush3.bf16.msra.mxu1 %v1572_v3  ;;  %v1600_v31 = vld [vmem:[%s2530_s0 + $0x58] sm:$0xff]   ;;  %v1601_v32 = vld [vmem:[%s2530_s0 + $0xf0] sm:$0xff]   ;;  %v1602_v33 = vld [vmem:[%s2530_s0 + $0x60] sm:$0xff]  }
   0xc   :  { %1394 = vmatprep.subr.bf16.mxu0 %v1908_v0  ;;  %1555 = vmatprep.subr.bf16.mxu1 %v1908_v0  ;;  %v1603_v34 = vld [vmem:[%s2530_s0 + $0xf8] sm:$0xff]   ;;  %v1604_v35 = vld [vmem:[%s2530_s0 + $0x68] sm:$0xff]   ;;  %v1605_v36 = vld [vmem:[%s2530_s0 + $0x100] sm:$0xff]  }
   0xd   :  { %v1606_v37 = vld [vmem:[%s2530_s0 + $0x70] sm:$0xff]   ;;  %v1607_v38 = vld [vmem:[%s2530_s0 + $0x108] sm:$0xff]   ;;  %v1608_v39 = vld [vmem:[%s2530_s0 + $0x78] sm:$0xff]  }
   0xe   :  { %v1609_v40 = vld [vmem:[%s2530_s0 + $0x110] sm:$0xff]   ;;  %v1610_v41 = vld [vmem:[%s2530_s0 + $0x80] sm:$0xff]   ;;  %v1611_v42 = vld [vmem:[%s2530_s0 + $0x118] sm:$0xff]  }
   0xf   :  { %1395 = vmatpush3.bf16.msra.mxu0 %v1573_v4  ;;  %1563 = vmatpush3.bf16.msra.mxu1 %v1573_v4  ;;  %v1612_v43 = vld [vmem:[%s2530_s0 + $0x88] sm:$0xff]   ;;  %v1613_v44 = vld [vmem:[%s2530_s0 + $0x120] ss:$0 sps:$4 sm:$0x11]   ;;  %v1614_v45 = vld [vmem:[%s2530_s0 + $0x90] sm:$0xff]  }
  0x10   :  { %1396 = vmatprep.subr.bf16.mxu0 %v1908_v0  ;;  %1556 = vmatprep.subr.bf16.mxu1 %v1908_v0  ;;  %v2158_v46 = vld [vmem:[%s2531_s2] ss:$0 sm:$0xff] }
  0x13   :  { %1397 = vmatpush3.bf16.msra.mxu0 %v1574_v5  ;;  %1564 = vmatpush3.bf16.msra.mxu1 %v1574_v5 }
  0x14   :  { %1398 = vmatprep.subr.bf16.mxu0 %v1908_v0  ;;  %1557 = vmatprep.subr.bf16.mxu1 %v1908_v0 }
  0x17   :  { %1399 = vmatpush3.bf16.msra.mxu0 %v1575_v6  ;;  %1565 = vmatpush3.bf16.msra.mxu1 %v1575_v6 }
  0x18   :  { %1400 = vmatprep.subr.bf16.mxu0 %v1908_v0  ;;  %1558 = vmatprep.subr.bf16.mxu1 %v1908_v0 }
  0x1b   :  { %1401 = vmatpush3.bf16.msra.mxu0 %v1576_v7  ;;  %1566 = vmatpush3.bf16.msra.mxu1 %v1576_v7 }
  0x1c   :  { %1402 = vmatprep.subr.bf16.mxu0 %v1908_v0  ;;  %1559 = vmatprep.subr.bf16.mxu1 %v1908_v0 }
  0x1f   :  { %1403 = vmatpush3.bf16.msra.mxu0 %v1577_v8  ;;  %1567 = vmatpush3.bf16.msra.mxu1 %v1577_v8 }
  0x22   :  { %1405 = vmatmul.mubr.bf16.vlgmr.msra.gmra.mxu0 %v1578_v9  ;;  %1481 = vmatmul.mubr.bf16.vlgmr.msra.gmra.mxu1 %v1579_v10 }
  0x23   :  { %1408 = vmatprep.mubr.msk.bf16.mxu0 %vm1909_vm0, %v1908_v0  ;;  %1484 = vmatprep.mubr.msk.bf16.mxu1 %vm1909_vm0, %v1908_v0 }
  0x2a   :  { %1409 = vmatmul.mubr.bf16.gmra.mxu0 %v1580_v11  ;;  %1485 = vmatmul.mubr.bf16.gmra.mxu1 %v1581_v12 }
  0x2b   :  { %1412 = vmatprep.mubr.msk.bf16.mxu0 %vm1909_vm0, %v1908_v0  ;;  %1488 = vmatprep.mubr.msk.bf16.mxu1 %vm1909_vm0, %v1908_v0 }
  0x32   :  { %1413 = vmatmul.mubr.bf16.gmra.mxu0 %v1582_v13  ;;  %1489 = vmatmul.mubr.bf16.gmra.mxu1 %v1583_v14 }
  0x33   :  { %1416 = vmatprep.mubr.msk.bf16.mxu0 %vm1909_vm0, %v1908_v0  ;;  %1492 = vmatprep.mubr.msk.bf16.mxu1 %vm1909_vm0, %v1908_v0 }
  0x3a   :  { %1417 = vmatmul.mubr.bf16.gmra.mxu0 %v1584_v15  ;;  %1493 = vmatmul.mubr.bf16.gmra.mxu1 %v1585_v16 }
  0x3b   :  { %1420 = vmatprep.mubr.msk.bf16.mxu0 %vm1909_vm0, %v1908_v0  ;;  %1496 = vmatprep.mubr.msk.bf16.mxu1 %vm1909_vm0, %v1908_v0 }
  0x42   :  { %1421 = vmatmul.mubr.bf16.gmra.mxu0 %v1586_v17  ;;  %1497 = vmatmul.mubr.bf16.gmra.mxu1 %v1587_v18 }
  0x43   :  { %1424 = vmatprep.mubr.msk.bf16.mxu0 %vm1909_vm0, %v1908_v0  ;;  %1500 = vmatprep.mubr.msk.bf16.mxu1 %vm1909_vm0, %v1908_v0 }
  0x4a   :  { %1425 = vmatmul.mubr.bf16.gmra.mxu0 %v1588_v19  ;;  %1501 = vmatmul.mubr.bf16.gmra.mxu1 %v1589_v20 }
  0x4b   :  { %1428 = vmatprep.mubr.msk.bf16.mxu0 %vm1909_vm0, %v1908_v0  ;;  %1504 = vmatprep.mubr.msk.bf16.mxu1 %vm1909_vm0, %v1908_v0 }
  0x52   :  { %1429 = vmatmul.mubr.bf16.gmra.mxu0 %v1590_v21  ;;  %1505 = vmatmul.mubr.bf16.gmra.mxu1 %v1591_v22 }
  0x53   :  { %1432 = vmatprep.mubr.msk.bf16.mxu0 %vm1909_vm0, %v1908_v0  ;;  %1508 = vmatprep.mubr.msk.bf16.mxu1 %vm1909_vm0, %v1908_v0 }
  0x5a   :  { %1433 = vmatmul.mubr.bf16.gmra.mxu0 %v1592_v23  ;;  %1509 = vmatmul.mubr.bf16.gmra.mxu1 %v1593_v24 }
  0x5b   :  { %1436 = vmatprep.mubr.msk.bf16.mxu0 %vm1909_vm0, %v1908_v0  ;;  %1512 = vmatprep.mubr.msk.bf16.mxu1 %vm1909_vm0, %v1908_v0 }
  0x62   :  { %1437 = vmatmul.mubr.bf16.gmra.mxu0 %v1594_v25  ;;  %1513 = vmatmul.mubr.bf16.gmra.mxu1 %v1595_v26 }
  0x63   :  { %1440 = vmatprep.mubr.msk.bf16.mxu0 %vm1909_vm0, %v1908_v0  ;;  %1516 = vmatprep.mubr.msk.bf16.mxu1 %vm1909_vm0, %v1908_v0 }
  0x6a   :  { %1441 = vmatmul.mubr.bf16.gmra.mxu0 %v1596_v27  ;;  %1517 = vmatmul.mubr.bf16.gmra.mxu1 %v1597_v28 }
  0x6b   :  { %1444 = vmatprep.mubr.msk.bf16.mxu0 %vm1909_vm0, %v1908_v0  ;;  %1520 = vmatprep.mubr.msk.bf16.mxu1 %vm1909_vm0, %v1908_v0 }
  0x72   :  { %1445 = vmatmul.mubr.bf16.gmra.mxu0 %v1598_v29  ;;  %1521 = vmatmul.mubr.bf16.gmra.mxu1 %v1599_v30 }
  0x73   :  { %1448 = vmatprep.mubr.msk.bf16.mxu0 %vm1909_vm0, %v1908_v0  ;;  %1524 = vmatprep.mubr.msk.bf16.mxu1 %vm1909_vm0, %v1908_v0 }
  0x7a   :  { %1449 = vmatmul.mubr.bf16.gmra.mxu0 %v1600_v31  ;;  %1525 = vmatmul.mubr.bf16.gmra.mxu1 %v1601_v32 }
  0x7b   :  { %1452 = vmatprep.mubr.msk.bf16.mxu0 %vm1909_vm0, %v1908_v0  ;;  %1528 = vmatprep.mubr.msk.bf16.mxu1 %vm1909_vm0, %v1908_v0 }
  0x82   :  { %1453 = vmatmul.mubr.bf16.gmra.mxu0 %v1602_v33  ;;  %1529 = vmatmul.mubr.bf16.gmra.mxu1 %v1603_v34 }
  0x83   :  { %1456 = vmatprep.mubr.msk.bf16.mxu0 %vm1909_vm0, %v1908_v0  ;;  %1532 = vmatprep.mubr.msk.bf16.mxu1 %vm1909_vm0, %v1908_v0 }
  0x8a   :  { %1457 = vmatmul.mubr.bf16.gmra.mxu0 %v1604_v35  ;;  %1533 = vmatmul.mubr.bf16.gmra.mxu1 %v1605_v36 }
  0x8b   :  { %1460 = vmatprep.mubr.msk.bf16.mxu0 %vm1909_vm0, %v1908_v0  ;;  %1536 = vmatprep.mubr.msk.bf16.mxu1 %vm1909_vm0, %v1908_v0 }
  0x92   :  { %1461 = vmatmul.mubr.bf16.gmra.mxu0 %v1606_v37  ;;  %1537 = vmatmul.mubr.bf16.gmra.mxu1 %v1607_v38 }
  0x93   :  { %1464 = vmatprep.mubr.msk.bf16.mxu0 %vm1909_vm0, %v1908_v0  ;;  %1540 = vmatprep.mubr.msk.bf16.mxu1 %vm1909_vm0, %v1908_v0 }
  0x9a   :  { %1465 = vmatmul.mubr.bf16.gmra.mxu0 %v1608_v39  ;;  %1541 = vmatmul.mubr.bf16.gmra.mxu1 %v1609_v40 }
  0x9b   :  { %1468 = vmatprep.mubr.msk.bf16.mxu0 %vm1909_vm0, %v1908_v0  ;;  %1544 = vmatprep.mubr.msk.bf16.mxu1 %vm1909_vm0, %v1908_v0 }
  0xa2   :  { %1469 = vmatmul.mubr.bf16.gmra.mxu0 %v1610_v41  ;;  %1545 = vmatmul.mubr.bf16.gmra.mxu1 %v1611_v42 }
  0xa3   :  { %1472 = vmatprep.mubr.msk.bf16.mxu0 %vm1909_vm0, %v1908_v0  ;;  %1548 = vmatprep.mubr.msk.bf16.mxu1 %vm1909_vm0, %v1908_v0 }
  0xaa   :  { %1473 = vmatmul.mubr.bf16.gmra.mxu0 %v1612_v43  ;;  %1549 = vmatmul.mubr.bf16.gmra.mxu1 %v1613_v44 }
  0xab   :  { %1476 = vmatprep.mubr.msk.bf16.mxu0 %vm1909_vm0, %v1908_v0 }
  0xb2   :  { %1477 = vmatmul.mubr.bf16.gmra.mxu0 %v1614_v45 }
  0xe2   :  { %v413_v47 = vpop.f32.mrf.mxu0  ;;  %v565_v48 = vpop.f32.mrf.mxu1 }
  0xe3   :  { %v414_v49 = vadd.f32 %v2158_v46, %v413_v47  ;;  %v566_v50 = vadd.f32 %v2158_v46, %v565_v48 }
  0xe4   :  { %v1406_v51 = vpop.f32.mrf.mxu0  ;;  %v1482_v52 = vpop.f32.mrf.mxu1 }
  0xe5   :  { %v1270_v53 = vmul.f32 -1.442695, %v414_v49  ;;  %v1308_v54 = vmul.f32 -1.442695, %v566_v50 }
  0xe6   :  { %v416_v55 = vpop.f32.mrf.mxu0  ;;  %v568_v56 = vpop.f32.mrf.mxu1 }
  0xe7   :  { %1615 = vpow2.f32 %v1270_v53  ;;  %v417_v57 = vadd.f32 %v2158_v46, %v416_v55  ;;  %v569_v58 = vadd.f32 %v2158_v46, %v568_v56 }
  0xe8   :  { %v1407_v59 = vpop.f32.mrf.mxu0  ;;  %1617 = vpow2.f32 %v1308_v54  ;;  %v1483_v60 = vpop.f32.mrf.mxu1 }
  0xe9   :  { %v1271_v61 = vmul.f32 -1.442695, %v417_v57  ;;  %v1309_v62 = vmul.f32 -1.442695, %v569_v58 }
  0xea   :  { %v421_v63 = vpop.f32.mrf.mxu0  ;;  %v573_v0 = vpop.f32.mrf.mxu1 }
  0xeb   :  { %1619 = vpow2.f32 %v1271_v61  ;;  %v422_v1 = vadd.f32 %v2158_v46, %v421_v63  ;;  %v574_v2 = vadd.f32 %v2158_v46, %v573_v0 }
  0xec   :  { %v1410_v3 = vpop.f32.mrf.mxu0  ;;  %1621 = vpow2.f32 %v1309_v62  ;;  %v1486_v4 = vpop.f32.mrf.mxu1 }
  0xed   :  { %v1272_v5 = vmul.f32 -1.442695, %v422_v1  ;;  %v1310_v6 = vmul.f32 -1.442695, %v574_v2 }
  0xee   :  { %v424_v7 = vpop.f32.mrf.mxu0  ;;  %v576_v8 = vpop.f32.mrf.mxu1 }
  0xef   :  { %1623 = vpow2.f32 %v1272_v5  ;;  %v425_v9 = vadd.f32 %v2158_v46, %v424_v7  ;;  %v577_v10 = vadd.f32 %v2158_v46, %v576_v8 }
  0xf0   :  { %v1411_v11 = vpop.f32.mrf.mxu0  ;;  %1625 = vpow2.f32 %v1310_v6  ;;  %v1487_v12 = vpop.f32.mrf.mxu1 }
  0xf1   :  { %v1273_v13 = vmul.f32 -1.442695, %v425_v9  ;;  %v1311_v14 = vmul.f32 -1.442695, %v577_v10 }
  0xf2   :  { %v429_v15 = vpop.f32.mrf.mxu0  ;;  %v581_v16 = vpop.f32.mrf.mxu1 }
  0xf3   :  { %1627 = vpow2.f32 %v1273_v13  ;;  %v430_v17 = vadd.f32 %v2158_v46, %v429_v15  ;;  %v582_v18 = vadd.f32 %v2158_v46, %v581_v16 }
  0xf4   :  { %v1616_v19 = vpop.eup %1615  ;;  %v1414_v20 = vpop.f32.mrf.mxu0  ;;  %1629 = vpow2.f32 %v1311_v14 }
  0xf5   :  { %v1490_v21 = vpop.f32.mrf.mxu1  ;;  %v1618_v22 = vpop.eup %1617  ;;  %v926_v23 = vadd.f32 1.0, %v1616_v19  ;;  %v1274_v24 = vmul.f32 -1.442695, %v430_v17  ;;  %v1312_v27 = vmul.f32 -1.442695, %v582_v18 }
  0xf6   :  { %v964_v25 = vadd.f32 1.0, %v1618_v22  ;;  %v432_v26 = vpop.f32.mrf.mxu0 }
  0xf7   :  { %v584_v28 = vpop.f32.mrf.mxu1  ;;  %1631 = vrcp.f32 %v926_v23  ;;  %v433_v29 = vadd.f32 %v2158_v46, %v432_v26 }
  0xf8   :  { %v585_v30 = vadd.f32 %v2158_v46, %v584_v28  ;;  %v1620_v31 = vpop.eup %1619  ;;  %1633 = vrcp.f32 %v964_v25  ;;  %v1415_v32 = vpop.f32.mrf.mxu0 }
  0xf9   :  { %v1491_v33 = vpop.f32.mrf.mxu1  ;;  %v1622_v34 = vpop.eup %1621  ;;  %v927_v35 = vadd.f32 1.0, %v1620_v31  ;;  %1635 = vpow2.f32 %v1274_v24  ;;  %v1275_v36 = vmul.f32 -1.442695, %v433_v29 }
  0xfa   :  { %v965_v37 = vadd.f32 1.0, %v1622_v34  ;;  %1637 = vpow2.f32 %v1312_v27  ;;  %v437_v38 = vpop.f32.mrf.mxu0  ;;  %v1313_v39 = vmul.f32 -1.442695, %v585_v30 }
  0xfb   :  { %v589_v40 = vpop.f32.mrf.mxu1  ;;  %1639 = vrcp.f32 %v927_v35  ;;  %v438_v41 = vadd.f32 %v2158_v46, %v437_v38 }
  0xfc   :  { %v590_v42 = vadd.f32 %v2158_v46, %v589_v40  ;;  %v1624_v43 = vpop.eup %1623  ;;  %1641 = vrcp.f32 %v965_v37  ;;  %v1418_v44 = vpop.f32.mrf.mxu0 }
  0xfd   :  { %v1494_v45 = vpop.f32.mrf.mxu1  ;;  %v1626_v47 = vpop.eup %1625  ;;  %v928_v48 = vadd.f32 1.0, %v1624_v43  ;;  %1643 = vpow2.f32 %v1275_v36  ;;  %v1276_v49 = vmul.f32 -1.442695, %v438_v41 }
  0xfe   :  { %v966_v50 = vadd.f32 1.0, %v1626_v47  ;;  %1645 = vpow2.f32 %v1313_v39  ;;  %v440_v51 = vpop.f32.mrf.mxu0  ;;  %v1314_v52 = vmul.f32 -1.442695, %v590_v42 }
  0xff   :  { %v592_v53 = vpop.f32.mrf.mxu1  ;;  %1647 = vrcp.f32 %v928_v48  ;;  %v441_v54 = vadd.f32 %v2158_v46, %v440_v51 }
 0x100   :  { %v593_v55 = vadd.f32 %v2158_v46, %v592_v53  ;;  %v1628_v56 = vpop.eup %1627  ;;  %1649 = vrcp.f32 %v966_v50  ;;  %v1419_v57 = vpop.f32.mrf.mxu0 }
 0x101   :  { %v1495_v58 = vpop.f32.mrf.mxu1  ;;  %v1630_v59 = vpop.eup %1629  ;;  %v929_v60 = vadd.f32 1.0, %v1628_v56  ;;  %1651 = vpow2.f32 %v1276_v49  ;;  %v1277_v61 = vmul.f32 -1.442695, %v441_v54 }
 0x102   :  { %v967_v62 = vadd.f32 1.0, %v1630_v59  ;;  %1653 = vpow2.f32 %v1314_v52  ;;  %v445_v63 = vpop.f32.mrf.mxu0  ;;  %v1315_v0 = vmul.f32 -1.442695, %v593_v55 }
 0x103   :  { %v597_v1 = vpop.f32.mrf.mxu1  ;;  %1655 = vrcp.f32 %v929_v60  ;;  %v446_v2 = vadd.f32 %v2158_v46, %v445_v63 }
 0x104   :  { %v598_v3 = vadd.f32 %v2158_v46, %v597_v1  ;;  %v1632_v4 = vpop.eup %1631  ;;  %1657 = vrcp.f32 %v967_v62  ;;  %v1422_v5 = vpop.f32.mrf.mxu0 }
 0x105   :  { %v1498_v6 = vpop.f32.mrf.mxu1  ;;  %v1634_v7 = vpop.eup %1633  ;;  %1146 = vst.msk [vmem:[%s2532_s3] sm:$0xff] %vm1145_vm1, %v1632_v4  ;;  %1659 = vpow2.f32 %v1277_v61  ;;  %v1278_v8 = vmul.f32 -1.442695, %v446_v2 }
 0x106   :  { %v1316_v9 = vmul.f32 -1.442695, %v598_v3  ;;  %v1636_v10 = vpop.eup %1635  ;;  %1184 = vst.msk [vmem:[%s2532_s3 + $0x130] sm:$0xff] %vm1145_vm1, %v1634_v7  ;;  %1661 = vpow2.f32 %v1315_v0  ;;  %v448_v11 = vpop.f32.mrf.mxu0 }
 0x107   :  { %v600_v12 = vpop.f32.mrf.mxu1  ;;  %v1638_v13 = vpop.eup %1637  ;;  %v930_v14 = vadd.f32 1.0, %v1636_v10  ;;  %1663 = vpow2.f32 %v1278_v8  ;;  %v449_v15 = vadd.f32 %v2158_v46, %v448_v11 }
 0x108   :  { %v601_v16 = vadd.f32 %v2158_v46, %v600_v12  ;;  %v1640_v17 = vpop.eup %1639  ;;  %v968_v18 = vadd.f32 1.0, %v1638_v13  ;;  %v1423_v19 = vpop.f32.mrf.mxu0  ;;  %1665 = vpow2.f32 %v1316_v9 }
 0x109   :  { %v1499_v20 = vpop.f32.mrf.mxu1  ;;  %v1642_v21 = vpop.eup %1641  ;;  %1147 = vst.msk [vmem:[%s2532_s3 + $0x8] sm:$0xff] %vm1145_vm1, %v1640_v17  ;;  %1667 = vrcp.f32 %v930_v14  ;;  %v1279_v22 = vmul.f32 -1.442695, %v449_v15 }
 0x10a   :  { %v1317_v23 = vmul.f32 -1.442695, %v601_v16  ;;  %v1644_v24 = vpop.eup %1643  ;;  %1185 = vst.msk [vmem:[%s2532_s3 + $0x138] sm:$0xff] %vm1145_vm1, %v1642_v21  ;;  %1669 = vrcp.f32 %v968_v18  ;;  %v453_v25 = vpop.f32.mrf.mxu0 }
 0x10b   :  { %v605_v26 = vpop.f32.mrf.mxu1  ;;  %v1646_v27 = vpop.eup %1645  ;;  %v931_v28 = vadd.f32 1.0, %v1644_v24  ;;  %1671 = vpow2.f32 %v1279_v22  ;;  %v454_v29 = vadd.f32 %v2158_v46, %v453_v25 }
 0x10c   :  { %v606_v30 = vadd.f32 %v2158_v46, %v605_v26  ;;  %v1648_v31 = vpop.eup %1647  ;;  %v969_v32 = vadd.f32 1.0, %v1646_v27  ;;  %v1426_v33 = vpop.f32.mrf.mxu0  ;;  %1673 = vpow2.f32 %v1317_v23 }
 0x10d   :  { %v1502_v34 = vpop.f32.mrf.mxu1  ;;  %v1650_v35 = vpop.eup %1649  ;;  %1148 = vst.msk [vmem:[%s2532_s3 + $0x10] sm:$0xff] %vm1145_vm1, %v1648_v31  ;;  %1675 = vrcp.f32 %v931_v28  ;;  %v1280_v36 = vmul.f32 -1.442695, %v454_v29 }
 0x10e   :  { %v1318_v37 = vmul.f32 -1.442695, %v606_v30  ;;  %v1652_v38 = vpop.eup %1651  ;;  %1186 = vst.msk [vmem:[%s2532_s3 + $0x140] sm:$0xff] %vm1145_vm1, %v1650_v35  ;;  %1677 = vrcp.f32 %v969_v32  ;;  %v456_v39 = vpop.f32.mrf.mxu0 }
 0x10f   :  { %v608_v40 = vpop.f32.mrf.mxu1  ;;  %v1654_v41 = vpop.eup %1653  ;;  %v932_v42 = vadd.f32 1.0, %v1652_v38  ;;  %1679 = vpow2.f32 %v1280_v36  ;;  %v457_v43 = vadd.f32 %v2158_v46, %v456_v39 }
 0x110   :  { %v609_v44 = vadd.f32 %v2158_v46, %v608_v40  ;;  %v1656_v45 = vpop.eup %1655  ;;  %v970_v47 = vadd.f32 1.0, %v1654_v41  ;;  %v1427_v48 = vpop.f32.mrf.mxu0  ;;  %1681 = vpow2.f32 %v1318_v37 }
 0x111   :  { %v1503_v49 = vpop.f32.mrf.mxu1  ;;  %v1658_v50 = vpop.eup %1657  ;;  %1149 = vst.msk [vmem:[%s2532_s3 + $0x18] sm:$0xff] %vm1145_vm1, %v1656_v45  ;;  %1683 = vrcp.f32 %v932_v42  ;;  %v1281_v51 = vmul.f32 -1.442695, %v457_v43 }
 0x112   :  { %v1319_v52 = vmul.f32 -1.442695, %v609_v44  ;;  %v1660_v53 = vpop.eup %1659  ;;  %1187 = vst.msk [vmem:[%s2532_s3 + $0x148] sm:$0xff] %vm1145_vm1, %v1658_v50  ;;  %1685 = vrcp.f32 %v970_v47  ;;  %v461_v54 = vpop.f32.mrf.mxu0 }
 0x113   :  { %v613_v55 = vpop.f32.mrf.mxu1  ;;  %v1662_v56 = vpop.eup %1661  ;;  %v933_v57 = vadd.f32 1.0, %v1660_v53  ;;  %1687 = vpow2.f32 %v1281_v51  ;;  %v462_v58 = vadd.f32 %v2158_v46, %v461_v54 }
 0x114   :  { %v614_v59 = vadd.f32 %v2158_v46, %v613_v55  ;;  %v1664_v60 = vpop.eup %1663  ;;  %v971_v61 = vadd.f32 1.0, %v1662_v56  ;;  %v1430_v62 = vpop.f32.mrf.mxu0  ;;  %1689 = vpow2.f32 %v1319_v52 }
 0x115   :  { %v1506_v63 = vpop.f32.mrf.mxu1  ;;  %v1666_v0 = vpop.eup %1665  ;;  %1691 = vrcp.f32 %v933_v57  ;;  %v934_v1 = vadd.f32 1.0, %v1664_v60  ;;  %v1282_v2 = vmul.f32 -1.442695, %v462_v58 }
 0x116   :  { %v1668_v3 = vpop.eup %1667  ;;  %1693 = vrcp.f32 %v971_v61  ;;  %v972_v4 = vadd.f32 1.0, %v1666_v0  ;;  %v464_v5 = vpop.f32.mrf.mxu0  ;;  %v1320_v6 = vmul.f32 -1.442695, %v614_v59 }
 0x117   :  { %v616_v7 = vpop.f32.mrf.mxu1  ;;  %v1670_v8 = vpop.eup %1669  ;;  %1150 = vst.msk [vmem:[%s2532_s3 + $0x20] sm:$0xff] %vm1145_vm1, %v1668_v3  ;;  %1695 = vrcp.f32 %v934_v1  ;;  %v465_v9 = vadd.f32 %v2158_v46, %v464_v5 }
 0x118   :  { %v617_v10 = vadd.f32 %v2158_v46, %v616_v7  ;;  %v1672_v11 = vpop.eup %1671  ;;  %1188 = vst.msk [vmem:[%s2532_s3 + $0x150] sm:$0xff] %vm1145_vm1, %v1670_v8  ;;  %1697 = vrcp.f32 %v972_v4  ;;  %v1431_v12 = vpop.f32.mrf.mxu0 }
 0x119   :  { %v1507_v13 = vpop.f32.mrf.mxu1  ;;  %v1674_v14 = vpop.eup %1673  ;;  %v935_v15 = vadd.f32 1.0, %v1672_v11  ;;  %1699 = vpow2.f32 %v1282_v2  ;;  %v1283_v16 = vmul.f32 -1.442695, %v465_v9 }
 0x11a   :  { %v1676_v17 = vpop.eup %1675  ;;  %v973_v18 = vadd.f32 1.0, %v1674_v14  ;;  %1701 = vpow2.f32 %v1320_v6  ;;  %v469_v19 = vpop.f32.mrf.mxu0  ;;  %v1321_v20 = vmul.f32 -1.442695, %v617_v10 }
 0x11b   :  { %v621_v21 = vpop.f32.mrf.mxu1  ;;  %v1678_v22 = vpop.eup %1677  ;;  %1151 = vst.msk [vmem:[%s2532_s3 + $0x28] sm:$0xff] %vm1145_vm1, %v1676_v17  ;;  %1703 = vrcp.f32 %v935_v15  ;;  %v470_v23 = vadd.f32 %v2158_v46, %v469_v19 }
 0x11c   :  { %v622_v24 = vadd.f32 %v2158_v46, %v621_v21  ;;  %v1680_v25 = vpop.eup %1679  ;;  %1189 = vst.msk [vmem:[%s2532_s3 + $0x158] sm:$0xff] %vm1145_vm1, %v1678_v22  ;;  %1705 = vrcp.f32 %v973_v18  ;;  %v1434_v26 = vpop.f32.mrf.mxu0 }
 0x11d   :  { %v1510_v27 = vpop.f32.mrf.mxu1  ;;  %v1682_v28 = vpop.eup %1681  ;;  %v936_v29 = vadd.f32 1.0, %v1680_v25  ;;  %1707 = vpow2.f32 %v1283_v16  ;;  %v1284_v30 = vmul.f32 -1.442695, %v470_v23 }
 0x11e   :  { %v1684_v31 = vpop.eup %1683  ;;  %v974_v32 = vadd.f32 1.0, %v1682_v28  ;;  %1709 = vpow2.f32 %v1321_v20  ;;  %v472_v33 = vpop.f32.mrf.mxu0  ;;  %v1322_v34 = vmul.f32 -1.442695, %v622_v24 }
 0x11f   :  { %v624_v35 = vpop.f32.mrf.mxu1  ;;  %v1686_v36 = vpop.eup %1685  ;;  %1152 = vst.msk [vmem:[%s2532_s3 + $0x30] sm:$0xff] %vm1145_vm1, %v1684_v31  ;;  %1711 = vrcp.f32 %v936_v29  ;;  %v473_v37 = vadd.f32 %v2158_v46, %v472_v33 }
 0x120   :  { %v625_v38 = vadd.f32 %v2158_v46, %v624_v35  ;;  %v1688_v39 = vpop.eup %1687  ;;  %1190 = vst.msk [vmem:[%s2532_s3 + $0x160] sm:$0xff] %vm1145_vm1, %v1686_v36  ;;  %1713 = vrcp.f32 %v974_v32  ;;  %v1435_v40 = vpop.f32.mrf.mxu0 }
 0x121   :  { %v1511_v41 = vpop.f32.mrf.mxu1  ;;  %v1690_v42 = vpop.eup %1689  ;;  %v937_v43 = vadd.f32 1.0, %v1688_v39  ;;  %1715 = vpow2.f32 %v1284_v30  ;;  %v1285_v44 = vmul.f32 -1.442695, %v473_v37 }
 0x122   :  { %v1692_v45 = vpop.eup %1691  ;;  %v975_v47 = vadd.f32 1.0, %v1690_v42  ;;  %1717 = vpow2.f32 %v1322_v34  ;;  %v477_v48 = vpop.f32.mrf.mxu0  ;;  %v1323_v49 = vmul.f32 -1.442695, %v625_v38 }
 0x123   :  { %v629_v50 = vpop.f32.mrf.mxu1  ;;  %v1694_v51 = vpop.eup %1693  ;;  %1153 = vst.msk [vmem:[%s2532_s3 + $0x38] sm:$0xff] %vm1145_vm1, %v1692_v45  ;;  %1719 = vrcp.f32 %v937_v43  ;;  %v478_v52 = vadd.f32 %v2158_v46, %v477_v48 }
 0x124   :  { %v630_v53 = vadd.f32 %v2158_v46, %v629_v50  ;;  %v1696_v54 = vpop.eup %1695  ;;  %1191 = vst.msk [vmem:[%s2532_s3 + $0x168] sm:$0xff] %vm1145_vm1, %v1694_v51  ;;  %1721 = vrcp.f32 %v975_v47  ;;  %v1438_v55 = vpop.f32.mrf.mxu0 }
 0x125   :  { %v1514_v56 = vpop.f32.mrf.mxu1  ;;  %v1698_v57 = vpop.eup %1697  ;;  %1154 = vst.msk [vmem:[%s2532_s3 + $0x40] sm:$0xff] %vm1145_vm1, %v1696_v54  ;;  %1723 = vpow2.f32 %v1285_v44  ;;  %v1286_v58 = vmul.f32 -1.442695, %v478_v52 }
 0x126   :  { %v1324_v59 = vmul.f32 -1.442695, %v630_v53  ;;  %v1700_v60 = vpop.eup %1699  ;;  %1192 = vst.msk [vmem:[%s2532_s3 + $0x170] sm:$0xff] %vm1145_vm1, %v1698_v57  ;;  %1725 = vpow2.f32 %v1323_v49  ;;  %v480_v61 = vpop.f32.mrf.mxu0 }
 0x127   :  { %v632_v62 = vpop.f32.mrf.mxu1  ;;  %v1702_v63 = vpop.eup %1701  ;;  %v938_v0 = vadd.f32 1.0, %v1700_v60  ;;  %1727 = vpow2.f32 %v1286_v58  ;;  %v481_v1 = vadd.f32 %v2158_v46, %v480_v61 }
 0x128   :  { %v633_v2 = vadd.f32 %v2158_v46, %v632_v62  ;;  %v1704_v3 = vpop.eup %1703  ;;  %v976_v4 = vadd.f32 1.0, %v1702_v63  ;;  %v1439_v5 = vpop.f32.mrf.mxu0  ;;  %1729 = vpow2.f32 %v1324_v59 }
 0x129   :  { %v1515_v6 = vpop.f32.mrf.mxu1  ;;  %v1706_v7 = vpop.eup %1705  ;;  %1155 = vst.msk [vmem:[%s2532_s3 + $0x48] sm:$0xff] %vm1145_vm1, %v1704_v3  ;;  %1731 = vrcp.f32 %v938_v0  ;;  %v1287_v8 = vmul.f32 -1.442695, %v481_v1 }
 0x12a   :  { %v1325_v9 = vmul.f32 -1.442695, %v633_v2  ;;  %v1708_v10 = vpop.eup %1707  ;;  %1193 = vst.msk [vmem:[%s2532_s3 + $0x178] sm:$0xff] %vm1145_vm1, %v1706_v7  ;;  %1733 = vrcp.f32 %v976_v4  ;;  %v485_v11 = vpop.f32.mrf.mxu0 }
 0x12b   :  { %v637_v12 = vpop.f32.mrf.mxu1  ;;  %v1710_v13 = vpop.eup %1709  ;;  %v939_v14 = vadd.f32 1.0, %v1708_v10  ;;  %1735 = vpow2.f32 %v1287_v8  ;;  %v486_v15 = vadd.f32 %v2158_v46, %v485_v11 }
 0x12c   :  { %v638_v16 = vadd.f32 %v2158_v46, %v637_v12  ;;  %v1712_v17 = vpop.eup %1711  ;;  %v977_v18 = vadd.f32 1.0, %v1710_v13  ;;  %v1442_v19 = vpop.f32.mrf.mxu0  ;;  %1737 = vpow2.f32 %v1325_v9 }
 0x12d   :  { %v1518_v20 = vpop.f32.mrf.mxu1  ;;  %v1714_v21 = vpop.eup %1713  ;;  %1156 = vst.msk [vmem:[%s2532_s3 + $0x50] sm:$0xff] %vm1145_vm1, %v1712_v17  ;;  %1739 = vrcp.f32 %v939_v14  ;;  %v1288_v22 = vmul.f32 -1.442695, %v486_v15 }
 0x12e   :  { %v1326_v23 = vmul.f32 -1.442695, %v638_v16  ;;  %v1716_v24 = vpop.eup %1715  ;;  %1194 = vst.msk [vmem:[%s2532_s3 + $0x180] sm:$0xff] %vm1145_vm1, %v1714_v21  ;;  %1741 = vrcp.f32 %v977_v18  ;;  %v488_v25 = vpop.f32.mrf.mxu0 }
 0x12f   :  { %v640_v26 = vpop.f32.mrf.mxu1  ;;  %v1718_v27 = vpop.eup %1717  ;;  %v940_v28 = vadd.f32 1.0, %v1716_v24  ;;  %1743 = vpow2.f32 %v1288_v22  ;;  %v489_v29 = vadd.f32 %v2158_v46, %v488_v25 }
 0x130   :  { %v641_v30 = vadd.f32 %v2158_v46, %v640_v26  ;;  %v1720_v31 = vpop.eup %1719  ;;  %v978_v32 = vadd.f32 1.0, %v1718_v27  ;;  %v1443_v33 = vpop.f32.mrf.mxu0  ;;  %1745 = vpow2.f32 %v1326_v23 }
 0x131   :  { %v1519_v34 = vpop.f32.mrf.mxu1  ;;  %v1722_v35 = vpop.eup %1721  ;;  %1157 = vst.msk [vmem:[%s2532_s3 + $0x58] sm:$0xff] %vm1145_vm1, %v1720_v31  ;;  %1747 = vrcp.f32 %v940_v28  ;;  %v1289_v36 = vmul.f32 -1.442695, %v489_v29 }
 0x132   :  { %v1327_v37 = vmul.f32 -1.442695, %v641_v30  ;;  %v1724_v38 = vpop.eup %1723  ;;  %1195 = vst.msk [vmem:[%s2532_s3 + $0x188] sm:$0xff] %vm1145_vm1, %v1722_v35  ;;  %1749 = vrcp.f32 %v978_v32  ;;  %v493_v39 = vpop.f32.mrf.mxu0 }
 0x133   :  { %v645_v40 = vpop.f32.mrf.mxu1  ;;  %v1726_v41 = vpop.eup %1725  ;;  %v941_v42 = vadd.f32 1.0, %v1724_v38  ;;  %1751 = vpow2.f32 %v1289_v36  ;;  %v494_v43 = vadd.f32 %v2158_v46, %v493_v39 }
 0x134   :  { %v646_v44 = vadd.f32 %v2158_v46, %v645_v40  ;;  %v1728_v45 = vpop.eup %1727  ;;  %v979_v47 = vadd.f32 1.0, %v1726_v41  ;;  %v1446_v48 = vpop.f32.mrf.mxu0  ;;  %1753 = vpow2.f32 %v1327_v37 }
 0x135   :  { %v1522_v49 = vpop.f32.mrf.mxu1  ;;  %v1730_v50 = vpop.eup %1729  ;;  %1755 = vrcp.f32 %v941_v42  ;;  %v942_v51 = vadd.f32 1.0, %v1728_v45  ;;  %v1290_v52 = vmul.f32 -1.442695, %v494_v43 }
 0x136   :  { %v1732_v53 = vpop.eup %1731  ;;  %1757 = vrcp.f32 %v979_v47  ;;  %v980_v54 = vadd.f32 1.0, %v1730_v50  ;;  %v496_v55 = vpop.f32.mrf.mxu0  ;;  %v1328_v56 = vmul.f32 -1.442695, %v646_v44 }
 0x137   :  { %v648_v57 = vpop.f32.mrf.mxu1  ;;  %v1734_v58 = vpop.eup %1733  ;;  %1158 = vst.msk [vmem:[%s2532_s3 + $0x60] sm:$0xff] %vm1145_vm1, %v1732_v53  ;;  %1759 = vrcp.f32 %v942_v51  ;;  %v497_v59 = vadd.f32 %v2158_v46, %v496_v55 }
 0x138   :  { %v649_v60 = vadd.f32 %v2158_v46, %v648_v57  ;;  %v1736_v61 = vpop.eup %1735  ;;  %1196 = vst.msk [vmem:[%s2532_s3 + $0x190] sm:$0xff] %vm1145_vm1, %v1734_v58  ;;  %1761 = vrcp.f32 %v980_v54  ;;  %v1447_v62 = vpop.f32.mrf.mxu0 }
 0x139   :  { %v1523_v63 = vpop.f32.mrf.mxu1  ;;  %v1738_v0 = vpop.eup %1737  ;;  %v943_v1 = vadd.f32 1.0, %v1736_v61  ;;  %1763 = vpow2.f32 %v1290_v52  ;;  %v1291_v2 = vmul.f32 -1.442695, %v497_v59 }
 0x13a   :  { %v1740_v3 = vpop.eup %1739  ;;  %v981_v4 = vadd.f32 1.0, %v1738_v0  ;;  %1765 = vpow2.f32 %v1328_v56  ;;  %v501_v5 = vpop.f32.mrf.mxu0  ;;  %v1329_v6 = vmul.f32 -1.442695, %v649_v60 }
 0x13b   :  { %v653_v7 = vpop.f32.mrf.mxu1  ;;  %v1742_v8 = vpop.eup %1741  ;;  %1159 = vst.msk [vmem:[%s2532_s3 + $0x68] sm:$0xff] %vm1145_vm1, %v1740_v3  ;;  %1767 = vrcp.f32 %v943_v1  ;;  %v502_v9 = vadd.f32 %v2158_v46, %v501_v5 }
 0x13c   :  { %v654_v10 = vadd.f32 %v2158_v46, %v653_v7  ;;  %v1744_v11 = vpop.eup %1743  ;;  %1197 = vst.msk [vmem:[%s2532_s3 + $0x198] sm:$0xff] %vm1145_vm1, %v1742_v8  ;;  %1769 = vrcp.f32 %v981_v4  ;;  %v1450_v12 = vpop.f32.mrf.mxu0 }
 0x13d   :  { %v1526_v13 = vpop.f32.mrf.mxu1  ;;  %v1746_v14 = vpop.eup %1745  ;;  %v944_v15 = vadd.f32 1.0, %v1744_v11  ;;  %1771 = vpow2.f32 %v1291_v2  ;;  %v1292_v16 = vmul.f32 -1.442695, %v502_v9 }
 0x13e   :  { %v1748_v17 = vpop.eup %1747  ;;  %v982_v18 = vadd.f32 1.0, %v1746_v14  ;;  %1773 = vpow2.f32 %v1329_v6  ;;  %v504_v19 = vpop.f32.mrf.mxu0  ;;  %v1330_v20 = vmul.f32 -1.442695, %v654_v10 }
 0x13f   :  { %v656_v21 = vpop.f32.mrf.mxu1  ;;  %v1750_v22 = vpop.eup %1749  ;;  %1160 = vst.msk [vmem:[%s2532_s3 + $0x70] sm:$0xff] %vm1145_vm1, %v1748_v17  ;;  %1775 = vrcp.f32 %v944_v15  ;;  %v505_v23 = vadd.f32 %v2158_v46, %v504_v19 }
 0x140   :  { %v657_v24 = vadd.f32 %v2158_v46, %v656_v21  ;;  %v1752_v25 = vpop.eup %1751  ;;  %1198 = vst.msk [vmem:[%s2532_s3 + $0x1a0] sm:$0xff] %vm1145_vm1, %v1750_v22  ;;  %1777 = vrcp.f32 %v982_v18  ;;  %v1451_v26 = vpop.f32.mrf.mxu0 }
 0x141   :  { %v1527_v27 = vpop.f32.mrf.mxu1  ;;  %v1754_v28 = vpop.eup %1753  ;;  %v945_v29 = vadd.f32 1.0, %v1752_v25  ;;  %1779 = vpow2.f32 %v1292_v16  ;;  %v1293_v30 = vmul.f32 -1.442695, %v505_v23 }
 0x142   :  { %v1756_v31 = vpop.eup %1755  ;;  %v983_v32 = vadd.f32 1.0, %v1754_v28  ;;  %1781 = vpow2.f32 %v1330_v20  ;;  %v509_v33 = vpop.f32.mrf.mxu0  ;;  %v1331_v34 = vmul.f32 -1.442695, %v657_v24 }
 0x143   :  { %v661_v35 = vpop.f32.mrf.mxu1  ;;  %v1758_v36 = vpop.eup %1757  ;;  %1161 = vst.msk [vmem:[%s2532_s3 + $0x78] sm:$0xff] %vm1145_vm1, %v1756_v31  ;;  %1783 = vrcp.f32 %v945_v29  ;;  %v510_v37 = vadd.f32 %v2158_v46, %v509_v33 }
 0x144   :  { %v662_v38 = vadd.f32 %v2158_v46, %v661_v35  ;;  %v1760_v39 = vpop.eup %1759  ;;  %1199 = vst.msk [vmem:[%s2532_s3 + $0x1a8] sm:$0xff] %vm1145_vm1, %v1758_v36  ;;  %1785 = vrcp.f32 %v983_v32  ;;  %v1454_v40 = vpop.f32.mrf.mxu0 }
 0x145   :  { %v1530_v41 = vpop.f32.mrf.mxu1  ;;  %v1762_v42 = vpop.eup %1761  ;;  %1162 = vst.msk [vmem:[%s2532_s3 + $0x80] sm:$0xff] %vm1145_vm1, %v1760_v39  ;;  %1787 = vpow2.f32 %v1293_v30  ;;  %v1294_v43 = vmul.f32 -1.442695, %v510_v37 }
 0x146   :  { %v1332_v44 = vmul.f32 -1.442695, %v662_v38  ;;  %v1764_v45 = vpop.eup %1763  ;;  %1200 = vst.msk [vmem:[%s2532_s3 + $0x1b0] sm:$0xff] %vm1145_vm1, %v1762_v42  ;;  %1789 = vpow2.f32 %v1331_v34  ;;  %v512_v47 = vpop.f32.mrf.mxu0 }
 0x147   :  { %v664_v48 = vpop.f32.mrf.mxu1  ;;  %v1766_v49 = vpop.eup %1765  ;;  %v946_v50 = vadd.f32 1.0, %v1764_v45  ;;  %1791 = vpow2.f32 %v1294_v43  ;;  %v513_v51 = vadd.f32 %v2158_v46, %v512_v47 }
 0x148   :  { %v665_v52 = vadd.f32 %v2158_v46, %v664_v48  ;;  %v1768_v53 = vpop.eup %1767  ;;  %v984_v54 = vadd.f32 1.0, %v1766_v49  ;;  %v1455_v55 = vpop.f32.mrf.mxu0  ;;  %1793 = vpow2.f32 %v1332_v44 }
 0x149   :  { %v1531_v56 = vpop.f32.mrf.mxu1  ;;  %v1770_v57 = vpop.eup %1769  ;;  %1163 = vst.msk [vmem:[%s2532_s3 + $0x88] sm:$0xff] %vm1145_vm1, %v1768_v53  ;;  %1795 = vrcp.f32 %v946_v50  ;;  %v1295_v58 = vmul.f32 -1.442695, %v513_v51 }
 0x14a   :  { %v1333_v59 = vmul.f32 -1.442695, %v665_v52  ;;  %v1772_v60 = vpop.eup %1771  ;;  %1201 = vst.msk [vmem:[%s2532_s3 + $0x1b8] sm:$0xff] %vm1145_vm1, %v1770_v57  ;;  %1797 = vrcp.f32 %v984_v54  ;;  %v517_v61 = vpop.f32.mrf.mxu0 }
 0x14b   :  { %v669_v62 = vpop.f32.mrf.mxu1  ;;  %v1774_v63 = vpop.eup %1773  ;;  %v947_v0 = vadd.f32 1.0, %v1772_v60  ;;  %1799 = vpow2.f32 %v1295_v58  ;;  %v518_v1 = vadd.f32 %v2158_v46, %v517_v61 }
 0x14c   :  { %v670_v2 = vadd.f32 %v2158_v46, %v669_v62  ;;  %v1776_v3 = vpop.eup %1775  ;;  %v985_v4 = vadd.f32 1.0, %v1774_v63  ;;  %v1458_v5 = vpop.f32.mrf.mxu0  ;;  %1801 = vpow2.f32 %v1333_v59 }
 0x14d   :  { %v1534_v6 = vpop.f32.mrf.mxu1  ;;  %v1778_v7 = vpop.eup %1777  ;;  %1164 = vst.msk [vmem:[%s2532_s3 + $0x90] sm:$0xff] %vm1145_vm1, %v1776_v3  ;;  %1803 = vrcp.f32 %v947_v0  ;;  %v1296_v8 = vmul.f32 -1.442695, %v518_v1 }
 0x14e   :  { %v1334_v9 = vmul.f32 -1.442695, %v670_v2  ;;  %v1780_v10 = vpop.eup %1779  ;;  %1202 = vst.msk [vmem:[%s2532_s3 + $0x1c0] sm:$0xff] %vm1145_vm1, %v1778_v7  ;;  %1805 = vrcp.f32 %v985_v4  ;;  %v520_v11 = vpop.f32.mrf.mxu0 }
 0x14f   :  { %v672_v12 = vpop.f32.mrf.mxu1  ;;  %v1782_v13 = vpop.eup %1781  ;;  %v948_v14 = vadd.f32 1.0, %v1780_v10  ;;  %1807 = vpow2.f32 %v1296_v8  ;;  %v521_v15 = vadd.f32 %v2158_v46, %v520_v11 }
 0x150   :  { %v673_v16 = vadd.f32 %v2158_v46, %v672_v12  ;;  %v1784_v17 = vpop.eup %1783  ;;  %v986_v18 = vadd.f32 1.0, %v1782_v13  ;;  %v1459_v19 = vpop.f32.mrf.mxu0  ;;  %1809 = vpow2.f32 %v1334_v9 }
 0x151   :  { %v1535_v20 = vpop.f32.mrf.mxu1  ;;  %v1786_v21 = vpop.eup %1785  ;;  %1165 = vst.msk [vmem:[%s2532_s3 + $0x98] sm:$0xff] %vm1145_vm1, %v1784_v17  ;;  %1811 = vrcp.f32 %v948_v14  ;;  %v1297_v22 = vmul.f32 -1.442695, %v521_v15 }
 0x152   :  { %v1335_v23 = vmul.f32 -1.442695, %v673_v16  ;;  %v1788_v24 = vpop.eup %1787  ;;  %1203 = vst.msk [vmem:[%s2532_s3 + $0x1c8] sm:$0xff] %vm1145_vm1, %v1786_v21  ;;  %1813 = vrcp.f32 %v986_v18  ;;  %v525_v25 = vpop.f32.mrf.mxu0 }
 0x153   :  { %v677_v26 = vpop.f32.mrf.mxu1  ;;  %v1790_v27 = vpop.eup %1789  ;;  %v949_v28 = vadd.f32 1.0, %v1788_v24  ;;  %1815 = vpow2.f32 %v1297_v22  ;;  %v526_v29 = vadd.f32 %v2158_v46, %v525_v25 }
 0x154   :  { %v678_v30 = vadd.f32 %v2158_v46, %v677_v26  ;;  %v1792_v31 = vpop.eup %1791  ;;  %v987_v32 = vadd.f32 1.0, %v1790_v27  ;;  %v1462_v33 = vpop.f32.mrf.mxu0  ;;  %1817 = vpow2.f32 %v1335_v23  ;;  %v2385_v46 = vld [vmem:[%s2531_s2] ss:$0 sm:$0xff] }
 0x155   :  { %v1538_v34 = vpop.f32.mrf.mxu1  ;;  %v1794_v35 = vpop.eup %1793  ;;  %1819 = vrcp.f32 %v949_v28  ;;  %v950_v36 = vadd.f32 1.0, %v1792_v31  ;;  %v1298_v37 = vmul.f32 -1.442695, %v526_v29 }
 0x156   :  { %v1796_v38 = vpop.eup %1795  ;;  %1821 = vrcp.f32 %v987_v32  ;;  %v988_v39 = vadd.f32 1.0, %v1794_v35  ;;  %v528_v40 = vpop.f32.mrf.mxu0  ;;  %v1336_v41 = vmul.f32 -1.442695, %v678_v30 }
 0x157   :  { %v680_v42 = vpop.f32.mrf.mxu1  ;;  %v1798_v43 = vpop.eup %1797  ;;  %1166 = vst.msk [vmem:[%s2532_s3 + $0xa0] sm:$0xff] %vm1145_vm1, %v1796_v38  ;;  %1823 = vrcp.f32 %v950_v36  ;;  %v529_v44 = vadd.f32 %v2385_v46, %v528_v40 }
 0x158   :  { %v681_v45 = vadd.f32 %v2385_v46, %v680_v42  ;;  %v1800_v47 = vpop.eup %1799  ;;  %1204 = vst.msk [vmem:[%s2532_s3 + $0x1d0] sm:$0xff] %vm1145_vm1, %v1798_v43  ;;  %1825 = vrcp.f32 %v988_v39  ;;  %v1463_v48 = vpop.f32.mrf.mxu0 }
 0x159   :  { %v1539_v49 = vpop.f32.mrf.mxu1  ;;  %v1802_v50 = vpop.eup %1801  ;;  %v951_v51 = vadd.f32 1.0, %v1800_v47  ;;  %1827 = vpow2.f32 %v1298_v37  ;;  %v1299_v52 = vmul.f32 -1.442695, %v529_v44 }
 0x15a   :  { %v1804_v53 = vpop.eup %1803  ;;  %v989_v54 = vadd.f32 1.0, %v1802_v50  ;;  %1829 = vpow2.f32 %v1336_v41  ;;  %v533_v55 = vpop.f32.mrf.mxu0  ;;  %v1337_v56 = vmul.f32 -1.442695, %v681_v45 }
 0x15b   :  { %v685_v57 = vpop.f32.mrf.mxu1  ;;  %v1806_v58 = vpop.eup %1805  ;;  %1167 = vst.msk [vmem:[%s2532_s3 + $0xa8] sm:$0xff] %vm1145_vm1, %v1804_v53  ;;  %1831 = vrcp.f32 %v951_v51  ;;  %v534_v59 = vadd.f32 %v2385_v46, %v533_v55 }
 0x15c   :  { %v686_v60 = vadd.f32 %v2385_v46, %v685_v57  ;;  %v1808_v61 = vpop.eup %1807  ;;  %1205 = vst.msk [vmem:[%s2532_s3 + $0x1d8] sm:$0xff] %vm1145_vm1, %v1806_v58  ;;  %1833 = vrcp.f32 %v989_v54  ;;  %v1466_v62 = vpop.f32.mrf.mxu0 }
 0x15d   :  { %v1542_v63 = vpop.f32.mrf.mxu1  ;;  %v1810_v0 = vpop.eup %1809  ;;  %v952_v1 = vadd.f32 1.0, %v1808_v61  ;;  %1835 = vpow2.f32 %v1299_v52  ;;  %v1300_v2 = vmul.f32 -1.442695, %v534_v59 }
 0x15e   :  { %v1812_v3 = vpop.eup %1811  ;;  %v990_v4 = vadd.f32 1.0, %v1810_v0  ;;  %1837 = vpow2.f32 %v1337_v56  ;;  %v536_v5 = vpop.f32.mrf.mxu0  ;;  %v1338_v6 = vmul.f32 -1.442695, %v686_v60 }
 0x15f   :  { %v688_v7 = vpop.f32.mrf.mxu1  ;;  %v1814_v8 = vpop.eup %1813  ;;  %1168 = vst.msk [vmem:[%s2532_s3 + $0xb0] sm:$0xff] %vm1145_vm1, %v1812_v3  ;;  %1839 = vrcp.f32 %v952_v1  ;;  %v537_v9 = vadd.f32 %v2385_v46, %v536_v5 }
 0x160   :  { %v689_v10 = vadd.f32 %v2385_v46, %v688_v7  ;;  %v1816_v11 = vpop.eup %1815  ;;  %1206 = vst.msk [vmem:[%s2532_s3 + $0x1e0] sm:$0xff] %vm1145_vm1, %v1814_v8  ;;  %1841 = vrcp.f32 %v990_v4  ;;  %v1467_v12 = vpop.f32.mrf.mxu0 }
 0x161   :  { %v1543_v13 = vpop.f32.mrf.mxu1  ;;  %v1818_v14 = vpop.eup %1817  ;;  %v953_v15 = vadd.f32 1.0, %v1816_v11  ;;  %1843 = vpow2.f32 %v1300_v2  ;;  %v1301_v16 = vmul.f32 -1.442695, %v537_v9 }
 0x162   :  { %v1820_v17 = vpop.eup %1819  ;;  %v991_v18 = vadd.f32 1.0, %v1818_v14  ;;  %1845 = vpow2.f32 %v1338_v6  ;;  %v541_v19 = vpop.f32.mrf.mxu0  ;;  %v1339_v20 = vmul.f32 -1.442695, %v689_v10 }
 0x163   :  { %v693_v21 = vpop.f32.mrf.mxu1  ;;  %v1822_v22 = vpop.eup %1821  ;;  %1169 = vst.msk [vmem:[%s2532_s3 + $0xb8] sm:$0xff] %vm1145_vm1, %v1820_v17  ;;  %1847 = vrcp.f32 %v953_v15  ;;  %v542_v23 = vadd.f32 %v2385_v46, %v541_v19 }
 0x164   :  { %v694_v24 = vadd.f32 %v2385_v46, %v693_v21  ;;  %v1824_v25 = vpop.eup %1823  ;;  %1207 = vst.msk [vmem:[%s2532_s3 + $0x1e8] sm:$0xff] %vm1145_vm1, %v1822_v22  ;;  %1849 = vrcp.f32 %v991_v18  ;;  %v1470_v26 = vpop.f32.mrf.mxu0 }
 0x165   :  { %v1546_v27 = vpop.f32.mrf.mxu1  ;;  %v1826_v28 = vpop.eup %1825  ;;  %1170 = vst.msk [vmem:[%s2532_s3 + $0xc0] sm:$0xff] %vm1145_vm1, %v1824_v25  ;;  %1851 = vpow2.f32 %v1301_v16  ;;  %v1302_v29 = vmul.f32 -1.442695, %v542_v23 }
 0x166   :  { %v1340_v30 = vmul.f32 -1.442695, %v694_v24  ;;  %v1828_v31 = vpop.eup %1827  ;;  %1208 = vst.msk [vmem:[%s2532_s3 + $0x1f0] sm:$0xff] %vm1145_vm1, %v1826_v28  ;;  %1853 = vpow2.f32 %v1339_v20  ;;  %v544_v32 = vpop.f32.mrf.mxu0 }
 0x167   :  { %v696_v33 = vpop.f32.mrf.mxu1  ;;  %v1830_v34 = vpop.eup %1829  ;;  %v954_v35 = vadd.f32 1.0, %v1828_v31  ;;  %1855 = vpow2.f32 %v1302_v29  ;;  %v545_v36 = vadd.f32 %v2385_v46, %v544_v32 }
 0x168   :  { %v697_v37 = vadd.f32 %v2385_v46, %v696_v33  ;;  %v1832_v38 = vpop.eup %1831  ;;  %v992_v39 = vadd.f32 1.0, %v1830_v34  ;;  %v1471_v40 = vpop.f32.mrf.mxu0  ;;  %1857 = vpow2.f32 %v1340_v30 }
 0x169   :  { %v1547_v41 = vpop.f32.mrf.mxu1  ;;  %v1834_v42 = vpop.eup %1833  ;;  %1171 = vst.msk [vmem:[%s2532_s3 + $0xc8] sm:$0xff] %vm1145_vm1, %v1832_v38  ;;  %1859 = vrcp.f32 %v954_v35  ;;  %v1303_v43 = vmul.f32 -1.442695, %v545_v36 }
 0x16a   :  { %v1341_v44 = vmul.f32 -1.442695, %v697_v37  ;;  %v1836_v45 = vpop.eup %1835  ;;  %1209 = vst.msk [vmem:[%s2532_s3 + $0x1f8] sm:$0xff] %vm1145_vm1, %v1834_v42  ;;  %1861 = vrcp.f32 %v992_v39  ;;  %v549_v47 = vpop.f32.mrf.mxu0 }
 0x16b   :  { %v701_v48 = vpop.f32.mrf.mxu1  ;;  %v1838_v49 = vpop.eup %1837  ;;  %v955_v50 = vadd.f32 1.0, %v1836_v45  ;;  %1863 = vpow2.f32 %v1303_v43  ;;  %v550_v51 = vadd.f32 %v2385_v46, %v549_v47 }
 0x16c   :  { %v702_v52 = vadd.f32 %v2385_v46, %v701_v48  ;;  %v1840_v53 = vpop.eup %1839  ;;  %v993_v54 = vadd.f32 1.0, %v1838_v49  ;;  %v1474_v55 = vpop.f32.mrf.mxu0  ;;  %1865 = vpow2.f32 %v1341_v44 }
 0x16d   :  { %v1550_v56 = vpop.f32.mrf.mxu1  ;;  %v1842_v57 = vpop.eup %1841  ;;  %1172 = vst.msk [vmem:[%s2532_s3 + $0xd0] sm:$0xff] %vm1145_vm1, %v1840_v53  ;;  %1867 = vrcp.f32 %v955_v50  ;;  %v1304_v58 = vmul.f32 -1.442695, %v550_v51 }
 0x16e   :  { %v1342_v59 = vmul.f32 -1.442695, %v702_v52  ;;  %v1844_v60 = vpop.eup %1843  ;;  %1210 = vst.msk [vmem:[%s2532_s3 + $0x200] sm:$0xff] %vm1145_vm1, %v1842_v57  ;;  %1869 = vrcp.f32 %v993_v54  ;;  %v552_v61 = vpop.f32.mrf.mxu0 }
 0x16f   :  { %v704_v62 = vpop.f32.mrf.mxu1  ;;  %v1846_v63 = vpop.eup %1845  ;;  %v956_v0 = vadd.f32 1.0, %v1844_v60  ;;  %1871 = vpow2.f32 %v1304_v58  ;;  %v553_v1 = vadd.f32 %v2385_v46, %v552_v61 }
 0x170   :  { %v1848_v2 = vpop.eup %1847  ;;  %v994_v3 = vadd.f32 1.0, %v1846_v63  ;;  %v1475_v4 = vpop.f32.mrf.mxu0  ;;  %1873 = vpow2.f32 %v1342_v59 }
 0x171   :  { %v1551_v5 = vpop.f32.mrf.mxu1  ;;  %v1850_v6 = vpop.eup %1849  ;;  %1173 = vst.msk [vmem:[%s2532_s3 + $0xd8] sm:$0xff] %vm1145_vm1, %v1848_v2  ;;  %1875 = vrcp.f32 %v956_v0  ;;  %v1305_v7 = vmul.f32 -1.442695, %v553_v1 }
 0x172   :  { %v1852_v8 = vpop.eup %1851  ;;  %1211 = vst.msk [vmem:[%s2532_s3 + $0x208] sm:$0xff] %vm1145_vm1, %v1850_v6  ;;  %1877 = vrcp.f32 %v994_v3  ;;  %v557_v9 = vpop.f32.mrf.mxu0 }
 0x173   :  { %v1854_v10 = vpop.eup %1853  ;;  %v957_v11 = vadd.f32 1.0, %v1852_v8  ;;  %1879 = vpow2.f32 %v1305_v7  ;;  %v558_v12 = vadd.f32 %v2385_v46, %v557_v9 }
 0x174   :  { %v1856_v13 = vpop.eup %1855  ;;  %v995_v14 = vadd.f32 1.0, %v1854_v10  ;;  %v1478_v15 = vpop.f32.mrf.mxu0 }
 0x175   :  { %v1858_v16 = vpop.eup %1857  ;;  %1881 = vrcp.f32 %v957_v11  ;;  %v958_v17 = vadd.f32 1.0, %v1856_v13  ;;  %v1306_v18 = vmul.f32 -1.442695, %v558_v12 }
 0x176   :  { %v1860_v19 = vpop.eup %1859  ;;  %1883 = vrcp.f32 %v995_v14  ;;  %v996_v20 = vadd.f32 1.0, %v1858_v16  ;;  %v560_v21 = vpop.f32.mrf.mxu0 }
 0x177   :  { %v1862_v22 = vpop.eup %1861  ;;  %1174 = vst.msk [vmem:[%s2532_s3 + $0xe0] sm:$0xff] %vm1145_vm1, %v1860_v19  ;;  %1885 = vrcp.f32 %v958_v17  ;;  %v561_v23 = vadd.f32 %v2385_v46, %v560_v21 }
 0x178   :  { %v1864_v24 = vpop.eup %1863  ;;  %1212 = vst.msk [vmem:[%s2532_s3 + $0x210] sm:$0xff] %vm1145_vm1, %v1862_v22  ;;  %1887 = vrcp.f32 %v996_v20  ;;  %v1479_v25 = vpop.f32.mrf.mxu0 }
 0x179   :  { %v1866_v26 = vpop.eup %1865  ;;  %v959_v27 = vadd.f32 1.0, %v1864_v24  ;;  %1889 = vpow2.f32 %v1306_v18  ;;  %v1307_v28 = vmul.f32 -1.442695, %v561_v23 }
 0x17a   :  { %v1868_v29 = vpop.eup %1867  ;;  %v997_v30 = vadd.f32 1.0, %v1866_v26 }
 0x17b   :  { %v1870_v31 = vpop.eup %1869  ;;  %1175 = vst.msk [vmem:[%s2532_s3 + $0xe8] sm:$0xff] %vm1145_vm1, %v1868_v29  ;;  %1891 = vrcp.f32 %v959_v27 }
 0x17c   :  { %v1872_v46 = vpop.eup %1871  ;;  %1213 = vst.msk [vmem:[%s2532_s3 + $0x218] sm:$0xff] %vm1145_vm1, %v1870_v31  ;;  %1893 = vrcp.f32 %v997_v30 }
 0x17d   :  { %v1874_v32 = vpop.eup %1873  ;;  %v960_v33 = vadd.f32 1.0, %v1872_v46  ;;  %1895 = vpow2.f32 %v1307_v28 }
 0x17e   :  { %v1876_v34 = vpop.eup %1875  ;;  %v998_v35 = vadd.f32 1.0, %v1874_v32 }
 0x17f   :  { %v1878_v36 = vpop.eup %1877  ;;  %1176 = vst.msk [vmem:[%s2532_s3 + $0xf0] sm:$0xff] %vm1145_vm1, %v1876_v34  ;;  %1897 = vrcp.f32 %v960_v33 }
 0x180   :  { %v1880_v37 = vpop.eup %1879  ;;  %1214 = vst.msk [vmem:[%s2532_s3 + $0x220] sm:$0xff] %vm1145_vm1, %v1878_v36  ;;  %1899 = vrcp.f32 %v998_v35 }
 0x181   :  { %v961_v38 = vadd.f32 1.0, %v1880_v37 }
 0x182   :  { %v1882_v39 = vpop.eup %1881 }
 0x183   :  { %v1884_v40 = vpop.eup %1883  ;;  %1177 = vst.msk [vmem:[%s2532_s3 + $0xf8] sm:$0xff] %vm1145_vm1, %v1882_v39  ;;  %1901 = vrcp.f32 %v961_v38 }
 0x184   :  { %v1886_v41 = vpop.eup %1885  ;;  %1215 = vst.msk [vmem:[%s2532_s3 + $0x228] sm:$0xff] %vm1145_vm1, %v1884_v40 }
 0x185   :  { %v1888_v42 = vpop.eup %1887  ;;  %1178 = vst.msk [vmem:[%s2532_s3 + $0x100] sm:$0xff] %vm1145_vm1, %v1886_v41 }
 0x186   :  { %v1890_v43 = vpop.eup %1889  ;;  %1216 = vst.msk [vmem:[%s2532_s3 + $0x230] sm:$0xff] %vm1145_vm1, %v1888_v42 }
 0x187   :  { %v962_v44 = vadd.f32 1.0, %v1890_v43 }
 0x188   :  { %v1892_v45 = vpop.eup %1891 }
 0x189   :  { %v1894_v47 = vpop.eup %1893  ;;  %1179 = vst.msk [vmem:[%s2532_s3 + $0x108] sm:$0xff] %vm1145_vm1, %v1892_v45  ;;  %1903 = vrcp.f32 %v962_v44 }
 0x18a   :  { %v1896_v48 = vpop.eup %1895  ;;  %1217 = vst.msk [vmem:[%s2532_s3 + $0x238] sm:$0xff] %vm1145_vm1, %v1894_v47 }
 0x18b   :  { %v963_v49 = vadd.f32 1.0, %v1896_v48 }
 0x18c   :  { %v1898_v50 = vpop.eup %1897 }
 0x18d   :  { %v1900_v51 = vpop.eup %1899  ;;  %1180 = vst.msk [vmem:[%s2532_s3 + $0x110] sm:$0xff] %vm1145_vm1, %v1898_v50  ;;  %1905 = vrcp.f32 %v963_v49 }
 0x18e   :  { %1219 = vst.msk [vmem:[%s2532_s3 + $0x240] sm:$0x3] %vm1218_vm2, %v1900_v51 }
 0x190   :  { %v1902_v52 = vpop.eup %1901 }
 0x191   :  { %1181 = vst.msk [vmem:[%s2532_s3 + $0x118] sm:$0xff] %vm1145_vm1, %v1902_v52 }
 0x196   :  { %v1904_v53 = vpop.eup %1903 }
 0x197   :  { %1182 = vst.msk [vmem:[%s2532_s3 + $0x120] sm:$0xff] %vm1145_vm1, %v1904_v53 }
 0x19a   :  { %v1906_v54 = vpop.eup %1905 }
 0x19b   :  { %1183 = vst.msk [vmem:[%s2532_s3 + $0x128] sm:$0xff] %vm1145_vm1, %v1906_v54 }

</bundles_post_ra>
